<compile_context>
chip_gen: v5e
topology: v5e:2x2
jax: 0.10.0
libtpu: 0.0.40
codegen_flags: <defaults>
</compile_context>

<pallas_src>
import math
from functools import partial

import jax
import jax.numpy as jnp
from jax import lax
from jax.experimental import pallas as pl
from jax.experimental.pallas import tpu as pltpu

EPS = 1e-5
NEG_INF = -1e30          # large finite negative bias (no inf-inf NaNs)


def _vmem_limit_bytes():
    """Per-generation VMEM limit: ~3/4 of physical, capped at 100 MiB."""
    cap = 64 * 1024 * 1024
    try:
        info = pltpu.get_tpu_info()
        for name in ("vmem_capacity_bytes", "vmem_size_bytes", "vmem_bytes"):
            v = getattr(info, name, None)
            if isinstance(v, int) and v > 0:
                cap = v
                break
    except Exception:
        pass
    return min(cap * 3 // 4, 100 * 1024 * 1024)


# ---------------------------------------------------------------------------
# shared math helpers (pure jnp -> usable both inside kernels and in reference)
# ---------------------------------------------------------------------------
def _layernorm(x, scale, shift):
    # matches the custom LayerNorm module: torch.var default => unbiased (N-1)
    n = x.shape[-1]
    mean = jnp.mean(x, axis=-1, keepdims=True)
    diff = x - mean
    var = jnp.sum(diff * diff, axis=-1, keepdims=True) / (n - 1)
    return scale * (diff * lax.rsqrt(var + EPS)) + shift


def _gelu(x):
    c = math.sqrt(2.0 / math.pi)
    return 0.5 * x * (1.0 + jnp.tanh(c * (x + 0.044715 * x * x * x)))


# ---------------------------------------------------------------------------
# Pallas kernel: full transformer-block stack.
# grid = (L,): layer axis "arbitrary".  The (B*S, E) output block is resident
# across the whole grid and carries the activation; per-layer bf16 weights are
# streamed (double-buffered) exactly once per layer.
# ---------------------------------------------------------------------------
def transformer_stack_kernel(x0_ref,
                             wqkv_ref, wo_ref, bo_ref,
                             n1s_ref, n1b_ref, n2s_ref, n2b_ref,
                             w1_ref, b1_ref, w2_ref, b2_ref,
                             fns_ref, fnb_ref,
                             out_ref, *, batch, seq, num_heads):
    lidx = pl.program_id(0)
    n_layers = pl.num_programs(0)

    @pl.when(lidx == 0)
    def _():
        out_ref[...] = x0_ref[...]

    x = out_ref[...]                               # (B*S, E) f32 carried act
    BS, E = x.shape
    B, S, H = batch, seq, num_heads
    hd = E // H
    bf16, f32 = jnp.bfloat16, jnp.float32

    # ---------------- attention ----------------
    xn = _layernorm(x, n1s_ref[0, 0], n1b_ref[0, 0]).astype(bf16)
    # fused QKV: one MXU pass with N = 3E, q/k/v sliced at 128-aligned offsets
    qkv = jnp.dot(xn, wqkv_ref[0], preferred_element_type=f32)   # (B*S, 3E)
    q = qkv[:, :E] * (1.0 / math.sqrt(hd))         # fold scale into q
    k = qkv[:, E:2 * E]
    v = qkv[:, 2 * E:]

    def to_heads(t):                               # (B*S, E) -> (B*H, S, hd)
        t = t.reshape(B, S, H, hd)
        t = jnp.swapaxes(t, 1, 2)                  # (B, H, S, hd)
        return t.reshape(B * H, S, hd)

    qh = to_heads(q).astype(bf16)
    kh = to_heads(k).astype(bf16)
    vh = to_heads(v).astype(bf16)

    # batched QK^T / softmax / PV (no per-head matmul loop)
    s = jnp.einsum('bqd,bkd->bqk', qh, kh,
                   preferred_element_type=f32)     # (B*H, S, S)
    row = lax.broadcasted_iota(jnp.int32, (S, S), 0)
    col = lax.broadcasted_iota(jnp.int32, (S, S), 1)
    bias = jnp.where(col <= row, 0.0, NEG_INF).astype(f32)   # built in-kernel
    s = s + bias[None]
    s = s - jnp.max(s, axis=-1, keepdims=True)
    p = jnp.exp(s)
    p = p / jnp.sum(p, axis=-1, keepdims=True)     # exact softmax normalization
    ctx = jnp.einsum('bqk,bkd->bqd', p.astype(bf16), vh,
                     preferred_element_type=f32)   # (B*H, S, hd)
    # TODO(synk): for large S on v7x (64 MiB VMEM), tile the KV axis
    # (flash-style online softmax) instead of materializing (B*H, S, S).

    ctx = jnp.swapaxes(ctx.reshape(B, H, S, hd), 1, 2).reshape(BS, E)
    attn = jnp.dot(ctx.astype(bf16), wo_ref[0],
                   preferred_element_type=f32) + bo_ref[0, 0]
    x = x + attn

    # ---------------- feed-forward --------------
    xn2 = _layernorm(x, n2s_ref[0, 0], n2b_ref[0, 0]).astype(bf16)
    h1 = jnp.dot(xn2, w1_ref[0], preferred_element_type=f32) + b1_ref[0, 0]
    h1 = _gelu(h1)
    ff = jnp.dot(h1.astype(bf16), w2_ref[0],
                 preferred_element_type=f32) + b2_ref[0, 0]
    x = x + ff
    # TODO(synk): for large E on v7x, stream w1/w2 in F-chunks with a VMEM
    # accumulator instead of holding the full (E,4E)+(4E,E) blocks per layer.

    # final LayerNorm fused into the last layer step (computed exactly once,
    # so the logits kernel never recomputes it per vocab tile)
    @pl.when(lidx == n_layers - 1)
    def _():
        out_ref[...] = _layernorm(x, fns_ref[0], fnb_ref[0])

    @pl.when(lidx < n_layers - 1)
    def _():
        out_ref[...] = x


# ---------------------------------------------------------------------------
# Pallas kernel: vocab projection of the (already final-normalized) activation,
# tiled over (rows, vocab).  The bf16 cast of the row tile is hoisted into a
# VMEM scratch at j == 0 and reused across all vocab tiles of that row tile.
# ---------------------------------------------------------------------------
def head_kernel(x_ref, wout_ref, logits_ref, xb_ref):
    @pl.when(pl.program_id(1) == 0)
    def _():
        xb_ref[...] = x_ref[...].astype(jnp.bfloat16)
    logits_ref[...] = jnp.dot(xb_ref[...], wout_ref[...],
                              preferred_element_type=jnp.float32)


def _pick_tile(n, preferred, align):
    t = min(preferred, n)
    t = (t // align) * align
    while t >= align:
        if n % t == 0:
            return t
        t -= align
    return n


# ---------------------------------------------------------------------------
# wrapper
# ---------------------------------------------------------------------------
def gpt_forward(idx, params, *, num_heads):
    tok_emb = params['tok_emb']            # (V, E) f32
    pos_emb = params['pos_emb']            # (C, E) f32
    B, S = idx.shape
    V, E = tok_emb.shape
    L = params['wqkv'].shape[0]
    F = params['w1'].shape[-1]
    BS = B * S
    vmem_limit = _vmem_limit_bytes()

    # glue: embedding gather + positional add (dropout p=0 -> identity);
    # fold batch into rows so weights stream once per layer.
    x0 = (jnp.take(tok_emb, idx, axis=0) + pos_emb[:S][None]
          ).astype(jnp.float32).reshape(BS, E)

    lmap = lambda l: (l, 0, 0)
    amap = lambda l: (0, 0)
    block_fn = pl.pallas_call(
        partial(transformer_stack_kernel, batch=B, seq=S, num_heads=num_heads),
        out_shape=jax.ShapeDtypeStruct((BS, E), jnp.float32),
        grid_spec=pltpu.PrefetchScalarGridSpec(
            num_scalar_prefetch=0,
            grid=(L,),
            in_specs=[
                pl.BlockSpec((BS, E), amap),            # x0 (aliased with out)
                pl.BlockSpec((1, E, 3 * E), lmap),      # fused wqkv (bf16)
                pl.BlockSpec((1, E, E), lmap),          # wo (bf16)
                pl.BlockSpec((1, 1, E), lmap),          # bo
                pl.BlockSpec((1, 1, E), lmap),          # norm1 scale
                pl.BlockSpec((1, 1, E), lmap),          # norm1 shift
                pl.BlockSpec((1, 1, E), lmap),          # norm2 scale
                pl.BlockSpec((1, 1, E), lmap),          # norm2 shift
                pl.BlockSpec((1, E, F), lmap),          # ff w1 (bf16)
                pl.BlockSpec((1, 1, F), lmap),          # ff b1
                pl.BlockSpec((1, F, E), lmap),          # ff w2 (bf16)
                pl.BlockSpec((1, 1, E), lmap),          # ff b2
                pl.BlockSpec((1, E), amap),             # final norm scale
                pl.BlockSpec((1, E), amap),             # final norm shift
            ],
            out_specs=pl.BlockSpec((BS, E), amap),
        ),
        input_output_aliases={0: 0},     # carried activation reuses x0's buffer
        compiler_params=pltpu.CompilerParams(
            dimension_semantics=("arbitrary",),
            vmem_limit_bytes=vmem_limit),
    )
    # TODO(synk): on v7x (2 TCs) add a leading size-2 "parallel" grid axis that
    # splits the batch rows across cores (weights then stream 2x per layer).
    xn = block_fn(x0,
                  params['wqkv'], params['wo'], params['bo'],
                  params['n1s'], params['n1b'], params['n2s'], params['n2b'],
                  params['w1'], params['b1'], params['w2'], params['b2'],
                  params['fns'], params['fnb'])

    # vocab projection: stream wout over lane-dense (E, TV) tiles; row tile is
    # 16-aligned (bf16 sublane packing) and sized toward the VMEM budget.
    TM = _pick_tile(BS, 1024, 16)
    TV = _pick_tile(V, 2048, 128)
    head_fn = pl.pallas_call(
        head_kernel,
        out_shape=jax.ShapeDtypeStruct((BS, V), jnp.float32),
        grid_spec=pltpu.PrefetchScalarGridSpec(
            num_scalar_prefetch=0,
            grid=(BS // TM, V // TV),
            in_specs=[
                pl.BlockSpec((TM, E), lambda i, j: (i, 0)),   # normalized rows
                pl.BlockSpec((E, TV), lambda i, j: (0, j)),   # wout (bf16)
            ],
            out_specs=pl.BlockSpec((TM, TV), lambda i, j: (i, j)),
            scratch_shapes=[pltpu.VMEM((TM, E), jnp.bfloat16)],
        ),
        compiler_params=pltpu.CompilerParams(
            dimension_semantics=("parallel", "arbitrary"),
            vmem_limit_bytes=vmem_limit),
    )
    logits = head_fn(xn, params['wout'])
    return logits.reshape(B, S, V)


# ---------------------------------------------------------------------------
# pure-JAX f32 reference (mirrors the PyTorch forward semantics)
# ---------------------------------------------------------------------------
def gpt_reference(idx, params, *, num_heads):
    f32 = jnp.float32
    B, S = idx.shape
    E = params['tok_emb'].shape[1]
    H, hd = num_heads, E // num_heads
    x = (jnp.take(params['tok_emb'], idx, axis=0)
         + params['pos_emb'][:S][None]).astype(f32)
    causal = jnp.tril(jnp.ones((S, S), dtype=bool))
    for l in range(params['wqkv'].shape[0]):
        wqkv = params['wqkv'][l].astype(f32)
        wq, wk, wv = wqkv[:, :E], wqkv[:, E:2 * E], wqkv[:, 2 * E:]
        wo = params['wo'][l].astype(f32)
        w1 = params['w1'][l].astype(f32)
        w2 = params['w2'][l].astype(f32)
        xn = _layernorm(x, params['n1s'][l, 0], params['n1b'][l, 0])
        q, k, v = xn @ wq, xn @ wk, xn @ wv
        qh = q.reshape(B, S, H, hd).transpose(0, 2, 1, 3)
        kh = k.reshape(B, S, H, hd).transpose(0, 2, 1, 3)
        vh = v.reshape(B, S, H, hd).transpose(0, 2, 1, 3)
        s = jnp.einsum('bhsd,bhtd->bhst', qh, kh) / math.sqrt(hd)
        s = jnp.where(causal[None, None], s, -jnp.inf)
        p = jax.nn.softmax(s, axis=-1)
        ctx = jnp.einsum('bhst,bhtd->bhsd', p, vh).transpose(0, 2, 1, 3).reshape(B, S, E)
        x = x + ctx @ wo + params['bo'][l, 0]
        xn2 = _layernorm(x, params['n2s'][l, 0], params['n2b'][l, 0])
        h1 = _gelu(xn2 @ w1 + params['b1'][l, 0])
        x = x + h1 @ w2 + params['b2'][l, 0]
    xn = _layernorm(x, params['fns'][0], params['fnb'][0])
    return xn @ params['wout'].astype(f32)


# ---------------------------------------------------------------------------
# deterministic parameter init (matmul weights stored in bf16, QKV fused)
# ---------------------------------------------------------------------------
def init_params(key, *, vocab, ctx_len, emb, n_layers):
    ks = jax.random.split(key, 16)
    s = 0.02
    f32, bf16 = jnp.float32, jnp.bfloat16
    wq = s * jax.random.normal(ks[2], (n_layers, emb, emb), f32)
    wk = s * jax.random.normal(ks[3], (n_layers, emb, emb), f32)
    wv = s * jax.random.normal(ks[4], (n_layers, emb, emb), f32)
    return {
        'tok_emb': s * jax.random.normal(ks[0], (vocab, emb), f32),
        'pos_emb': s * jax.random.normal(ks[1], (ctx_len, emb), f32),
        # fused QKV weight: (L, E, 3E), output columns ordered [q | k | v]
        'wqkv': jnp.concatenate([wq, wk, wv], axis=-1).astype(bf16),
        'wo': (s * jax.random.normal(ks[5], (n_layers, emb, emb), f32)).astype(bf16),
        'bo': s * jax.random.normal(ks[6], (n_layers, 1, emb), f32),
        'n1s': jnp.ones((n_layers, 1, emb), f32),
        'n1b': jnp.zeros((n_layers, 1, emb), f32),
        'n2s': jnp.ones((n_layers, 1, emb), f32),
        'n2b': jnp.zeros((n_layers, 1, emb), f32),
        'w1': (s * jax.random.normal(ks[7], (n_layers, emb, 4 * emb), f32)).astype(bf16),
        'b1': s * jax.random.normal(ks[8], (n_layers, 1, 4 * emb), f32),
        'w2': (s * jax.random.normal(ks[9], (n_layers, 4 * emb, emb), f32)).astype(bf16),
        'b2': s * jax.random.normal(ks[10], (n_layers, 1, emb), f32),
        'fns': jnp.ones((1, emb), f32),
        'fnb': jnp.zeros((1, emb), f32),
        'wout': (s * jax.random.normal(ks[11], (emb, vocab), f32)).astype(bf16),
    }


if __name__ == "__main__":
    # small config: vocab=256, context=16, emb=128 (lane-aligned), heads=4,
    # layers=2, drop=0.0
    VOCAB, CTX, EMB, HEADS, LAYERS = 256, 16, 128, 4, 2
    B, S = 2, 8

    key = jax.random.PRNGKey(0)
    k_p, k_idx = jax.random.split(key)
    params = init_params(k_p, vocab=VOCAB, ctx_len=CTX, emb=EMB, n_layers=LAYERS)
    idx = jax.random.randint(k_idx, (B, S), 0, VOCAB, dtype=jnp.int32)

    fwd = jax.jit(partial(gpt_forward, num_heads=HEADS))
    logits = jax.block_until_ready(fwd(idx, params))

    ref = gpt_reference(idx, params, num_heads=HEADS)
    assert logits.shape == (B, S, VOCAB)
    err = jnp.max(jnp.abs(logits - ref))
    # tolerance accounts for bf16 MXU operands (activations cast per matmul)
    assert jnp.allclose(logits, ref, rtol=3e-2, atol=3e-2), f"max abs diff {err}"
    print("KERNEL_OK")
</pallas_src>

<mosaic_0001>
module attributes {stable_mosaic.version = 11 : i64} {
  func.func @head_kernel(%arg0: i32, %arg1: i32, %arg2: memref<16x128xf32, #tpu.memory_space<vmem>>, %arg3: memref<128x256xbf16, #tpu.memory_space<vmem>>, %arg4: memref<16x256xf32, #tpu.memory_space<vmem>>, %arg5: memref<16x128xbf16, #tpu.memory_space<vmem>>) attributes {dimension_semantics = [#tpu.dimension_semantics<parallel>, #tpu.dimension_semantics<arbitrary>], iteration_bounds = array<i64: 1, 1>, scalar_prefetch = 0 : i64, scratch_operands = 1 : i64, tpu.core_type = #tpu.core_type<tc>, window_params = [{transform_indices = @transform_0, window_bounds = array<i64: 16, 128>}, {transform_indices = @transform_1, window_bounds = array<i64: 128, 256>}, {transform_indices = @transform_2, window_bounds = array<i64: 16, 256>}]} {
    %c0_i32 = arith.constant 0 : i32
    %0 = arith.cmpi eq, %arg1, %c0_i32 : i32
    %1 = arith.extui %0 : i1 to i32
    %c0_i32_0 = arith.constant 0 : i32
    %2 = arith.cmpi ne, %1, %c0_i32_0 : i32
    scf.if %2 {
      %c0_6 = arith.constant 0 : index
      %c0_7 = arith.constant 0 : index
      %7 = vector.load %arg2[%c0_6, %c0_7] : memref<16x128xf32, #tpu.memory_space<vmem>>, vector<16x128xf32>
      %8 = arith.truncf %7 : vector<16x128xf32> to vector<16x128xbf16>
      %c0_8 = arith.constant 0 : index
      %c0_9 = arith.constant 0 : index
      %9 = vector.load %arg5[%c0_8, %c0_9] : memref<16x128xbf16, #tpu.memory_space<vmem>>, vector<16x128xbf16>
      tpu.vector_store %arg5[%c0_8, %c0_9], %8 {strides = array<i32>} : memref<16x128xbf16, #tpu.memory_space<vmem>>, vector<16x128xbf16>,
    } else {
    }
    %c0 = arith.constant 0 : index
    %c0_1 = arith.constant 0 : index
    %3 = vector.load %arg5[%c0, %c0_1] : memref<16x128xbf16, #tpu.memory_space<vmem>>, vector<16x128xbf16>
    %c0_2 = arith.constant 0 : index
    %c0_3 = arith.constant 0 : index
    %4 = vector.load %arg3[%c0_2, %c0_3] : memref<128x256xbf16, #tpu.memory_space<vmem>>, vector<128x256xbf16>
    %cst = arith.constant dense<0.000000e+00> : vector<16x256xf32>
    %5 = tpu.matmul %3, %4, %cst {dimension_numbers = #tpu.dot_dimension_numbers<[1], [0], [0], [1], [0, 0, 1, 1], [], []>} : vector<16x128xbf16>, vector<128x256xbf16>, vector<16x256xf32> -> vector<16x256xf32>
    %c0_4 = arith.constant 0 : index
    %c0_5 = arith.constant 0 : index
    %6 = vector.load %arg4[%c0_4, %c0_5] : memref<16x256xf32, #tpu.memory_space<vmem>>, vector<16x256xf32>
    tpu.vector_store %arg4[%c0_4, %c0_5], %5 {strides = array<i32>} : memref<16x256xf32, #tpu.memory_space<vmem>>, vector<16x256xf32>,
    return
  }
  func.func @transform_0(%arg0: i32, %arg1: i32) -> (i32, i32) {
    %c0_i32 = arith.constant 0 : i32
    %c0_i32_0 = arith.constant 0 : i32
    return %arg0, %c0_i32 : i32, i32
  }
  func.func @transform_1(%arg0: i32, %arg1: i32) -> (i32, i32) {
    %c0_i32 = arith.constant 0 : i32
    %c0_i32_0 = arith.constant 0 : i32
    return %c0_i32, %arg1 : i32, i32
  }
  func.func @transform_2(%arg0: i32, %arg1: i32) -> (i32, i32) {
    %c0_i32 = arith.constant 0 : i32
    return %arg0, %arg1 : i32, i32
  }
}

module attributes {stable_mosaic.version = 11 : i64} {
  func.func @transformer_stack_kernel(%arg0: i32, %arg1: memref<16x128xf32, #tpu.memory_space<vmem>>, %arg2: memref<1x128x384xbf16, #tpu.memory_space<vmem>>, %arg3: memref<1x128x128xbf16, #tpu.memory_space<vmem>>, %arg4: memref<1x1x128xf32, #tpu.memory_space<vmem>>, %arg5: memref<1x1x128xf32, #tpu.memory_space<vmem>>, %arg6: memref<1x1x128xf32, #tpu.memory_space<vmem>>, %arg7: memref<1x1x128xf32, #tpu.memory_space<vmem>>, %arg8: memref<1x1x128xf32, #tpu.memory_space<vmem>>, %arg9: memref<1x128x512xbf16, #tpu.memory_space<vmem>>, %arg10: memref<1x1x512xf32, #tpu.memory_space<vmem>>, %arg11: memref<1x512x128xbf16, #tpu.memory_space<vmem>>, %arg12: memref<1x1x128xf32, #tpu.memory_space<vmem>>, %arg13: memref<1x128xf32, #tpu.memory_space<vmem>>, %arg14: memref<1x128xf32, #tpu.memory_space<vmem>>, %arg15: memref<16x128xf32, #tpu.memory_space<vmem>>) attributes {dimension_semantics = [#tpu.dimension_semantics<arbitrary>], iteration_bounds = array<i64: 2>, scalar_prefetch = 0 : i64, scratch_operands = 0 : i64, tpu.core_type = #tpu.core_type<tc>, window_params = [{pipeline_mode = #tpu.pipeline_mode<synchronous>, transform_indices = @transform_0, window_bounds = array<i64: 16, 128>}, {transform_indices = @transform_1, window_bounds = array<i64: 1, 128, 384>}, {transform_indices = @transform_2, window_bounds = array<i64: 1, 128, 128>}, {transform_indices = @transform_3, window_bounds = array<i64: 1, 1, 128>}, {transform_indices = @transform_4, window_bounds = array<i64: 1, 1, 128>}, {transform_indices = @transform_5, window_bounds = array<i64: 1, 1, 128>}, {transform_indices = @transform_6, window_bounds = array<i64: 1, 1, 128>}, {transform_indices = @transform_7, window_bounds = array<i64: 1, 1, 128>}, {transform_indices = @transform_8, window_bounds = array<i64: 1, 128, 512>}, {transform_indices = @transform_9, window_bounds = array<i64: 1, 1, 512>}, {transform_indices = @transform_10, window_bounds = array<i64: 1, 512, 128>}, {transform_indices = @transform_11, window_bounds = array<i64: 1, 1, 128>}, {pipeline_mode = #tpu.pipeline_mode<synchronous>, transform_indices = @transform_12, window_bounds = array<i64: 1, 128>}, {pipeline_mode = #tpu.pipeline_mode<synchronous>, transform_indices = @transform_13, window_bounds = array<i64: 1, 128>}, {pipeline_mode = #tpu.pipeline_mode<synchronous>, transform_indices = @transform_14, window_bounds = array<i64: 16, 128>}]} {
    %c0_i32 = arith.constant 0 : i32
    %0 = arith.cmpi eq, %arg0, %c0_i32 : i32
    %1 = arith.extui %0 : i1 to i32
    %c0_i32_0 = arith.constant 0 : i32
    %2 = arith.cmpi ne, %1, %c0_i32_0 : i32
    scf.if %2 {
      %c0_62 = arith.constant 0 : index
      %c0_63 = arith.constant 0 : index
      %149 = vector.load %arg1[%c0_62, %c0_63] : memref<16x128xf32, #tpu.memory_space<vmem>>, vector<16x128xf32>
      %c0_64 = arith.constant 0 : index
      %c0_65 = arith.constant 0 : index
      %150 = vector.load %arg15[%c0_64, %c0_65] : memref<16x128xf32, #tpu.memory_space<vmem>>, vector<16x128xf32>
      tpu.vector_store %arg15[%c0_64, %c0_65], %149 {strides = array<i32>} : memref<16x128xf32, #tpu.memory_space<vmem>>, vector<16x128xf32>,
    } else {
    }
    %c0 = arith.constant 0 : index
    %c0_1 = arith.constant 0 : index
    %3 = vector.load %arg15[%c0, %c0_1] : memref<16x128xf32, #tpu.memory_space<vmem>>, vector<16x128xf32>
    %c0_2 = arith.constant 0 : index
    %c0_3 = arith.constant 0 : index
    %c0_4 = arith.constant 0 : index
    %4 = vector.load %arg5[%c0_2, %c0_3, %c0_4] : memref<1x1x128xf32, #tpu.memory_space<vmem>>, vector<1x1x128xf32>
    %5 = vector.shape_cast %4 : vector<1x1x128xf32> to vector<128xf32>
    %c0_5 = arith.constant 0 : index
    %c0_6 = arith.constant 0 : index
    %c0_7 = arith.constant 0 : index
    %6 = vector.load %arg6[%c0_5, %c0_6, %c0_7] : memref<1x1x128xf32, #tpu.memory_space<vmem>>, vector<1x1x128xf32>
    %7 = vector.shape_cast %6 : vector<1x1x128xf32> to vector<128xf32>
    %cst = arith.constant dense<0.000000e+00> : vector<16xf32>
    %8 = vector.multi_reduction <add>, %3, %cst [1] : vector<16x128xf32> to vector<16xf32>
    %9 = vector.shape_cast %8 : vector<16xf32> to vector<16x1xf32>
    %cst_8 = arith.constant 1.280000e+02 : f32
    %10 = vector.broadcast %cst_8 : f32 to vector<16x1xf32>
    %11 = arith.divf %9, %10 : vector<16x1xf32>
    %12 = vector.broadcast %11 : vector<16x1xf32> to vector<16x128xf32>
    %13 = arith.subf %3, %12 : vector<16x128xf32>
    %14 = arith.mulf %13, %13 : vector<16x128xf32>
    %cst_9 = arith.constant dense<0.000000e+00> : vector<16xf32>
    %15 = vector.multi_reduction <add>, %14, %cst_9 [1] : vector<16x128xf32> to vector<16xf32>
    %16 = vector.shape_cast %15 : vector<16xf32> to vector<16x1xf32>
    %cst_10 = arith.constant 1.270000e+02 : f32
    %17 = vector.broadcast %cst_10 : f32 to vector<16x1xf32>
    %18 = arith.divf %16, %17 : vector<16x1xf32>
    %cst_11 = arith.constant 9.99999974E-6 : f32
    %19 = vector.broadcast %cst_11 : f32 to vector<16x1xf32>
    %20 = arith.addf %18, %19 : vector<16x1xf32>
    %21 = math.rsqrt %20 : vector<16x1xf32>
    %22 = vector.broadcast %21 : vector<16x1xf32> to vector<16x128xf32>
    %23 = arith.mulf %13, %22 : vector<16x128xf32>
    %24 = vector.shape_cast %5 : vector<128xf32> to vector<1x128xf32>
    %25 = vector.broadcast %24 : vector<1x128xf32> to vector<16x128xf32>
    %26 = arith.mulf %25, %23 : vector<16x128xf32>
    %27 = vector.shape_cast %7 : vector<128xf32> to vector<1x128xf32>
    %28 = vector.broadcast %27 : vector<1x128xf32> to vector<16x128xf32>
    %29 = arith.addf %26, %28 : vector<16x128xf32>
    %30 = arith.truncf %29 : vector<16x128xf32> to vector<16x128xbf16>
    %c0_12 = arith.constant 0 : index
    %c0_13 = arith.constant 0 : index
    %c0_14 = arith.constant 0 : index
    %31 = vector.load %arg2[%c0_12, %c0_13, %c0_14] : memref<1x128x384xbf16, #tpu.memory_space<vmem>>, vector<1x128x384xbf16>
    %32 = vector.shape_cast %31 : vector<1x128x384xbf16> to vector<128x384xbf16>
    %cst_15 = arith.constant dense<0.000000e+00> : vector<16x384xf32>
    %33 = tpu.matmul %30, %32, %cst_15 {dimension_numbers = #tpu.dot_dimension_numbers<[1], [0], [0], [1], [0, 0, 1, 1], [], []>} : vector<16x128xbf16>, vector<128x384xbf16>, vector<16x384xf32> -> vector<16x384xf32>
    %34 = vector.extract_strided_slice %33 {offsets = [0, 0], sizes = [16, 128], strides = [1, 1]} : vector<16x384xf32> to vector<16x128xf32>
    %cst_16 = arith.constant 0.176776692 : f32
    %35 = vector.broadcast %cst_16 : f32 to vector<16x128xf32>
    %36 = arith.mulf %34, %35 : vector<16x128xf32>
    %37 = vector.extract_strided_slice %33 {offsets = [0, 128], sizes = [16, 128], strides = [1, 1]} : vector<16x384xf32> to vector<16x128xf32>
    %38 = vector.extract_strided_slice %33 {offsets = [0, 256], sizes = [16, 128], strides = [1, 1]} : vector<16x384xf32> to vector<16x128xf32>
    %39 = vector.shape_cast %36 : vector<16x128xf32> to vector<2x8x4x32xf32>
    %40 = tpu.transpose %39, [0, 2, 1, 3] : vector<2x8x4x32xf32> -> vector<2x4x8x32xf32>
    %41 = vector.shape_cast %40 : vector<2x4x8x32xf32> to vector<8x8x32xf32>
    %42 = arith.truncf %41 : vector<8x8x32xf32> to vector<8x8x32xbf16>
    %43 = vector.shape_cast %37 : vector<16x128xf32> to vector<2x8x4x32xf32>
    %44 = tpu.transpose %43, [0, 2, 1, 3] : vector<2x8x4x32xf32> -> vector<2x4x8x32xf32>
    %45 = vector.shape_cast %44 : vector<2x4x8x32xf32> to vector<8x8x32xf32>
    %46 = arith.truncf %45 : vector<8x8x32xf32> to vector<8x8x32xbf16>
    %47 = vector.shape_cast %38 : vector<16x128xf32> to vector<2x8x4x32xf32>
    %48 = tpu.transpose %47, [0, 2, 1, 3] : vector<2x8x4x32xf32> -> vector<2x4x8x32xf32>
    %49 = vector.shape_cast %48 : vector<2x4x8x32xf32> to vector<8x8x32xf32>
    %50 = arith.truncf %49 : vector<8x8x32xf32> to vector<8x8x32xbf16>
    "tpu.trace_start"() <{level = 10 : i32, message = "bqd,bkd->bqk"}> : () -> ()
    %cst_17 = arith.constant dense<0.000000e+00> : vector<8x8x8xf32>
    %51 = tpu.matmul %42, %46, %cst_17 {dimension_numbers = #tpu.dot_dimension_numbers<[2], [2], [1], [1], [0, 0, 0, 1, 1, 1], [0], [0]>} : vector<8x8x32xbf16>, vector<8x8x32xbf16>, vector<8x8x8xf32> -> vector<8x8x8xf32>
    "tpu.trace_stop"() : () -> ()
    %52 = tpu.iota {dimensions = array<i32: 0>} : vector<8x8xi32>
    %53 = tpu.iota {dimensions = array<i32: 1>} : vector<8x8xi32>
    %54 = arith.cmpi sle, %53, %52 : vector<8x8xi32>
    %cst_18 = arith.constant 0.000000e+00 : f32
    %cst_19 = arith.constant -1.000000e+30 : f32
    %55 = vector.broadcast %cst_18 : f32 to vector<8x8xf32>
    %56 = vector.broadcast %cst_19 : f32 to vector<8x8xf32>
    %57 = arith.select %54, %55, %56 : vector<8x8xi1>, vector<8x8xf32>
    %58 = vector.shape_cast %57 : vector<8x8xf32> to vector<1x8x8xf32>
    %59 = vector.broadcast %58 : vector<1x8x8xf32> to vector<8x8x8xf32>
    %60 = arith.addf %51, %59 : vector<8x8x8xf32>
    %cst_20 = arith.constant dense<0xFF800000> : vector<8x8xf32>
    %61 = vector.multi_reduction <maximumf>, %60, %cst_20 [2] : vector<8x8x8xf32> to vector<8x8xf32>
    %62 = vector.shape_cast %61 : vector<8x8xf32> to vector<8x8x1xf32>
    %63 = vector.broadcast %62 : vector<8x8x1xf32> to vector<8x8x8xf32>
    %64 = arith.subf %60, %63 : vector<8x8x8xf32>
    %65 = math.exp %64 : vector<8x8x8xf32>
    %cst_21 = arith.constant dense<0.000000e+00> : vector<8x8xf32>
    %66 = vector.multi_reduction <add>, %65, %cst_21 [2] : vector<8x8x8xf32> to vector<8x8xf32>
    %67 = vector.shape_cast %66 : vector<8x8xf32> to vector<8x8x1xf32>
    %68 = vector.broadcast %67 : vector<8x8x1xf32> to vector<8x8x8xf32>
    %69 = arith.divf %65, %68 : vector<8x8x8xf32>
    %70 = arith.truncf %69 : vector<8x8x8xf32> to vector<8x8x8xbf16>
    "tpu.trace_start"() <{level = 10 : i32, message = "bqk,bkd->bqd"}> : () -> ()
    %cst_22 = arith.constant dense<0.000000e+00> : vector<8x8x32xf32>
    %71 = tpu.matmul %70, %50, %cst_22 {dimension_numbers = #tpu.dot_dimension_numbers<[2], [1], [1], [2], [0, 0, 0, 1, 1, 2], [0], [0]>} : vector<8x8x8xbf16>, vector<8x8x32xbf16>, vector<8x8x32xf32> -> vector<8x8x32xf32>
    "tpu.trace_stop"() : () -> ()
    %72 = vector.shape_cast %71 : vector<8x8x32xf32> to vector<2x4x8x32xf32>
    %73 = tpu.transpose %72, [0, 2, 1, 3] : vector<2x4x8x32xf32> -> vector<2x8x4x32xf32>
    %74 = vector.shape_cast %73 : vector<2x8x4x32xf32> to vector<16x128xf32>
    %75 = arith.truncf %74 : vector<16x128xf32> to vector<16x128xbf16>
    %c0_23 = arith.constant 0 : index
    %c0_24 = arith.constant 0 : index
    %c0_25 = arith.constant 0 : index
    %76 = vector.load %arg3[%c0_23, %c0_24, %c0_25] : memref<1x128x128xbf16, #tpu.memory_space<vmem>>, vector<1x128x128xbf16>
    %77 = vector.shape_cast %76 : vector<1x128x128xbf16> to vector<128x128xbf16>
    %cst_26 = arith.constant dense<0.000000e+00> : vector<16x128xf32>
    %78 = tpu.matmul %75, %77, %cst_26 {dimension_numbers = #tpu.dot_dimension_numbers<[1], [0], [0], [1], [0, 0, 1, 1], [], []>} : vector<16x128xbf16>, vector<128x128xbf16>, vector<16x128xf32> -> vector<16x128xf32>
    %c0_27 = arith.constant 0 : index
    %c0_28 = arith.constant 0 : index
    %c0_29 = arith.constant 0 : index
    %79 = vector.load %arg4[%c0_27, %c0_28, %c0_29] : memref<1x1x128xf32, #tpu.memory_space<vmem>>, vector<1x1x128xf32>
    %80 = vector.shape_cast %79 : vector<1x1x128xf32> to vector<128xf32>
    %81 = vector.shape_cast %80 : vector<128xf32> to vector<1x128xf32>
    %82 = vector.broadcast %81 : vector<1x128xf32> to vector<16x128xf32>
    %83 = arith.addf %78, %82 : vector<16x128xf32>
    %84 = arith.addf %3, %83 : vector<16x128xf32>
    %c0_30 = arith.constant 0 : index
    %c0_31 = arith.constant 0 : index
    %c0_32 = arith.constant 0 : index
    %85 = vector.load %arg7[%c0_30, %c0_31, %c0_32] : memref<1x1x128xf32, #tpu.memory_space<vmem>>, vector<1x1x128xf32>
    %86 = vector.shape_cast %85 : vector<1x1x128xf32> to vector<128xf32>
    %c0_33 = arith.constant 0 : index
    %c0_34 = arith.constant 0 : index
    %c0_35 = arith.constant 0 : index
    %87 = vector.load %arg8[%c0_33, %c0_34, %c0_35] : memref<1x1x128xf32, #tpu.memory_space<vmem>>, vector<1x1x128xf32>
    %88 = vector.shape_cast %87 : vector<1x1x128xf32> to vector<128xf32>
    %cst_36 = arith.constant dense<0.000000e+00> : vector<16xf32>
    %89 = vector.multi_reduction <add>, %84, %cst_36 [1] : vector<16x128xf32> to vector<16xf32>
    %90 = vector.shape_cast %89 : vector<16xf32> to vector<16x1xf32>
    %cst_37 = arith.constant 1.280000e+02 : f32
    %91 = vector.broadcast %cst_37 : f32 to vector<16x1xf32>
    %92 = arith.divf %90, %91 : vector<16x1xf32>
    %93 = vector.broadcast %92 : vector<16x1xf32> to vector<16x128xf32>
    %94 = arith.subf %84, %93 : vector<16x128xf32>
    %95 = arith.mulf %94, %94 : vector<16x128xf32>
    %cst_38 = arith.constant dense<0.000000e+00> : vector<16xf32>
    %96 = vector.multi_reduction <add>, %95, %cst_38 [1] : vector<16x128xf32> to vector<16xf32>
    %97 = vector.shape_cast %96 : vector<16xf32> to vector<16x1xf32>
    %cst_39 = arith.constant 1.270000e+02 : f32
    %98 = vector.broadcast %cst_39 : f32 to vector<16x1xf32>
    %99 = arith.divf %97, %98 : vector<16x1xf32>
    %cst_40 = arith.constant 9.99999974E-6 : f32
    %100 = vector.broadcast %cst_40 : f32 to vector<16x1xf32>
    %101 = arith.addf %99, %100 : vector<16x1xf32>
    %102 = math.rsqrt %101 : vector<16x1xf32>
    %103 = vector.broadcast %102 : vector<16x1xf32> to vector<16x128xf32>
    %104 = arith.mulf %94, %103 : vector<16x128xf32>
    %105 = vector.shape_cast %86 : vector<128xf32> to vector<1x128xf32>
    %106 = vector.broadcast %105 : vector<1x128xf32> to vector<16x128xf32>
    %107 = arith.mulf %106, %104 : vector<16x128xf32>
    %108 = vector.shape_cast %88 : vector<128xf32> to vector<1x128xf32>
    %109 = vector.broadcast %108 : vector<1x128xf32> to vector<16x128xf32>
    %110 = arith.addf %107, %109 : vector<16x128xf32>
    %111 = arith.truncf %110 : vector<16x128xf32> to vector<16x128xbf16>
    %c0_41 = arith.constant 0 : index
    %c0_42 = arith.constant 0 : index
    %c0_43 = arith.constant 0 : index
    %112 = vector.load %arg9[%c0_41, %c0_42, %c0_43] : memref<1x128x512xbf16, #tpu.memory_space<vmem>>, vector<1x128x512xbf16>
    %113 = vector.shape_cast %112 : vector<1x128x512xbf16> to vector<128x512xbf16>
    %cst_44 = arith.constant dense<0.000000e+00> : vector<16x512xf32>
    %114 = tpu.matmul %111, %113, %cst_44 {dimension_numbers = #tpu.dot_dimension_numbers<[1], [0], [0], [1], [0, 0, 1, 1], [], []>} : vector<16x128xbf16>, vector<128x512xbf16>, vector<16x512xf32> -> vector<16x512xf32>
    %c0_45 = arith.constant 0 : index
    %c0_46 = arith.constant 0 : index
    %c0_47 = arith.constant 0 : index
    %115 = vector.load %arg10[%c0_45, %c0_46, %c0_47] : memref<1x1x512xf32, #tpu.memory_space<vmem>>, vector<1x1x512xf32>
    %116 = vector.shape_cast %115 : vector<1x1x512xf32> to vector<512xf32>
    %117 = vector.shape_cast %116 : vector<512xf32> to vector<1x512xf32>
    %118 = vector.broadcast %117 : vector<1x512xf32> to vector<16x512xf32>
    %119 = arith.addf %114, %118 : vector<16x512xf32>
    %cst_48 = arith.constant 5.000000e-01 : f32
    %120 = vector.broadcast %cst_48 : f32 to vector<16x512xf32>
    %121 = arith.mulf %120, %119 : vector<16x512xf32>
    %cst_49 = arith.constant 4.471500e-02 : f32
    %122 = vector.broadcast %cst_49 : f32 to vector<16x512xf32>
    %123 = arith.mulf %122, %119 : vector<16x512xf32>
    %124 = arith.mulf %123, %119 : vector<16x512xf32>
    %125 = arith.mulf %124, %119 : vector<16x512xf32>
    %126 = arith.addf %119, %125 : vector<16x512xf32>
    %cst_50 = arith.constant 0.797884583 : f32
    %127 = vector.broadcast %cst_50 : f32 to vector<16x512xf32>
    %128 = arith.mulf %127, %126 : vector<16x512xf32>
    %129 = math.tanh %128 : vector<16x512xf32>
    %cst_51 = arith.constant 1.000000e+00 : f32
    %130 = vector.broadcast %cst_51 : f32 to vector<16x512xf32>
    %131 = arith.addf %130, %129 : vector<16x512xf32>
    %132 = arith.mulf %121, %131 : vector<16x512xf32>
    %133 = arith.truncf %132 : vector<16x512xf32> to vector<16x512xbf16>
    %c0_52 = arith.constant 0 : index
    %c0_53 = arith.constant 0 : index
    %c0_54 = arith.constant 0 : index
    %134 = vector.load %arg11[%c0_52, %c0_53, %c0_54] : memref<1x512x128xbf16, #tpu.memory_space<vmem>>, vector<1x512x128xbf16>
    %135 = vector.shape_cast %134 : vector<1x512x128xbf16> to vector<512x128xbf16>
    %cst_55 = arith.constant dense<0.000000e+00> : vector<16x128xf32>
    %136 = tpu.matmul %133, %135, %cst_55 {dimension_numbers = #tpu.dot_dimension_numbers<[1], [0], [0], [1], [0, 0, 1, 1], [], []>} : vector<16x512xbf16>, vector<512x128xbf16>, vector<16x128xf32> -> vector<16x128xf32>
    %c0_56 = arith.constant 0 : index
    %c0_57 = arith.constant 0 : index
    %c0_58 = arith.constant 0 : index
    %137 = vector.load %arg12[%c0_56, %c0_57, %c0_58] : memref<1x1x128xf32, #tpu.memory_space<vmem>>, vector<1x1x128xf32>
    %138 = vector.shape_cast %137 : vector<1x1x128xf32> to vector<128xf32>
    %139 = vector.shape_cast %138 : vector<128xf32> to vector<1x128xf32>
    %140 = vector.broadcast %139 : vector<1x128xf32> to vector<16x128xf32>
    %141 = arith.addf %136, %140 : vector<16x128xf32>
    %142 = arith.addf %84, %141 : vector<16x128xf32>
    %c1_i32 = arith.constant 1 : i32
    %143 = arith.cmpi eq, %arg0, %c1_i32 : i32
    %144 = arith.extui %143 : i1 to i32
    %c0_i32_59 = arith.constant 0 : i32
    %145 = arith.cmpi ne, %144, %c0_i32_59 : i32
    scf.if %145 {
      %c0_62 = arith.constant 0 : index
      %c0_63 = arith.constant 0 : index
      %149 = vector.load %arg13[%c0_62, %c0_63] : memref<1x128xf32, #tpu.memory_space<vmem>>, vector<1x128xf32>
      %150 = vector.shape_cast %149 : vector<1x128xf32> to vector<128xf32>
      %c0_64 = arith.constant 0 : index
      %c0_65 = arith.constant 0 : index
      %151 = vector.load %arg14[%c0_64, %c0_65] : memref<1x128xf32, #tpu.memory_space<vmem>>, vector<1x128xf32>
      %152 = vector.shape_cast %151 : vector<1x128xf32> to vector<128xf32>
      %cst_66 = arith.constant dense<0.000000e+00> : vector<16xf32>
      %153 = vector.multi_reduction <add>, %142, %cst_66 [1] : vector<16x128xf32> to vector<16xf32>
      %154 = vector.shape_cast %153 : vector<16xf32> to vector<16x1xf32>
      %cst_67 = arith.constant 1.280000e+02 : f32
      %155 = vector.broadcast %cst_67 : f32 to vector<16x1xf32>
      %156 = arith.divf %154, %155 : vector<16x1xf32>
      %157 = vector.broadcast %156 : vector<16x1xf32> to vector<16x128xf32>
      %158 = arith.subf %142, %157 : vector<16x128xf32>
      %159 = arith.mulf %158, %158 : vector<16x128xf32>
      %cst_68 = arith.constant dense<0.000000e+00> : vector<16xf32>
      %160 = vector.multi_reduction <add>, %159, %cst_68 [1] : vector<16x128xf32> to vector<16xf32>
      %161 = vector.shape_cast %160 : vector<16xf32> to vector<16x1xf32>
      %cst_69 = arith.constant 1.270000e+02 : f32
      %162 = vector.broadcast %cst_69 : f32 to vector<16x1xf32>
      %163 = arith.divf %161, %162 : vector<16x1xf32>
      %cst_70 = arith.constant 9.99999974E-6 : f32
      %164 = vector.broadcast %cst_70 : f32 to vector<16x1xf32>
      %165 = arith.addf %163, %164 : vector<16x1xf32>
      %166 = math.rsqrt %165 : vector<16x1xf32>
      %167 = vector.broadcast %166 : vector<16x1xf32> to vector<16x128xf32>
      %168 = arith.mulf %158, %167 : vector<16x128xf32>
      %169 = vector.shape_cast %150 : vector<128xf32> to vector<1x128xf32>
      %170 = vector.broadcast %169 : vector<1x128xf32> to vector<16x128xf32>
      %171 = arith.mulf %170, %168 : vector<16x128xf32>
      %172 = vector.shape_cast %152 : vector<128xf32> to vector<1x128xf32>
      %173 = vector.broadcast %172 : vector<1x128xf32> to vector<16x128xf32>
      %174 = arith.addf %171, %173 : vector<16x128xf32>
      %c0_71 = arith.constant 0 : index
      %c0_72 = arith.constant 0 : index
      %175 = vector.load %arg15[%c0_71, %c0_72] : memref<16x128xf32, #tpu.memory_space<vmem>>, vector<16x128xf32>
      tpu.vector_store %arg15[%c0_71, %c0_72], %174 {strides = array<i32>} : memref<16x128xf32, #tpu.memory_space<vmem>>, vector<16x128xf32>,
    } else {
    }
    %c1_i32_60 = arith.constant 1 : i32
    %146 = arith.cmpi slt, %arg0, %c1_i32_60 : i32
    %147 = arith.extui %146 : i1 to i32
    %c0_i32_61 = arith.constant 0 : i32
    %148 = arith.cmpi ne, %147, %c0_i32_61 : i32
    scf.if %148 {
      %c0_62 = arith.constant 0 : index
      %c0_63 = arith.constant 0 : index
      %149 = vector.load %arg15[%c0_62, %c0_63] : memref<16x128xf32, #tpu.memory_space<vmem>>, vector<16x128xf32>
      tpu.vector_store %arg15[%c0_62, %c0_63], %142 {strides = array<i32>} : memref<16x128xf32, #tpu.memory_space<vmem>>, vector<16x128xf32>,
    } else {
    }
    return
  }
  func.func @transform_0(%arg0: i32) -> (i32, i32) {
    %c0_i32 = arith.constant 0 : i32
    %c0_i32_0 = arith.constant 0 : i32
    %c0_i32_1 = arith.constant 0 : i32
    return %c0_i32, %c0_i32_0 : i32, i32
  }
  func.func @transform_1(%arg0: i32) -> (i32, i32, i32) {
    %c0_i32 = arith.constant 0 : i32
    %c0_i32_0 = arith.constant 0 : i32
    %c0_i32_1 = arith.constant 0 : i32
    return %arg0, %c0_i32, %c0_i32_0 : i32, i32, i32
  }
  func.func @transform_2(%arg0: i32) -> (i32, i32, i32) {
    %c0_i32 = arith.constant 0 : i32
    %c0_i32_0 = arith.constant 0 : i32
    %c0_i32_1 = arith.constant 0 : i32
    return %arg0, %c0_i32, %c0_i32_0 : i32, i32, i32
  }
  func.func @transform_3(%arg0: i32) -> (i32, i32, i32) {
    %c0_i32 = arith.constant 0 : i32
    %c0_i32_0 = arith.constant 0 : i32
    %c0_i32_1 = arith.constant 0 : i32
    return %arg0, %c0_i32, %c0_i32_0 : i32, i32, i32
  }
  func.func @transform_4(%arg0: i32) -> (i32, i32, i32) {
    %c0_i32 = arith.constant 0 : i32
    %c0_i32_0 = arith.constant 0 : i32
    %c0_i32_1 = arith.constant 0 : i32
    return %arg0, %c0_i32, %c0_i32_0 : i32, i32, i32
  }
  func.func @transform_5(%arg0: i32) -> (i32, i32, i32) {
    %c0_i32 = arith.constant 0 : i32
    %c0_i32_0 = arith.constant 0 : i32
    %c0_i32_1 = arith.constant 0 : i32
    return %arg0, %c0_i32, %c0_i32_0 : i32, i32, i32
  }
  func.func @transform_6(%arg0: i32) -> (i32, i32, i32) {
    %c0_i32 = arith.constant 0 : i32
    %c0_i32_0 = arith.constant 0 : i32
    %c0_i32_1 = arith.constant 0 : i32
    return %arg0, %c0_i32, %c0_i32_0 : i32, i32, i32
  }
  func.func @transform_7(%arg0: i32) -> (i32, i32, i32) {
    %c0_i32 = arith.constant 0 : i32
    %c0_i32_0 = arith.constant 0 : i32
    %c0_i32_1 = arith.constant 0 : i32
    return %arg0, %c0_i32, %c0_i32_0 : i32, i32, i32
  }
  func.func @transform_8(%arg0: i32) -> (i32, i32, i32) {
    %c0_i32 = arith.constant 0 : i32
    %c0_i32_0 = arith.constant 0 : i32
    %c0_i32_1 = arith.constant 0 : i32
    return %arg0, %c0_i32, %c0_i32_0 : i32, i32, i32
  }
  func.func @transform_9(%arg0: i32) -> (i32, i32, i32) {
    %c0_i32 = arith.constant 0 : i32
    %c0_i32_0 = arith.constant 0 : i32
    %c0_i32_1 = arith.constant 0 : i32
    return %arg0, %c0_i32, %c0_i32_0 : i32, i32, i32
  }
  func.func @transform_10(%arg0: i32) -> (i32, i32, i32) {
    %c0_i32 = arith.constant 0 : i32
    %c0_i32_0 = arith.constant 0 : i32
    %c0_i32_1 = arith.constant 0 : i32
    return %arg0, %c0_i32, %c0_i32_0 : i32, i32, i32
  }
  func.func @transform_11(%arg0: i32) -> (i32, i32, i32) {
    %c0_i32 = arith.constant 0 : i32
    %c0_i32_0 = arith.constant 0 : i32
    %c0_i32_1 = arith.constant 0 : i32
    return %arg0, %c0_i32, %c0_i32_0 : i32, i32, i32
  }
  func.func @transform_12(%arg0: i32) -> (i32, i32) {
    %c0_i32 = arith.constant 0 : i32
    %c0_i32_0 = arith.constant 0 : i32
    %c0_i32_1 = arith.constant 0 : i32
    return %c0_i32, %c0_i32_0 : i32, i32
  }
  func.func @transform_13(%arg0: i32) -> (i32, i32) {
    %c0_i32 = arith.constant 0 : i32
    %c0_i32_0 = arith.constant 0 : i32
    %c0_i32_1 = arith.constant 0 : i32
    return %c0_i32, %c0_i32_0 : i32, i32
  }
  func.func @transform_14(%arg0: i32) -> (i32, i32) {
    %c0_i32 = arith.constant 0 : i32
    %c0_i32_0 = arith.constant 0 : i32
    %c0_i32_1 = arith.constant 0 : i32
    return %c0_i32, %c0_i32_0 : i32, i32
  }
}

</mosaic_0001>

<bundles_post_ra>
// kernel: gpt_forward.3
= control target key start
LH: loop header
LB: loop body
LE: loop exit
PB: predicated region body
PF: predicated region fallthrough
CT: control target
= control target key end

     0   :  { %7 = vsyncpa [#allocation4], 0  ;;  %s374_s0 = inlined_call_operand.vmem [shape: f32[16,128], index: 0, kind: input, shape index: {}]   ;;  %s375_s1 = inlined_call_operand.hbm [shape: bf16[128,256], index: 1, kind: input, shape index: {}]   ;;  %s376_s2 = inlined_call_operand.hbm [shape: f32[16,256], index: 2, kind: output, shape index: {}]  }
   0x1   :  { %8 = vsyncpa [#allocation5], 0  ;;  %s15_s11 = sshll.u32 %s375_s1, 4  ;;  %s341_s12 = smov [#allocation3]   ;;  %s16_s11 = int_to_ptr.hbm [resolvable:$true] %s15_s11 }
   0x2   :  { %s17_s13 = sshll.u32 %s341_s12, 4  ;;  %s342_s14 = smov 128   ;;  %s18_s13 = int_to_ptr.vmem [resolvable:$true] %s17_s13 }
   0x3   :  { %s343_s15 = smov 8  }
   0x4   :  { %23 = dma.hbm_to_vmem [thread:$0]  %s16_s11, 2048, %s18_s13, [#allocation4], %s342_s14, %s342_s14, %s343_s15  }
   0x5   :  { %337 = dma.done.wait [#allocation4], 2048  }
   0x6   :  { %338 = vsyncadd [#allocation4], 4294965248  ;;  %v255_v0 = vld [vmem:[#allocation3 + $0x70] sm:$0xf]  ;;  %v277_v1 = vld [vmem:[#allocation3 + $0x74] sm:$0xf0] }
   0x7   :  { %v276_v2 = vld [vmem:[#allocation3 + $0x74] sm:$0xf]  ;;  %v256_v3 = vor.u32 %v277_v1, %v255_v0  ;;  %v257_v4 = vld [vmem:[#allocation3 + $0x78] sm:$0xf0]  ;;  %v247_v5 = vld [vmem:[#allocation3 + $0x60] sm:$0xf] }
   0x8   :  { %v275_v6 = vld [vmem:[#allocation3 + $0x64] sm:$0xf0]  ;;  %v260_v7 = vor.u32 %v276_v2, %v257_v4  ;;  %v274_v8 = vld [vmem:[#allocation3 + $0x64] sm:$0xf]  ;;  %v249_v9 = vld [vmem:[#allocation3 + $0x68] sm:$0xf0] }
   0x9   :  { %142 = vmatpush.bf16.msra.mxu0 %v256_v3  ;;  %v248_v10 = vor.u32 %v275_v6, %v247_v5  ;;  %v252_v11 = vor.u32 %v274_v8, %v249_v9  ;;  %v239_v12 = vld [vmem:[#allocation3 + $0x50] sm:$0xf]  ;;  %v273_v13 = vld [vmem:[#allocation3 + $0x54] sm:$0xf0]  ;;  %v272_v14 = vld [vmem:[#allocation3 + $0x54] sm:$0xf] }
   0xa   :  { %156 = vmatpush.bf16.msra.mxu1 %v260_v7  ;;  %v241_v15 = vld [vmem:[#allocation3 + $0x58] sm:$0xf0]  ;;  %v240_v16 = vor.u32 %v273_v13, %v239_v12  ;;  %v231_v18 = vld [vmem:[#allocation3 + $0x40] sm:$0xf]  ;;  %v271_v19 = vld [vmem:[#allocation3 + $0x44] sm:$0xf0] }
   0xb   :  { %v244_v17 = vor.u32 %v272_v14, %v241_v15  ;;  %v270_v20 = vld [vmem:[#allocation3 + $0x44] sm:$0xf]  ;;  %v233_v21 = vld [vmem:[#allocation3 + $0x48] sm:$0xf0]  ;;  %v32_v22 = vld [vmem:[%s374_s0] sm:$0xff]  ;;  %v232_v23 = vor.u32 %v271_v19, %v231_v18  ;;  %s180_s22 = sshll.u32 %s376_s2, 4  ;;  %s181_s22 = int_to_ptr.hbm [resolvable:$true] %s180_s22 }
   0xc   :  { %v33_v24 = vld [vmem:[%s374_s0 + $0x8] sm:$0xff]  ;;  %v236_v25 = vor.u32 %v270_v20, %v233_v21  ;;  %v223_v26 = vld [vmem:[#allocation3 + $0x30] sm:$0xf]  ;;  %v269_v27 = vld [vmem:[#allocation3 + $0x34] sm:$0xf0]  ;;  %s344_s0 = smov [#allocation6]  }
   0xd   :  { %143 = vmatpush.bf16.msra.mxu0 %v248_v10  ;;  %v281_v28 = vpack.c.bf16 %v33_v24, %v32_v22  ;;  %v268_v29 = vld [vmem:[#allocation3 + $0x34] sm:$0xf]  ;;  %v225_v30 = vld [vmem:[#allocation3 + $0x38] sm:$0xf0]  ;;  %v224_v31 = vor.u32 %v269_v27, %v223_v26  ;;  %v215_v33 = vld [vmem:[#allocation3 + $0x20] sm:$0xf] }
   0xe   :  { %157 = vmatpush.bf16.msra.mxu1 %v252_v11  ;;  %v228_v32 = vor.u32 %v268_v29, %v225_v30  ;;  %v267_v34 = vld [vmem:[#allocation3 + $0x24] sm:$0xf0]  ;;  %v266_v35 = vld [vmem:[#allocation3 + $0x24] sm:$0xf]  ;;  %v217_v36 = vld [vmem:[#allocation3 + $0x28] sm:$0xf0] }
   0xf   :  { %282 = vst [vmem:[#allocation2] sm:$0xff] %v281_v28   ;;  %v216_v37 = vor.u32 %v267_v34, %v215_v33  ;;  %v220_v38 = vor.u32 %v266_v35, %v217_v36  ;;  %v207_v39 = vld [vmem:[#allocation3 + $0x10] sm:$0xf]  ;;  %v265_v40 = vld [vmem:[#allocation3 + $0x14] sm:$0xf0]  ;;  %s178_s19 = sshll.u32 %s344_s0, 4  ;;  %s179_s19 = int_to_ptr.vmem [resolvable:$true] %s178_s19 }
  0x10   :  { %v264_v41 = vld [vmem:[#allocation3 + $0x14] sm:$0xf]  ;;  %v209_v42 = vld [vmem:[#allocation3 + $0x18] sm:$0xf0]  ;;  %v208_v43 = vor.u32 %v265_v40, %v207_v39  ;;  %v199_v45 = vld [vmem:[#allocation3] sm:$0xf] }
  0x11   :  { %144 = vmatpush.bf16.msra.mxu0 %v240_v16  ;;  %v212_v44 = vor.u32 %v264_v41, %v209_v42  ;;  %v263_v46 = vld [vmem:[#allocation3 + $0x4] sm:$0xf0]  ;;  %v262_v47 = vld [vmem:[#allocation3 + $0x4] sm:$0xf]  ;;  %v201_v48 = vld [vmem:[#allocation3 + $0x8] sm:$0xf0] }
  0x12   :  { %158 = vmatpush.bf16.msra.mxu1 %v244_v17  ;;  %v200_v49 = vor.u32 %v263_v46, %v199_v45  ;;  %v204_v50 = vor.u32 %v262_v47, %v201_v48  ;;  %s345_s23 = smov 256   ;;  %s346_s24 = smov 16  }
  0x15   :  { %145 = vmatpush.bf16.msra.mxu0 %v232_v23 }
  0x16   :  { %159 = vmatpush.bf16.msra.mxu1 %v236_v25  ;;  %v261_v51 = vld [vmem:[#allocation2] sm:$0xff] }
  0x19   :  { %146 = vmatpush.bf16.msra.mxu0 %v224_v31 }
  0x1a   :  { %160 = vmatpush.bf16.msra.mxu1 %v228_v32 }
  0x1d   :  { %147 = vmatpush.bf16.msra.mxu0 %v216_v37 }
  0x1e   :  { %161 = vmatpush.bf16.msra.mxu1 %v220_v38 }
  0x21   :  { %148 = vmatpush.bf16.msra.mxu0 %v208_v43 }
  0x22   :  { %162 = vmatpush.bf16.msra.mxu1 %v212_v44 }
  0x25   :  { %149 = vmatpush.bf16.msra.mxu0 %v200_v49 }
  0x26   :  { %163 = vmatpush.bf16.msra.mxu1 %v204_v50 }
  0x28   :  { %150 = vmatmul.bf16.vlgmr.msra.gmra.mxu0 %v261_v51 }
  0x29   :  { %164 = vmatmul.bf16.vlgmr.msra.gmra.mxu1 %v261_v51 }
  0xa5   :  { %v151_v52 = vpop.f32.mrf.mxu0 }
  0xa6   :  { %170 = vst [vmem:[#allocation6] sm:$0xff] %v151_v52  ;;  %v165_v53 = vpop.f32.mrf.mxu1 }
  0xa7   :  { %171 = vst [vmem:[#allocation6 + $0x8] sm:$0xff] %v165_v53 }
  0xad   :  { %v153_v54 = vpop.f32.mrf.mxu0 }
  0xae   :  { %172 = vst [vmem:[#allocation6 + $0x10] sm:$0xff] %v153_v54  ;;  %v167_v55 = vpop.f32.mrf.mxu1 }
  0xaf   :  { %173 = vst [vmem:[#allocation6 + $0x18] sm:$0xff] %v167_v55 }
  0xb0   :  { %186 = dma.vmem_to_hbm [thread:$0]  %s179_s19, 512, %s181_s22, [#allocation5], %s345_s23, %s345_s23, %s346_s24  }
  0xb1   :  { %339 = dma.done.wait [#allocation5], 512  }
  0xb2   :  { %340 = vsyncadd [#allocation5], 4294966784 }
  0xb3   :  { %191 = vsyncpa [#allocation4], 1 }
  0xb4   :  { %192 = vsyncpa [#allocation5], 1 }

// kernel: gpt_forward.2
= control target key start
LH: loop header
LB: loop body
LE: loop exit
PB: predicated region body
PF: predicated region fallthrough
CT: control target
= control target key end

     0   :  { %s5477_s0 = inlined_call_operand.vmem [shape: f32[16,128], index: 0, kind: input, shape index: {}, may-alias: {0,14}]   ;;  %s5478_s1 = inlined_call_operand.hbm [shape: bf16[2,128,384], index: 1, kind: input, shape index: {}]   ;;  %s5479_s2 = inlined_call_operand.vmem [shape: bf16[2,128,128], index: 2, kind: input, shape index: {}]   ;;  %s5480_s3 = inlined_call_operand.vmem [shape: f32[2,1,128], index: 3, kind: input, shape index: {}]   ;;  %s5481_s4 = inlined_call_operand.vmem [shape: f32[2,1,128], index: 4, kind: input, shape index: {}]   ;;  %s5482_s5 = inlined_call_operand.vmem [shape: f32[2,1,128], index: 5, kind: input, shape index: {}]   ;;  %s5483_s6 = inlined_call_operand.vmem [shape: f32[2,1,128], index: 6, kind: input, shape index: {}]   ;;  %s5484_s7 = inlined_call_operand.vmem [shape: f32[2,1,128], index: 7, kind: input, shape index: {}]   ;;  %s5485_s8 = inlined_call_operand.hbm [shape: bf16[2,128,512], index: 8, kind: input, shape index: {}]   ;;  %s5486_s9 = inlined_call_operand.vmem [shape: f32[2,1,512], index: 9, kind: input, shape index: {}]   ;;  %s5487_s10 = inlined_call_operand.hbm [shape: bf16[2,512,128], index: 10, kind: input, shape index: {}]   ;;  %s5488_s11 = inlined_call_operand.vmem [shape: f32[2,1,128], index: 11, kind: input, shape index: {}]   ;;  %s5489_s12 = inlined_call_operand.vmem [shape: f32[1,128], index: 12, kind: input, shape index: {}]   ;;  %s5490_s13 = inlined_call_operand.vmem [shape: f32[1,128], index: 13, kind: input, shape index: {}]   ;;  %s5491_s14 = inlined_call_operand.vmem [shape: f32[16,128], index: 14, kind: output, shape index: {}, may-alias: {0,14}]  }
   0x1   :  { %5501 = sst [smem:[#allocation12_spill]] %s5477_s0 }
   0x2   :  { %5502 = sst [smem:[#allocation13_spill]] %s5478_s1 }
   0x3   :  { %5503 = sst [smem:[#allocation14_spill]] %s5479_s2 }
   0x4   :  { %5504 = sst [smem:[#allocation15_spill]] %s5485_s8 }
   0x5   :  { %5505 = sst [smem:[#allocation16_spill]] %s5486_s9 }
   0x6   :  { %5506 = sst [smem:[#allocation17_spill]] %s5488_s11 }
   0x7   :  { %5507 = sst [smem:[#allocation18_spill]] %s5489_s12 }
   0x8   :  { %5508 = sst [smem:[#allocation19_spill]] %s5490_s13 }
   0x9   :  { %5509 = sst [smem:[#allocation20_spill]] %s5491_s14 }
   0xa   :  { %19 = vsyncpa [#allocation3], 0 }
   0xb   :  { %21 = vsyncpa [#allocation3 + $0x1], 0 }
   0xc   :  { %22 = vsyncpa [#allocation5], 0 }
   0xd   :  { %24 = vsyncpa [#allocation5 + $0x1], 0  ;;  %s4382_s29 = smov 0   ;;  %s4384_s30 = smov 0  }
   0xe   :  { %s4386_s15 = smov 0   ;;  %s4388_s16 = smov 0  }
   0xf LB: > { %5510 = sst [smem:[#allocation9_spill]] %s4287_s15  ;;  %s4401_s17 = sadd.s32 4294967295, %s4291_s16   ;;  %s4291_s16 = sphi %s4388_s16, %s5534_s16   ;;  %s4287_s15 = sphi %s4386_s15, %s5539_s15   ;;  %s4283_s30 = sphi %s4384_s30, %s5538_s30   ;;  %s4279_s29 = sphi %s4382_s29, %s5537_s29  }
  0x10   : > { %s4404_s18 = sadd.s32 1, %s4291_s16   ;;  %s58_s20 = sadd.s32 1, %s4287_s15 }
  0x11   : > { %5511 = sst [smem:[#allocation10_spill]] %s4404_s18  ;;  %s55_s19 = ssub.s32 %s4291_s16, %s4404_s18 }
  0x12   : > { %p56_p0 = scmp.eq.s32.totalorder %s55_s19, 0  ;;  %p65_p1 = scmp.ne.s32.totalorder %s4287_s15, %s4283_s30 }
  0x13   : > { %p66_p2 = scmp.eq.s32.totalorder %s4291_s16, 0  ;;  %p71_p3 = scmp.ne.s32.totalorder %s4283_s30, %s4279_s29 }
  0x14   : > { %s4414_s21 = scalar_select %p56_p0, %s4287_s15, %s58_s20  }
  0x15   : > { %p67_p4 = por %p66_p2, %p65_p1  ;;  %p72_p5 = scmp.eq.s32.totalorder %s4401_s17, 0 }
  0x16   : > { %5512 = sst [smem:[#allocation11_spill]] %s4414_s21  ;;  %p4022_p6 = scmp.lt.s32.totalorder %s4291_s16, 2 }
  0x17   : > { %p4418_p7 = por %p72_p5, %p71_p3  ;;  %s4423_s23 = sand.u32 1, %s4287_s15  }
  0x18   : > { %p4425_p8 = pnand %p4022_p6, %p67_p4  ;;  %s487_s25 = sand.u32 1, %s4291_s16  }
  0x19   : > { %s5495_s26 = sshll.u32 %s4423_s23, 8  ;;  %s3904_s27 = sshll.u32 %s4291_s16, 8 }
  0x1a   : > { %s491_s28 = scalar_lea.vmem [#allocation4], %s5495_s26  ;;  %s5515_s8 = sld [smem:[#allocation15_spill]] }
  0x1b   : > { %s499_s29 = sshll.u32 %s491_s28, 4  ;;  %s4437_s18 = scalar_lea.sflag [#allocation5], %s487_s25  ;;  %s500_s29 = int_to_ptr.vmem [resolvable:$true] %s499_s29 }
  0x1c   : > { %p4167_p10 = pneg %p4425_p8 }
  0x20   : > { %s496_s21 = scalar_lea.hbm %s5515_s8, %s3904_s27  ;;  %s4170_s19 = scalar_lea.hbm %s5515_s8, 512 }
  0x21   : > { %s497_s15 = sshll.u32 %s496_s21, 4  ;;  %s498_s15 = int_to_ptr.hbm [resolvable:$true] %s497_s15 }
  0x22   : > { %s4163_s13 = sshra.s32 %s498_s15, 4  ;;  %s4164_s13 = int_to_ptr.hbm [resolvable:$true] %s4163_s13 }
  0x23   : > { %s4165_s12 = scalar_lea.hbm %s4164_s13, 256  ;;  %p4171_p13 = scmp.lt.s32.totalorder %s4164_s13, %s5515_s8 }
  0x24   : > { %p4166_p9 = scmp.ne.s32.totalorder %s4164_s13, %s4165_s12  ;;  %p4172_p0 = scmp.lt.s32.totalorder %s4170_s19, %s4165_s12 }
  0x26   : > { %p4168_p11 = pnand %p4167_p10, %p4166_p9  ;;  %p4173_p1 = por %p4172_p0, %p4171_p13 }
  0x28   : > { %p4169_p12 = pneg %p4168_p11 }
  0x2a   : > { %p4174_p2 = pnand %p4173_p1, %p4169_p12 }
  0x2c   : > { %4177 = shalt.err (!%p4174_p2)
}
  0x2d   : > { %s4293_s21 = smov 256   ;;  %s4294_s25 = smov 16  }
  0x2e   : > { %4018 = dma.hbm_to_vmem [thread:$0]  (!%p4425_p8), %s498_s15, 4096, %s500_s29, %s4437_s18, %s4293_s21, %s4293_s21, %s4294_s25  }
  0x2f   : > { %s525_s14 = scalar_lea.hbm %s5487_s10, %s3904_s27  ;;  %s5516_s12 = sshll.u32 %s4423_s23, 8 }
  0x30   : > { %s526_s13 = sshll.u32 %s525_s14, 4  ;;  %s520_s19 = scalar_lea.vmem [#allocation6], %s5516_s12  ;;  %s4458_s13 = int_to_ptr.hbm [resolvable:$true] %s526_s13 }
  0x31   : > { %s528_s20 = sshll.u32 %s520_s19, 4  ;;  %p3493_p3 = scmp.ge.s32.totalorder %s4291_s16, 1  ;;  %s4460_s20 = int_to_ptr.vmem [resolvable:$true] %s528_s20 }
  0x32   : > { %p542_p4 = scmp.lt.s32.totalorder %s4291_s16, 3  ;;  %s4003_s8 = smul.u32 192, %s4423_s23 }
  0x33   : > { %s4004_s15 = smul.u32 192, %s4291_s16  ;;  %s5518_s1 = sld [smem:[#allocation13_spill]] }
  0x34   : > { %p4465_p5 = pnand %p3493_p3, %p542_p4  ;;  %s431_s25 = scalar_lea.vmem [#allocation2], %s4003_s8 }
  0x35   : > { %s439_s26 = sshll.u32 %s431_s25, 4  ;;  %s428_s14 = scalar_lea.sflag [#allocation3], %s4423_s23  ;;  %s440_s26 = int_to_ptr.vmem [resolvable:$true] %s439_s26 }
  0x39   : > { %s436_s21 = scalar_lea.hbm %s5518_s1, %s4004_s15  ;;  %s4200_s9 = scalar_lea.hbm %s5518_s1, 384 }
  0x3a   : > { %s437_s28 = sshll.u32 %s436_s21, 4  ;;  %s438_s28 = int_to_ptr.hbm [resolvable:$true] %s437_s28 }
  0x3b   : > { %s4193_s12 = sshra.s32 %s438_s28, 4  ;;  %s4194_s12 = int_to_ptr.hbm [resolvable:$true] %s4193_s12 }
  0x3c   : > { %s4195_s19 = scalar_lea.hbm %s4194_s12, 192  ;;  %p4201_p12 = scmp.lt.s32.totalorder %s4194_s12, %s5518_s1 }
  0x3d   : > { %p4196_p6 = scmp.ne.s32.totalorder %s4194_s12, %s4195_s19  ;;  %p4202_p13 = scmp.lt.s32.totalorder %s4200_s9, %s4195_s19 }
  0x3f   : > { %p4198_p9 = pnand %p4196_p6, %p4167_p10  ;;  %p4203_p0 = por %p4202_p13, %p4201_p12 }
  0x41   : > { %p4199_p11 = pneg %p4198_p9 }
  0x43   : > { %p4204_p1 = pnand %p4203_p0, %p4199_p11 }
  0x45   : > { %4207 = shalt.err (!%p4204_p1)
}
  0x46   : > { %s4295_s8 = smov 192   ;;  %s4296_s23 = smov 12  }
  0x47   : > { %4015 = dma.hbm_to_vmem [thread:$0]  (!%p4425_p8), %s438_s28, 3072, %s440_s26, %s428_s14, %s4295_s8, %s4295_s8, %s4296_s23  }
  0x48   : > { %s4223_s27 = sshra.s32 %s4458_s13, 4  ;;  %s4230_s25 = scalar_lea.hbm %s5487_s10, 512  ;;  %s4224_s27 = int_to_ptr.hbm [resolvable:$true] %s4223_s27 }
  0x49   : > { %s4225_s21 = scalar_lea.hbm %s4224_s27, 256  ;;  %p4231_p6 = scmp.lt.s32.totalorder %s4224_s27, %s5487_s10 }
  0x4a   : > { %p4226_p2 = scmp.ne.s32.totalorder %s4224_s27, %s4225_s21  ;;  %p4232_p9 = scmp.lt.s32.totalorder %s4230_s25, %s4225_s21 }
  0x4c   : > { %p4228_p3 = pnand %p4226_p2, %p4167_p10  ;;  %p4233_p11 = por %p4232_p9, %p4231_p6 }
  0x4e   : > { %p4229_p4 = pneg %p4228_p3 }
  0x50   : > { %p4234_p12 = pnand %p4233_p11, %p4229_p4 }
  0x52   : > { %4237 = shalt.err (!%p4234_p12)
}
  0x53   : > { %s4297_s26 = smov 64   ;;  %s4298_s28 = smov 4  }
  0x54   : > { %4021 = dma.hbm_to_vmem [thread:$0]  (!%p4425_p8), %s4458_s13, 4096, %s4460_s20, %s4437_s18, %s4297_s26, %s4297_s26, %s4298_s28  }
  0x55   : > { %546 = sbr.rel (%p4465_p5) target bundleno = 2461 (0x99d), region = 76  ;;  %s548_s14 = sand.u32 (!%p4465_p5), 1, %s4283_s30  }
  0x56   : > { %s4005_s16 = smul.u32 (!%p4465_p5), 192, %s548_s14  ;;  %s549_s29 = scalar_lea.sflag (!%p4465_p5), [#allocation3], %s548_s14 }
  0x58   : > { %s4503_s15 = scalar_lea.vmem (!%p4465_p5), [#allocation2], %s4005_s16 }
  0x5a   : > { %4270 = dma.done.wait (%p4418_p7), %s549_s29, 3072  }
  0x5b   : > { %4272 = vsyncadd (%p4418_p7), %s549_s29, 4294964224  ;;  %s558_s8 = sand.u32 1, %s4401_s17   ;;  %s3494_s24 = sshll.u32 %s548_s14, 8 }
  0x5c   : > { %s559_s18 = scalar_lea.sflag [#allocation5], %s558_s8  ;;  %s4510_s13 = scalar_lea.vmem [#allocation4], %s3494_s24 }
  0x5d   : > { %4274 = dma.done.wait (%p4418_p7), %s559_s18, 8192  }
  0x5e   : > { %4276 = vsyncadd (%p4418_p7), %s559_s18, 4294959104  ;;  %p650_p8 = scmp.lt.s32.totalorder %s4401_s17, 1  ;;  %s5519_s2 = sld [smem:[#allocation14_spill]] }
  0x5f   : > { %s5520_s11 = sld [smem:[#allocation16_spill]]  ;;  %s4556_s26 = scalar_lea.vmem [#allocation6], %s3494_s24 }
  0x60   : > { %s4518_s0 = scalar_select %p650_p8, %s4401_s17, 1 }
  0x61   : > { %s5521_s19 = sld [smem:[#allocation17_spill]]  ;;  %p3499_p7 = scmp.ne.s32.totalorder %s4401_s17, 0 }
  0x62   : > { %s3906_s20 = sshll.u32 %s4518_s0, 6  ;;  %s663_s14 = scalar_lea.vmem %s5482_s5, %s4518_s0 }
  0x63   : > { %s669_s27 = scalar_lea.vmem %s5484_s7, %s4518_s0  ;;  %s3498_s21 = sshll.u32 %s4518_s0, 2 }
  0x64   : > { %s4528_s9 = scalar_lea.vmem %s5519_s2, %s3906_s20  ;;  %681 = sbr.rel (%p3499_p7) target bundleno = 111 (0x6f), region = 92 }
  0x65   : > { %s4550_s1 = scalar_lea.vmem %s5520_s11, %s3498_s21  ;;  %s5522_s29 = sld [smem:[#allocation12_spill]] (!%p3499_p7) }
  0x66   : > { %s5524_s20 = sld [smem:[#allocation20_spill]] (!%p3499_p7) }
  0x67   : > { %s676_s2 = scalar_lea.vmem %s5521_s19, %s4518_s0 }
  0x6b   : > { %s5523_s8 = smov %s5522_s29  ;;  %v682_v0 = vld [vmem:[%s5522_s29] sm:$0xff] }
  0x6c   : > { %v683_v1 = vld [vmem:[%s5523_s8 + $0x8] sm:$0xff] }
  0x6d   : > { %684 = vst [vmem:[%s5524_s20] sm:$0xff] %v682_v0 }
  0x6e   : > { %685 = vst [vmem:[%s5524_s20 + $0x8] sm:$0xff] %v683_v1 }
  0x6f PF: > { %s5525_s12 = sld [smem:[#allocation20_spill]]  ;;  %v4299_v4 = vmov 128.0   ;;  %v4300_v19 = vmov 127.0   ;;  %v3586_v20 = vld [vmem:[%s4503_s15 + $0xa8] sm:$0xf]  ;;  %s5526_s18 = scalar_lea.vmem %s5481_s4, %s4518_s0  ;;  %vm980_vm8 = vcmask 1047556  }
  0x70   : > { %4095 = vrcp.f32 %v4299_v4  ;;  %v3929_v21 = vld [vmem:[%s4503_s15 + $0xb0] sm:$0xf0]  ;;  %v3928_v22 = vld [vmem:[%s4503_s15 + $0xac] sm:$0xf]  ;;  %v3588_v24 = vld [vmem:[%s4503_s15 + $0xb4] sm:$0xf0]  ;;  %s5527_s25 = scalar_lea.vmem %s5480_s3, %s4518_s0 }
  0x71   : > { %4097 = vrcp.f32 %v4300_v19  ;;  %v3587_v23 = vor.u32 %v3929_v21, %v3586_v20  ;;  %v3594_v25 = vld [vmem:[%s4503_s15 + $0xb0] sm:$0xf]  ;;  %v3930_v26 = vld [vmem:[%s4503_s15 + $0xb8] sm:$0xf0]  ;;  %v3591_v27 = vor.u32 %v3928_v22, %v3588_v24  ;;  %v3925_v32 = vld [vmem:[%s4503_s15 + $0x94] sm:$0xf] }
  0x72   : > { %v3595_v28 = vor.u32 %v3930_v26, %v3594_v25  ;;  %v3574_v30 = vld [vmem:[%s4503_s15 + $0x90] sm:$0xf]  ;;  %v3926_v31 = vld [vmem:[%s4503_s15 + $0x98] sm:$0xf0]  ;;  %v3576_v34 = vld [vmem:[%s4503_s15 + $0x9c] sm:$0xf0] }
  0x73   : > { %915 = vmatpush.bf16.msra.mxu0 %v3587_v23  ;;  %929 = vmatpush.bf16.msra.mxu1 %v3591_v27  ;;  %v3575_v33 = vor.u32 %v3926_v31, %v3574_v30  ;;  %v3582_v35 = vld [vmem:[%s4503_s15 + $0x98] sm:$0xf]  ;;  %v3927_v36 = vld [vmem:[%s4503_s15 + $0xa0] sm:$0xf0]  ;;  %v3579_v37 = vor.u32 %v3925_v32, %v3576_v34  ;;  %v3922_v42 = vld [vmem:[%s4503_s15 + $0x7c] sm:$0xf] }
  0x74   : > { %943 = vmatpush.bf16.msra.mxu2 %v3595_v28  ;;  %v3583_v38 = vor.u32 %v3927_v36, %v3582_v35  ;;  %v3562_v40 = vld [vmem:[%s4503_s15 + $0x78] sm:$0xf]  ;;  %v3923_v41 = vld [vmem:[%s4503_s15 + $0x80] sm:$0xf0]  ;;  %v3564_v44 = vld [vmem:[%s4503_s15 + $0x84] sm:$0xf0] }
  0x75   : > { %v686_v2 = vld [vmem:[%s5525_s12] sm:$0xff]  ;;  %v687_v3 = vld [vmem:[%s5525_s12 + $0x8] sm:$0xff]  ;;  %v3563_v43 = vor.u32 %v3923_v41, %v3562_v40  ;;  %v3567_v47 = vor.u32 %v3922_v42, %v3564_v44  ;;  %v3552_v54 = vld [vmem:[%s4503_s15 + $0x6c] sm:$0xf0]  ;;  %s4301_s21 = smov 32   ;;  %s4302_s20 = smov 96  }
  0x76   : > { %690 = vadd.xlane.f32.xlu0 %v686_v2  ;;  %v4096_v5 = vpop.eup %4095  ;;  %v3570_v45 = vld [vmem:[%s4503_s15 + $0x80] sm:$0xf]  ;;  %v3924_v46 = vld [vmem:[%s4503_s15 + $0x88] sm:$0xf0]  ;;  %v3919_v52 = vld [vmem:[%s4503_s15 + $0x64] sm:$0xf] }
  0x77   : > { %v695_v6 = vmul.f32 128.0, %v4096_v5  ;;  %vm699_vm0 = vweird.f32 %v4096_v5  ;;  %v4595_v29 = vpop.eup %4097  ;;  %916 = vmatpush.bf16.msra.mxu0 %v3575_v33  ;;  %930 = vmatpush.bf16.msra.mxu1 %v3579_v37  ;;  %v3571_v48 = vor.u32 %v3924_v46, %v3570_v45  ;;  %v3550_v50 = vld [vmem:[%s4503_s15 + $0x60] sm:$0xf]  ;;  %v3920_v51 = vld [vmem:[%s4503_s15 + $0x68] sm:$0xf0]  ;;  %v3555_v57 = vor.u32 %v3919_v52, %v3552_v54  ;;  %p3900_p10 = scmp.ne.s32.totalorder %s4401_s17, 1 }
  0x78   : > { %v712_v39 = vmul.f32 127.0, %v4595_v29  ;;  %944 = vmatpush.bf16.msra.mxu2 %v3583_v38  ;;  %v3551_v53 = vor.u32 %v3920_v51, %v3550_v50  ;;  %v3558_v55 = vld [vmem:[%s4503_s15 + $0x68] sm:$0xf]  ;;  %v3921_v56 = vld [vmem:[%s4503_s15 + $0x70] sm:$0xf0]  ;;  %vm716_vm1 = vweird.f32 %v4595_v29  ;;  %vm1710_vm9 = vcmask 261120  }
  0x79   : > { %v696_v7 = vsub.f32 1.0, %v695_v6  ;;  %v3559_v58 = vor.u32 %v3921_v56, %v3558_v55  ;;  %v3538_v59 = vld [vmem:[%s4503_s15 + $0x48] sm:$0xf]  ;;  %v3917_v60 = vld [vmem:[%s4503_s15 + $0x50] sm:$0xf0]  ;;  %vm1863_vm11 = vcmask 64512  }
  0x7a   : > { %v713_v49 = vsub.f32 1.0, %v712_v39  ;;  %v3916_v61 = vld [vmem:[%s4503_s15 + $0x4c] sm:$0xf]  ;;  %v3539_v63 = vor.u32 %v3917_v60, %v3538_v59  ;;  %v3540_v0 = vld [vmem:[%s4503_s15 + $0x54] sm:$0xf0]  ;;  %vm2067_vm12 = vcmask 1043456  }
  0x7b   : > { %v697_v8 = vmul.f32 %v4096_v5, %v696_v7  ;;  %917 = vmatpush.bf16.msra.mxu0 %v3563_v43  ;;  %931 = vmatpush.bf16.msra.mxu1 %v3567_v47  ;;  %v3546_v1 = vld [vmem:[%s4503_s15 + $0x50] sm:$0xf]  ;;  %v3914_v6 = vld [vmem:[%s4503_s15 + $0x38] sm:$0xf0]  ;;  %v3913_v7 = vld [vmem:[%s4503_s15 + $0x34] sm:$0xf] }
  0x7c   : > { %945 = vmatpush.bf16.msra.mxu2 %v3571_v48  ;;  %v714_v62 = vmul.f32 %v4595_v29, %v713_v49  ;;  %v3911_v19 = vld [vmem:[%s4503_s15 + $0x20] sm:$0xf0]  ;;  %v3910_v20 = vld [vmem:[%s4503_s15 + $0x1c] sm:$0xf]  ;;  %v3516_v23 = vld [vmem:[%s4503_s15 + $0x24] sm:$0xf0] }
  0x7d   : > { %v698_v9 = vadd.f32 %v4096_v5, %v697_v8  ;;  %v3522_v24 = vld [vmem:[%s4503_s15 + $0x20] sm:$0xf]  ;;  %v3912_v25 = vld [vmem:[%s4503_s15 + $0x28] sm:$0xf0]  ;;  %v3519_v26 = vor.u32 %v3910_v20, %v3516_v23  ;;  %v3907_v31 = vld [vmem:[%s4503_s15 + $0x4] sm:$0xf] }
  0x7e   : > { %692 = vadd.xlane.f32.xlu0 %v687_v3  ;;  %v715_v8 = vadd.f32 %v4595_v29, %v714_v62  ;;  %v3523_v27 = vor.u32 %v3912_v25, %v3522_v24  ;;  %v3502_v28 = vld [vmem:[%s4503_s15] sm:$0xf]  ;;  %v3908_v30 = vld [vmem:[%s4503_s15 + $0x8] sm:$0xf0]  ;;  %v3504_v34 = vld [vmem:[%s4503_s15 + $0xc] sm:$0xf0] }
  0x7f   : > { %v4577_v10 = vsel %vm699_vm0, %v4096_v5, %v698_v9  ;;  %918 = vmatpush.bf16.msra.mxu0 %v3551_v53  ;;  %932 = vmatpush.bf16.msra.mxu1 %v3555_v57  ;;  %v3526_v5 = vld [vmem:[%s4503_s15 + $0x30] sm:$0xf]  ;;  %v3503_v33 = vor.u32 %v3908_v30, %v3502_v28  ;;  %v3510_v35 = vld [vmem:[%s4503_s15 + $0x8] sm:$0xf]  ;;  %v3909_v36 = vld [vmem:[%s4503_s15 + $0x10] sm:$0xf0] }
  0x80   : > { %946 = vmatpush.bf16.msra.mxu2 %v3559_v58  ;;  %v3527_v9 = vor.u32 %v3914_v6, %v3526_v5  ;;  %v4635_v21 = vsel %vm716_vm1, %v4595_v29, %v715_v8  ;;  %v3507_v29 = vor.u32 %v3907_v31, %v3504_v34  ;;  %v3511_v38 = vor.u32 %v3909_v36, %v3510_v35  ;;  %v4089_v56 = vld [vmem:[%s5526_s18] ss:$0 sm:$0xff]  ;;  %s5530_s23 = sld [smem:[#allocation18_spill]] (!%p3900_p10) }
  0x81   : > { %v4304_v8 = vmov 1983009808   ;;  %s5532_s11 = sld [smem:[#allocation20_spill]] (!%p3900_p10) }
  0x83   : > { %919 = vmatpush.bf16.msra.mxu0 %v3539_v63 }
  0x87   : > { %920 = vmatpush.bf16.msra.mxu0 %v3527_v9  ;;  %v985_v9 = vunpack.c.l.s4 %v4304_v8 }
  0xe9   : > { %v691_v11 = vpop.xlane.xlu0 %690 }
  0xea   : > { %v701_v12 = vmul.f32 %v4577_v10, %v691_v11  ;;  %v3528_v11 = vld [vmem:[%s4503_s15 + $0x3c] sm:$0xf0] }
  0xec   : > { %v4580_v13 = vsub.f32 %v686_v2, %v701_v12  ;;  %v3918_v2 = vld [vmem:[%s4503_s15 + $0x58] sm:$0xf0]  ;;  %v3534_v12 = vld [vmem:[%s4503_s15 + $0x38] sm:$0xf] }
  0xed   : > { %v3547_v4 = vor.u32 %v3918_v2, %v3546_v1 }
  0xee   : > { %v705_v14 = vmul.f32 %v4580_v13, %v4580_v13 }
  0xef   : > { %947 = vmatpush.bf16.msra.mxu2 %v3547_v4 }
  0xf0   : > { %707 = vadd.xlane.f32.xlu1 %v705_v14  ;;  %v3915_v14 = vld [vmem:[%s4503_s15 + $0x40] sm:$0xf0] }
  0xf1   : > { %v693_v15 = vpop.xlane.xlu0 %692 }
  0xf2   : > { %v702_v16 = vmul.f32 %v4577_v10, %v693_v15  ;;  %v3531_v15 = vor.u32 %v3913_v7, %v3528_v11 }
  0xf4   : > { %v4585_v17 = vsub.f32 %v687_v3, %v702_v16  ;;  %v3543_v3 = vor.u32 %v3916_v61, %v3540_v0  ;;  %v3535_v16 = vor.u32 %v3915_v14, %v3534_v12  ;;  %v4090_v61 = vld [vmem:[%s663_s14] ss:$0 sm:$0xff]  ;;  %s4303_s14 = smov 64  }
  0xf6   : > { %v706_v18 = vmul.f32 %v4585_v17, %v4585_v17  ;;  %933 = vmatpush.bf16.msra.mxu1 %v3543_v3  ;;  %948 = vmatpush.bf16.msra.mxu2 %v3535_v16 }
  0xf8   : > { %709 = vadd.xlane.f32.xlu1 %v706_v18  ;;  %v3514_v18 = vld [vmem:[%s4503_s15 + $0x18] sm:$0xf]  ;;  %s5528_s15 = scalar_lea.vmem %s5483_s6, %s4518_s0 }
  0xf9   : > { %v3515_v22 = vor.u32 %v3911_v19, %v3514_v18 }
  0xfa   : > { %934 = vmatpush.bf16.msra.mxu1 %v3531_v15  ;;  %949 = vmatpush.bf16.msra.mxu2 %v3523_v27  ;;  %v4682_v15 = vunpack.c.0.s8 %v985_v9 }
  0xfb   : > { %921 = vmatpush.bf16.msra.mxu0 %v3515_v22  ;;  %v4305_v22 = vmov 1934713408  }
  0xfc   : > { %v1009_v23 = vunpack.c.l.s4 %v4305_v22 }
  0xfe   : > { %935 = vmatpush.bf16.msra.mxu1 %v3519_v26  ;;  %950 = vmatpush.bf16.msra.mxu2 %v3511_v38  ;;  %v4691_v31 = vunpack.c.0.s8 %v1009_v23 }
  0xff   : > { %922 = vmatpush.bf16.msra.mxu0 %v3503_v33 }
 0x102   : > { %936 = vmatpush.bf16.msra.mxu1 %v3507_v29 }
 0x163   : > { %v708_v32 = vpop.xlane.xlu1 %707 }
 0x164   : > { %v718_v37 = vmul.f32 %v4635_v21, %v708_v32 }
 0x166   : > { %v720_v39 = vadd.f32 1e-05, %v718_v37 }
 0x168   : > { %4099 = vrsqrt.f32 %v720_v39  ;;  %vm728_vm3 = vweird.f32 %v720_v39 }
 0x16b   : > { %v710_v40 = vpop.xlane.xlu1 %709 }
 0x16c   : > { %v719_v41 = vmul.f32 %v4635_v21, %v710_v40 }
 0x16e   : > { %v4100_v42 = vpop.eup %4099  ;;  %v721_v43 = vadd.f32 1e-05, %v719_v41 }
 0x16f   : > { %v723_v44 = vmul.f32 %v4100_v42, %v720_v39  ;;  %vm729_vm2 = vweird.f32 %v4100_v42 }
 0x170   : > { %4101 = vrsqrt.f32 %v721_v43  ;;  %vm730_vm4 = vmor %vm728_vm3, %vm729_vm2  ;;  %vm738_vm6 = vweird.f32 %v721_v43 }
 0x171   : > { %v724_v45 = vmul.f32 %v4100_v42, %v723_v44 }
 0x173   : > { %v725_v46 = vmul.f32 0.5, %v724_v45 }
 0x175   : > { %v726_v47 = vsub.f32 1.5, %v725_v46 }
 0x176   : > { %v4102_v48 = vpop.eup %4101 }
 0x177   : > { %v727_v49 = vmul.f32 %v4100_v42, %v726_v47  ;;  %v733_v50 = vmul.f32 %v4102_v48, %v721_v43  ;;  %vm739_vm5 = vweird.f32 %v4102_v48 }
 0x178   : > { %vm740_vm7 = vmor %vm738_vm6, %vm739_vm5 }
 0x179   : > { %v734_v51 = vmul.f32 %v4102_v48, %v733_v50  ;;  %v731_v52 = vsel %vm730_vm4, %v4100_v42, %v727_v49 }
 0x17a   : > { %v742_v55 = vmul.f32 %v731_v52, %v4580_v13 }
 0x17b   : > { %v735_v53 = vmul.f32 0.5, %v734_v51 }
 0x17c   : > { %v747_v60 = vmul.f32 %v4089_v56, %v742_v55 }
 0x17d   : > { %v736_v54 = vsub.f32 1.5, %v735_v53 }
 0x17e   : > { %v752_v63 = vadd.f32 %v4090_v61, %v747_v60 }
 0x17f   : > { %v737_v57 = vmul.f32 %v4102_v48, %v736_v54 }
 0x181   : > { %v741_v58 = vsel %vm740_vm7, %v4102_v48, %v737_v57 }
 0x182   : > { %v743_v59 = vmul.f32 %v741_v58, %v4585_v17 }
 0x184   : > { %v748_v62 = vmul.f32 %v4089_v56, %v743_v59 }
 0x186   : > { %v753_v13 = vadd.f32 %v4090_v61, %v748_v62 }
 0x188   : > { %v754_v0 = vpack.c.bf16 %v753_v13, %v752_v63 }
 0x18a   : > { %923 = vmatmul.bf16.vlgmr.msra.gmra.mxu0 %v754_v0  ;;  %937 = vmatmul.bf16.vlgmr.msra.gmra.mxu1 %v754_v0 }
 0x18b   : > { %951 = vmatmul.bf16.vlgmr.msra.gmra.mxu2 %v754_v0 }
 0x207   : > { %v924_v1 = vpop.f32.mrf.mxu0  ;;  %v938_v2 = vpop.f32.mrf.mxu1 }
 0x208   : > { %v957_v3 = vmul.f32 0.17677669, %v924_v1  ;;  %1222 = vrot.lane.b32.xlu0 %v938_v2, %s4301_s21  ;;  %1210 = vrot.lane.b32.xlu2 %v938_v2, %s4302_s20  ;;  %v1230_v14 = vrot.slane %v938_v2, 4 }
 0x20a   : > { %961 = vrot.lane.b32.xlu1 %v957_v3, %s4302_s20  ;;  %v982_v19 = vrot.slane %v957_v3, 4 }
 0x20f   : > { %v926_v17 = vpop.f32.mrf.mxu0  ;;  %v4663_v4 = vpop.f32.mrf.mxu1 }
 0x210   : > { %v4665_v5 = vmul.f32 0.17677669, %v926_v17  ;;  %1216 = vrot.lane.b32.xlu2 %v938_v2, %s4303_s14  ;;  %1218 = vrot.lane.b32.xlu0 %v4663_v4, %s4303_s14 }
 0x212   : > { %963 = vrot.lane.b32.xlu1 %v4665_v5, %s4302_s20 }
 0x218   : > { %967 = vrot.lane.b32.xlu2 %v957_v3, %s4303_s14  ;;  %969 = vrot.lane.b32.xlu0 %v4665_v5, %s4303_s14 }
 0x220   : > { %973 = vrot.lane.b32.xlu2 %v957_v3, %s4301_s21 }
 0x228   : > { %1212 = vrot.lane.b32.xlu2 %v4663_v4, %s4302_s20 }
 0x230   : > { %1224 = vrot.lane.b32.xlu2 %v4663_v4, %s4301_s21 }
 0x238   : > { %975 = vrot.lane.b32.xlu2 %v4665_v5, %s4301_s21 }
 0x262   : > { %v1211_v6 = vpop.permute.xlu2 %1210 }
 0x263   : > { %v1242_v27 = vrot.slane %v1211_v6, 4 }
 0x26a   : > { %v1217_v7 = vpop.permute.xlu2 %1216 }
 0x26b   : > { %v1228_v11 = vrot.slane %v1217_v7, 4  ;;  %v1231_v18 = vsel %vm980_vm8, %v1217_v7, %v1230_v14 }
 0x26c   : > { %v1239_v25 = vperm.slane %v1231_v18, %v4682_v15 }
 0x26d   : > { %v1229_v20 = vsel %vm980_vm8, %v1228_v11, %v938_v2  ;;  %v1286_v11 = vrot.slane %v4663_v4, 4 }
 0x26e   : > { %v1235_v28 = vperm.slane %v1229_v20, %v4682_v15  ;;  %v1266_v29 = vrot.slane %v1239_v25, 4 }
 0x270   : > { %v1254_v40 = vrot.slane %v1235_v28, 4 }
 0x272   : > { %v968_v12 = vpop.permute.xlu2 %967 }
 0x273   : > { %v979_v16 = vrot.slane %v968_v12, 4  ;;  %v983_v24 = vsel %vm980_vm8, %v968_v12, %v982_v19 }
 0x274   : > { %v991_v30 = vperm.slane %v983_v24, %v4682_v15 }
 0x275   : > { %v981_v26 = vsel %vm980_vm8, %v979_v16, %v957_v3 }
 0x276   : > { %v987_v34 = vperm.slane %v981_v26, %v4682_v15  ;;  %v1018_v49 = vrot.slane %v991_v30, 4 }
 0x278   : > { %v1006_v48 = vrot.slane %v987_v34, 4 }
 0x27a   : > { %v1223_v32 = vpop.permute.xlu0 %1222  ;;  %v974_v33 = vpop.permute.xlu2 %973 }
 0x27b   : > { %v1240_v35 = vrot.slane %v1223_v32, 4  ;;  %v1243_v36 = vsel %vm980_vm8, %v1223_v32, %v1242_v27  ;;  %v992_v37 = vrot.slane %v974_v33, 4 }
 0x27c   : > { %v1251_v38 = vperm.slane %v1243_v36, %v4682_v15  ;;  %v962_v39 = vpop.permute.xlu1 %961 }
 0x27d   : > { %v1241_v41 = vsel %vm980_vm8, %v1240_v35, %v1211_v6  ;;  %v993_v42 = vsel %vm980_vm8, %v992_v37, %v962_v39  ;;  %v994_v43 = vrot.slane %v962_v39, 4 }
 0x27e   : > { %v1247_v44 = vperm.slane %v1241_v41, %v4682_v15  ;;  %v1264_v45 = vrot.slane %v1251_v38, 4  ;;  %v1267_v46 = vsel %vm980_vm8, %v1251_v38, %v1266_v29  ;;  %v999_v47 = vperm.slane %v993_v42, %v4682_v15 }
 0x27f   : > { %v1275_v50 = vperm.slane %v1267_v46, %v4691_v31  ;;  %v995_v51 = vsel %vm980_vm8, %v974_v33, %v994_v43 }
 0x280   : > { %v1252_v52 = vrot.slane %v1247_v44, 4  ;;  %v1255_v53 = vsel %vm980_vm8, %v1247_v44, %v1254_v40  ;;  %v1265_v54 = vsel %vm980_vm8, %v1264_v45, %v1239_v25  ;;  %v1003_v55 = vperm.slane %v995_v51, %v4682_v15 }
 0x281   : > { %v1263_v56 = vperm.slane %v1255_v53, %v4691_v31  ;;  %v1271_v57 = vperm.slane %v1265_v54, %v4691_v31  ;;  %v1282_v58 = vrot.slane %v1275_v50, 4  ;;  %v1004_v59 = vrot.slane %v999_v47, 4 }
 0x282   : > { %v1253_v60 = vsel %vm980_vm8, %v1252_v52, %v1235_v28  ;;  %v1007_v61 = vsel %vm980_vm8, %v999_v47, %v1006_v48  ;;  %v1016_v62 = vrot.slane %v1003_v55, 4  ;;  %v1219_v63 = vpop.permute.xlu0 %1218  ;;  %v1213_v13 = vpop.permute.xlu2 %1212  ;;  %v1019_v3 = vsel %vm980_vm8, %v1003_v55, %v1018_v49 }
 0x283   : > { %v4710_v0 = vrot.slane %v1263_v56, 4  ;;  %v1280_v1 = vrot.slane %v1271_v57, 4  ;;  %v1283_v2 = vsel %vm980_vm8, 0.0, %v1282_v58  ;;  %v1005_v17 = vsel %vm980_vm8, %v1004_v59, %v987_v34 }
 0x284   : > { %v1015_v6 = vperm.slane %v1007_v61, %v4691_v31  ;;  %v1259_v7 = vperm.slane %v1253_v60, %v4691_v31  ;;  %v1356_v8 = vrot.slane %v1283_v2, 4  ;;  %v1011_v9 = vperm.slane %v1005_v17, %v4691_v31  ;;  %v4727_v24 = vpop.permute.xlu1 %963 }
 0x285   : > { %v1279_v12 = vsel %vm980_vm8, 0.0, %v4710_v0  ;;  %v1281_v14 = vsel %vm980_vm8, 0.0, %v1280_v1  ;;  %v1017_v16 = vsel %vm980_vm8, %v1016_v62, %v991_v30  ;;  %v1027_v18 = vperm.slane %v1019_v3, %v4691_v31 }
 0x286   : > { %v4725_v19 = vperm.slane %v1017_v16, %v4691_v31  ;;  %v1028_v20 = vrot.slane %v1011_v9, 4  ;;  %v1030_v22 = vrot.slane %v1015_v6, 4  ;;  %v1284_v23 = vrot.slane %v1219_v63, 4 }
 0x287   : > { %v4730_v25 = vsel %vm980_vm8, %v1282_v58, %v1271_v57  ;;  %v4732_v26 = vrot.slane %v1027_v18, 4  ;;  %v1287_v27 = vsel %vm980_vm8, %v1219_v63, %v1286_v11  ;;  %v1038_v28 = vrot.slane %v4665_v5, 4 }
 0x288   : > { %v1276_v30 = vrot.slane %v1259_v7, 4  ;;  %v1345_v32 = vrot.slane %v1279_v12, 4  ;;  %v4737_v33 = vsel %vm980_vm8, %v1356_v8, %v1281_v14  ;;  %v1298_v34 = vrot.slane %v1213_v13, 4 }
 0x289   : > { %v1031_v35 = vsel %vm980_vm8, 0.0, %v1030_v22  ;;  %v1285_v36 = vsel %vm980_vm8, %v1284_v23, %v4663_v4  ;;  %v1295_v37 = vperm.slane %v1287_v27, %v4682_v15  ;;  %v1050_v29 = vrot.slane %v4727_v24, 4 }
 0x28a   : > { %v1225_v38 = vpop.permute.xlu2 %1224  ;;  %v970_v39 = vpop.permute.xlu0 %969  ;;  %v1029_v40 = vsel %vm980_vm8, 0.0, %v1028_v20  ;;  %v1032_v41 = vrot.slane %v4725_v19, 4  ;;  %v1291_v42 = vperm.slane %v1285_v36, %v4682_v15  ;;  %v4749_v44 = vsel %vm980_vm8, 0.0, %v4732_v26 }
 0x28b   : > { %v1296_v43 = vrot.slane %v1225_v38, 4  ;;  %v4752_v45 = vsel %vm980_vm8, %v1030_v22, %v1011_v9  ;;  %v1299_v4 = vsel %vm980_vm8, %v1225_v38, %v1298_v34  ;;  %v1036_v46 = vrot.slane %v970_v39, 4 }
 0x28c   : > { %v1097_v47 = vrot.slane %v1031_v35, 4  ;;  %v1322_v48 = vrot.slane %v1295_v37, 4  ;;  %v1307_v50 = vperm.slane %v1299_v4, %v4682_v15  ;;  %v1310_v51 = vrot.slane %v1291_v42, 4 }
 0x28d   : > { %v1297_v49 = vsel %vm980_vm8, %v1296_v43, %v1213_v13  ;;  %v1037_v53 = vsel %vm980_vm8, %v1036_v46, %v4665_v5  ;;  %v1039_v54 = vsel %vm980_vm8, %v970_v39, %v1038_v28  ;;  %v4762_v55 = vsel %vm980_vm8, 0.0, %v1032_v41 }
 0x28e   : > { %v1303_v52 = vperm.slane %v1297_v49, %v4682_v15  ;;  %v1108_v56 = vrot.slane %v4749_v44, 4  ;;  %v1320_v57 = vrot.slane %v1307_v50, 4  ;;  %v1323_v58 = vsel %vm980_vm8, %v1307_v50, %v1322_v48 }
 0x28f   : > { %v1331_v61 = vperm.slane %v1323_v58, %v4691_v31  ;;  %v1277_v62 = vsel %vm980_vm8, 0.0, %v1276_v30  ;;  %v1043_v13 = vperm.slane %v1037_v53, %v4682_v15  ;;  %v1047_v1 = vperm.slane %v1039_v54, %v4682_v15 }
 0x290   : > { %v1308_v59 = vrot.slane %v1303_v52, 4  ;;  %v1311_v60 = vsel %vm980_vm8, %v1303_v52, %v1310_v51  ;;  %v1321_v5 = vsel %vm980_vm8, %v1320_v57, %v1295_v37  ;;  %v1340_v8 = vsel %vm980_vm8, %v4710_v0, %v1259_v7 }
 0x291   : > { %v1319_v63 = vperm.slane %v1311_v60, %v4691_v31  ;;  %v1327_v3 = vperm.slane %v1321_v5, %v4691_v31  ;;  %v1338_v17 = vrot.slane %v1331_v61, 4  ;;  %v1346_v14 = vsel %vm980_vm8, %v1345_v32, %v1277_v62 }
 0x292   : > { %v1309_v2 = vsel %vm980_vm8, %v1308_v59, %v1291_v42  ;;  %v976_v6 = vpop.permute.xlu2 %975  ;;  %v1098_v23 = vsel %vm980_vm8, %v1097_v47, %v1029_v40  ;;  %v1062_v27 = vrot.slane %v1043_v13, 4  ;;  %v1074_v28 = vrot.slane %v1047_v1, 4 }
 0x293   : > { %v4778_v9 = vperm.slane %v1309_v2, %v4691_v31  ;;  %v1048_v11 = vrot.slane %v976_v6, 4  ;;  %v1051_v12 = vsel %vm980_vm8, %v976_v6, %v1050_v29  ;;  %v4782_v16 = vrot.slane %v1319_v63, 4 }
 0x294   : > { %v1336_v18 = vrot.slane %v1327_v3, 4  ;;  %v1339_v20 = vsel %vm980_vm8, 0.0, %v1338_v17  ;;  %v1059_v22 = vperm.slane %v1051_v12, %v4682_v15  ;;  %v1344_v0 = vperm.slane %v1340_v8, %v4682_v15 }
 0x295   : > { %v1405_v7 = vsel %vm980_vm8, %v1338_v17, %v1327_v3  ;;  %v1410_v30 = vrot.slane %v1339_v20, 4  ;;  %v1049_v34 = vsel %vm980_vm8, %v1048_v11, %v4727_v24  ;;  %v1350_v29 = vperm.slane %v1346_v14, %v4682_v15 }
 0x296   : > { %v1072_v32 = vrot.slane %v1059_v22, 4  ;;  %v1337_v35 = vsel %vm980_vm8, 0.0, %v1336_v18  ;;  %v1055_v36 = vperm.slane %v1049_v34, %v4682_v15  ;;  %v1075_v37 = vsel %vm980_vm8, %v1059_v22, %v1074_v28 }
 0x297   : > { %v1332_v38 = vrot.slane %v4778_v9, 4  ;;  %v4798_v39 = vsel %vm980_vm8, 0.0, %v4782_v16  ;;  %v1083_v41 = vperm.slane %v1075_v37, %v4691_v31  ;;  %v1361_v4 = vperm.slane %v4737_v33, %v4682_v15 }
 0x298   : > { %v1073_v40 = vsel %vm980_vm8, %v1072_v32, %v1047_v1  ;;  %v1060_v24 = vrot.slane %v1055_v36, 4  ;;  %v1063_v42 = vsel %vm980_vm8, %v1055_v36, %v1062_v27  ;;  %v1411_v46 = vsel %vm980_vm8, %v1410_v30, %v1337_v35 }
 0x299   : > { %v1079_v43 = vperm.slane %v1073_v40, %v4691_v31  ;;  %v1071_v47 = vperm.slane %v1063_v42, %v4691_v31  ;;  %v1090_v48 = vrot.slane %v1083_v41, 4  ;;  %v1362_v49 = vrot.slane %v1350_v29, 4 }
 0x29a   : > { %v1061_v50 = vsel %vm980_vm8, %v1060_v24, %v1043_v13  ;;  %v1364_v52 = vrot.slane %v1344_v0, 4  ;;  %v1374_v53 = vrot.slane %v1361_v4, 4  ;;  %v1399_v33 = vrot.slane %v4798_v39, 4 }
 0x29b   : > { %v1088_v51 = vrot.slane %v1079_v43, 4  ;;  %v1067_v54 = vperm.slane %v1061_v50, %v4691_v31  ;;  %v1086_v57 = vrot.slane %v1071_v47, 4  ;;  %v1091_v58 = vsel %vm980_vm8, 0.0, %v1090_v48 }
 0x29c   : > { %v1157_v59 = vsel %vm980_vm8, %v1090_v48, %v1079_v43  ;;  %v4814_v60 = vperm.slane %v1405_v7, %v4682_v15  ;;  %v1355_v61 = vperm.slane %v4730_v25, %v4682_v15  ;;  %v1363_v62 = vsel %vm980_vm8, %v1362_v49, %v1344_v0 }
 0x29d   : > { %v4820_v63 = vperm.slane %v1411_v46, %v4682_v15  ;;  %v1087_v5 = vsel %vm980_vm8, 0.0, %v1086_v57  ;;  %v1162_v13 = vrot.slane %v1091_v58, 4  ;;  %v1369_v1 = vperm.slane %v1363_v62, %v4691_v31 }
 0x29e   : > { %v1089_v2 = vsel %vm980_vm8, 0.0, %v1088_v51  ;;  %v4826_v3 = vperm.slane %v1157_v59, %v4682_v15  ;;  %v1375_v17 = vsel %vm980_vm8, %v1374_v53, %v1355_v61  ;;  %v1084_v6 = vrot.slane %v1067_v54, 4 }
 0x29f   : > { %v1146_v25 = vsel %vm980_vm8, %v1086_v57, %v1067_v54  ;;  %v1381_v8 = vperm.slane %v1375_v17, %v4691_v31  ;;  %v1365_v11 = vsel %vm980_vm8, %v1350_v29, %v1364_v52  ;;  %v1151_v12 = vrot.slane %v1087_v5, 4 }
 0x2a0   : > { %v1373_v14 = vperm.slane %v1365_v11, %v4691_v31  ;;  %v1376_v18 = vrot.slane %v1355_v61, 4  ;;  %v1388_v20 = vrot.slane %v1369_v1, 4  ;;  %v1163_v22 = vsel %vm980_vm8, %v1162_v13, %v1089_v2 }
 0x2a1   : > { %v1386_v27 = vrot.slane %v1381_v8, 4  ;;  %v1096_v28 = vperm.slane %v4752_v45, %v4682_v15  ;;  %v1102_v0 = vperm.slane %v1098_v23, %v4682_v15  ;;  %v1103_v32 = vsel %vm980_vm8, %v4732_v26, %v4725_v19 }
 0x2a2   : > { %v1377_v7 = vsel %vm980_vm8, %v1361_v4, %v1376_v18  ;;  %v1392_v30 = vrot.slane %v1373_v14, 4  ;;  %v1389_v34 = vsel %vm980_vm8, %v1381_v8, %v1388_v20  ;;  %v1107_v29 = vperm.slane %v1103_v32, %v4682_v15 }
 0x2a3   : > { %v1387_v35 = vsel %vm980_vm8, %v1386_v27, %v1369_v1  ;;  %v1385_v36 = vperm.slane %v1377_v7, %v4691_v31  ;;  %v1449_v37 = vpack.c.bf16 %v1389_v34, %v1389_v34  ;;  %v1109_v45 = vsel %vm980_vm8, %v1108_v56, %v4762_v55 }
 0x2a4   : > { %v1448_v40 = vpack.c.bf16 %v1387_v35, %v1387_v35  ;;  %v1114_v23 = vrot.slane %v1102_v0, 4  ;;  %v1116_v41 = vrot.slane %v1096_v28, 4  ;;  %v1113_v26 = vperm.slane %v1109_v45, %v4682_v15 }
 0x2a5   : > { %v1390_v24 = vrot.slane %v1385_v36, 4  ;;  %v1393_v42 = vsel %vm980_vm8, %v1385_v36, %v1392_v30  ;;  %v1734_v19 = vsel %vm1710_vm9, %v1449_v37, 0  ;;  %v1085_v43 = vsel %vm980_vm8, 0.0, %v1084_v6 }
 0x2a6   : > { %v1715_v4 = vsel %vm1710_vm9, %v1448_v40, 0  ;;  %v1451_v46 = vpack.c.bf16 %v1393_v42, %v1393_v42  ;;  %v1117_v47 = vsel %vm980_vm8, %v1102_v0, %v1116_v41  ;;  %v1167_v44 = vperm.slane %v1163_v22, %v4682_v15 }
 0x2a7   : > { %1724 = vmatpush.bf16.xpose.msra.mxu3 %v1715_v4  ;;  %v1126_v55 = vrot.slane %v1113_v26, 4  ;;  %v4857_v56 = vperm.slane %v1117_v47, %v4691_v31  ;;  %v1128_v48 = vrot.slane %v1107_v29, 4  ;;  %v1115_v50 = vsel %vm980_vm8, %v1114_v23, %v1096_v28 }
 0x2a8   : > { %v1772_v49 = vsel %vm1710_vm9, %v1451_v46, 0  ;;  %v1333_v51 = vsel %vm980_vm8, 0.0, %v1332_v38  ;;  %v1394_v52 = vsel %vm980_vm8, %v4782_v16, %v4778_v9  ;;  %v1391_v58 = vsel %vm980_vm8, %v1390_v24, %v1373_v14 }
 0x2a9   : > { %1781 = vmatpush.bf16.xpose.msrb.mxu0 %v1772_v49  ;;  %v1127_v53 = vsel %vm980_vm8, %v1126_v55, %v1107_v29  ;;  %v1129_v54 = vsel %vm980_vm8, %v1113_v26, %v1128_v48  ;;  %v1144_v57 = vrot.slane %v4857_v56, 4  ;;  %v1152_v59 = vsel %vm980_vm8, %v1151_v12, %v1085_v43 }
 0x2aa   : > { %v4873_v61 = vperm.slane %v1127_v53, %v4691_v31  ;;  %v4876_v38 = vperm.slane %v1129_v54, %v4691_v31  ;;  %v1398_v62 = vperm.slane %v1394_v52, %v4682_v15  ;;  %v1180_v9 = vrot.slane %v1167_v44, 4 }
 0x2ab   : > { %v1400_v16 = vsel %vm980_vm8, %v1399_v33, %v1333_v51  ;;  %v1428_v5 = vrot.slane %v4820_v63, 4  ;;  %v1430_v13 = vrot.slane %v4814_v60, 4  ;;  %v1121_v1 = vperm.slane %v1115_v50, %v4691_v31 }
 0x2ac   : > { %v1138_v2 = vrot.slane %v4873_v61, 4  ;;  %v1145_v17 = vsel %vm980_vm8, %v4876_v38, %v1144_v57  ;;  %v1450_v6 = vpack.c.bf16 %v1391_v58, %v1391_v58  ;;  %v1404_v8 = vperm.slane %v1400_v16, %v4682_v15 }
 0x2ad   : > { %v1418_v11 = vrot.slane %v1398_v62, 4  ;;  %v1429_v39 = vsel %vm980_vm8, %v1428_v5, %v4814_v60  ;;  %v1150_v33 = vperm.slane %v1146_v25, %v4682_v15  ;;  %v1203_v14 = vpack.c.bf16 %v1145_v17, %v1145_v17 }
 0x2ae   : > { %v1139_v12 = vsel %vm980_vm8, %v1138_v2, %v1121_v1  ;;  %v1435_v18 = vperm.slane %v1429_v39, %v4691_v31  ;;  %v1431_v20 = vsel %vm980_vm8, %v4820_v63, %v1430_v13  ;;  %v1182_v22 = vrot.slane %v4826_v3, 4 }
 0x2af   : > { %1743 = vmatpush.bf16.xpose.msrb.mxu3 %v1734_v19  ;;  %v1200_v27 = vpack.c.bf16 %v1139_v12, %v1139_v12  ;;  %v1416_v28 = vrot.slane %v1404_v8, 4  ;;  %v1419_v0 = vsel %vm980_vm8, %v1404_v8, %v1418_v11  ;;  %v1753_v60 = vsel %vm1710_vm9, %v1450_v6, 0 }
 0x2b0   : > { %3599 = vmatmul.msk.bf16.vlgmr.msrb.gmra.mxu0 %vm1710_vm9, %v1203_v14  ;;  %v1440_v7 = vrot.slane %v1435_v18, 4  ;;  %v1427_v25 = vperm.slane %v1419_v0, %v4691_v31  ;;  %v1156_v30 = vperm.slane %v1152_v59, %v4682_v15  ;;  %v1439_v63 = vperm.slane %v1431_v20, %v4691_v31 }
 0x2b1   : > { %3596 = vmatmul.msk.bf16.vlgmr.msra.gmra.mxu3 %vm1710_vm9, %v1200_v27  ;;  %v1417_v34 = vsel %vm980_vm8, %v1416_v28, %v1398_v62  ;;  %v1170_v32 = vrot.slane %v1150_v33, 4  ;;  %v1181_v35 = vsel %vm980_vm8, %v1180_v9, %v4826_v3  ;;  %v1183_v23 = vsel %vm980_vm8, %v1167_v44, %v1182_v22  ;;  %v4938_v27 = vpop.f32.mrf.mxu2 }
 0x2b2   : > { %v1423_v36 = vperm.slane %v1417_v34, %v4691_v31  ;;  %v1446_v37 = vrot.slane %v1427_v25, 4  ;;  %v1168_v29 = vrot.slane %v1156_v30, 4  ;;  %v1187_v40 = vperm.slane %v1181_v35, %v4691_v31 }
 0x2b3   : > { %v1171_v45 = vsel %vm980_vm8, %v1156_v30, %v1170_v32  ;;  %v1444_v47 = vrot.slane %v1439_v63, 4  ;;  %v1140_v50 = vrot.slane %v1121_v1, 4  ;;  %v1191_v52 = vperm.slane %v1183_v23, %v4691_v31 }
 0x2b4   : > { %v1441_v41 = vsel %vm980_vm8, %v1440_v7, %v1423_v36  ;;  %v1442_v24 = vrot.slane %v1423_v36, 4  ;;  %v1447_v42 = vsel %vm980_vm8, %v1439_v63, %v1446_v37  ;;  %v1169_v19 = vsel %vm980_vm8, %v1168_v29, %v1150_v33 }
 0x2b5   : > { %v1452_v26 = vpack.c.bf16 %v1441_v41, %v1441_v41  ;;  %v1455_v3 = vpack.c.bf16 %v1447_v42, %v1447_v42  ;;  %v1175_v43 = vperm.slane %v1169_v19, %v4691_v31  ;;  %v1192_v4 = vrot.slane %v1187_v40, 4 }
 0x2b6   : > { %v1443_v46 = vsel %vm980_vm8, %v1435_v18, %v1442_v24  ;;  %v1179_v55 = vperm.slane %v1171_v45, %v4691_v31  ;;  %v1445_v57 = vsel %vm980_vm8, %v1444_v47, %v1427_v25  ;;  %v1141_v62 = vsel %vm980_vm8, %v4873_v61, %v1140_v50 }
 0x2b7   : > { %1762 = vmatpush.bf16.xpose.msra.mxu3 %v1753_v60  ;;  %v1791_v48 = vsel %vm1710_vm9, %v1452_v26, 0  ;;  %v1848_v44 = vsel %vm1710_vm9, %v1455_v3, 0  ;;  %v1453_v49 = vpack.c.bf16 %v1443_v46, %v1443_v46  ;;  %v1193_v51 = vsel %vm980_vm8, %v1192_v4, %v1175_v43 }
 0x2b8   : > { %1800 = vmatpush.bf16.xpose.msrb.mxu2 %v1791_v48  ;;  %1857 = vmatpush.bf16.xpose.msra.mxu0 %v1848_v44  ;;  %v1198_v53 = vrot.slane %v1179_v55, 4  ;;  %v1204_v59 = vpack.c.bf16 %v1193_v51, %v1193_v51  ;;  %v1454_v16 = vpack.c.bf16 %v1445_v57, %v1445_v57  ;;  %v1201_v5 = vpack.c.bf16 %v1141_v62, %v1141_v62 }
 0x2b9   : > { %v1810_v54 = vsel %vm1710_vm9, %v1453_v49, 0  ;;  %v1194_v1 = vrot.slane %v1175_v43, 4  ;;  %v1142_v2 = vrot.slane %v4876_v38, 4  ;;  %v1196_v11 = vrot.slane %v1191_v52, 4  ;;  %v4942_v30 = vpop.f32.mrf.mxu2 }
 0x2ba   : > { %v1199_v58 = vsel %vm980_vm8, %v1191_v52, %v1198_v53  ;;  %v1829_v13 = vsel %vm1710_vm9, %v1454_v16, 0  ;;  %v1704_v12 = vlaneseq  ;;  %v4306_v18 = vmov -1e+30  }
 0x2bb   : > { %v1207_v9 = vpack.c.bf16 %v1199_v58, %v1199_v58  ;;  %v1195_v17 = vsel %vm980_vm8, %v1187_v40, %v1194_v1  ;;  %v1143_v61 = vsel %vm980_vm8, %v1142_v2, %v4857_v56  ;;  %v1197_v39 = vsel %vm980_vm8, %v1196_v11, %v1179_v55 }
 0x2bc   : > { %v1205_v6 = vpack.c.bf16 %v1195_v17, %v1195_v17  ;;  %v1202_v8 = vpack.c.bf16 %v1143_v61, %v1143_v61  ;;  %v1206_v33 = vpack.c.bf16 %v1197_v39, %v1197_v39  ;;  %v1705_v14 = vshrl.u32 %v1704_v12, 7 }
 0x2bd   : > { %v1707_v38 = vand.u32 127, %v1704_v12  ;;  %v4069_v49 = vpack.i.bf16 %v4942_v30, %v4938_v27 }
 0x2bf   : > { %3600 = vmatmul.msk.bf16.vlgmr.msrb.gmra.mxu2 %vm1710_vm9, %v1204_v59  ;;  %vm1708_vm10 = vcmp.le.s32.totalorder %v1707_v38, %v1705_v14 }
 0x2c0   : > { %1819 = vmatpush.bf16.xpose.msra.mxu2 %v1810_v54  ;;  %3603 = vmatmul.msk.bf16.vlgmr.msra.gmra.mxu0 %vm1710_vm9, %v1207_v9  ;;  %v1709_v20 = vsel %vm1708_vm10, 0.0, %v4306_v18 }
 0x2c1   : > { %3597 = vmatmul.msk.bf16.vlgmr.msrb.gmra.mxu3 %vm1710_vm9, %v1201_v5 }
 0x2c2   : > { %1838 = vmatpush.bf16.xpose.msrb.mxu3 %v1829_v13 }
 0x2cf   : > { %3601 = vmatmul.msk.bf16.vlgmr.msra.gmra.mxu2 %vm1710_vm9, %v1205_v6 }
 0x2d1   : > { %3598 = vmatmul.msk.bf16.vlgmr.msra.gmra.mxu3 %vm1710_vm9, %v1202_v8 }
 0x2e1   : > { %3602 = vmatmul.msk.bf16.vlgmr.msrb.gmra.mxu3 %vm1710_vm9, %v1206_v33 }
 0x32d   : > { %v1783_v22 = vpop.f32.mrf.mxu0 }
 0x32e   : > { %v1784_v56 = vadd.f32 %v1783_v22, %v1709_v20 }
 0x330   : > { %v1873_v28 = vsel %vm1863_vm11, %v1784_v56, -inf }
 0x331   : > { %1874 = vmax.xlane.f32.xlu1 %v1873_v28 }
 0x334   : > { %v1726_v0 = vpop.f32.mrf.mxu3 }
 0x335   : > { %v1727_v60 = vadd.f32 %v1726_v0, %v1709_v20  ;;  %v1785_v7 = vpop.f32.mrf.mxu0 }
 0x337   : > { %v1864_v25 = vsel %vm1863_vm11, %v1727_v60, -inf }
 0x338   : > { %1865 = vmax.xlane.f32.xlu2 %v1864_v25 }
 0x33c   : > { %v1728_v34 = vpop.f32.mrf.mxu3 }
 0x33d   : > { %v1859_v63 = vpop.f32.mrf.mxu0 }
 0x33e   : > { %v4944_v32 = vadd.f32 %v1859_v63, %v1709_v20 }
 0x340   : > { %v1885_v35 = vsel %vm1863_vm11, %v4944_v32, -inf }
 0x341   : > { %1886 = vmax.xlane.f32.xlu0 %v1885_v35 }
 0x342   : > { %v1802_v36 = vpop.f32.mrf.mxu2 }
 0x343   : > { %v4948_v37 = vadd.f32 %v1802_v36, %v1709_v20  ;;  %v1478_v36 = vrot.slane %v4938_v27, 4 }
 0x344   : > { %v1745_v29 = vpop.f32.mrf.mxu3 }
 0x345   : > { %v1746_v40 = vadd.f32 %v1745_v29, %v1709_v20  ;;  %v1861_v45 = vpop.f32.mrf.mxu0  ;;  %v1876_v23 = vsel %vm1863_vm11, %v4948_v37, -inf }
 0x346   : > { %1877 = vmax.xlane.f32.xlu1 %v1876_v23 }
 0x347   : > { %v1867_v41 = vsel %vm1863_vm11, %v1746_v40, -inf }
 0x349   : > { %1868 = vmax.xlane.f32.xlu0 %v1867_v41 }
 0x34a   : > { %v1804_v24 = vpop.f32.mrf.mxu2 }
 0x34c   : > { %v1747_v42 = vpop.f32.mrf.mxu3 }
 0x352   : > { %v1821_v19 = vpop.f32.mrf.mxu2 }
 0x353   : > { %v1822_v26 = vadd.f32 %v1821_v19, %v1709_v20 }
 0x354   : > { %v1764_v3 = vpop.f32.mrf.mxu3 }
 0x355   : > { %v1765_v43 = vadd.f32 %v1764_v3, %v1709_v20  ;;  %v1879_v4 = vsel %vm1863_vm11, %v1822_v26, -inf }
 0x356   : > { %1880 = vmax.xlane.f32.xlu2 %v1879_v4 }
 0x357   : > { %v1870_v46 = vsel %vm1863_vm11, %v1765_v43, -inf }
 0x358   : > { %1871 = vmax.xlane.f32.xlu1 %v1870_v46 }
 0x35a   : > { %v1823_v47 = vpop.f32.mrf.mxu2 }
 0x35c   : > { %v1766_v55 = vpop.f32.mrf.mxu3 }
 0x35d   : > { %1470 = vrot.lane.b32.xlu0 %v4938_v27, %s4301_s21 }
 0x364   : > { %v1840_v48 = vpop.f32.mrf.mxu3 }
 0x365   : > { %v4962_v50 = vadd.f32 %v1840_v48, %v1709_v20 }
 0x367   : > { %v1882_v51 = vsel %vm1863_vm11, %v4962_v50, -inf }
 0x36c   : > { %v1842_v44 = vpop.f32.mrf.mxu3 }
 0x36e   : > { %4070 = vrot.lane.b32.xlu2 %v4069_v49, %s4302_s20 }
 0x371   : > { %1464 = vrot.lane.b32.xlu1 %v4938_v27, %s4303_s14 }
 0x387   : > { %1883 = vmax.xlane.f32.xlu0 %v1882_v51 }
 0x3a4   : > { %v1875_v52 = vpop.xlane.xlu1 %1874 }
 0x3a5   : > { %v1891_v53 = vsub.f32 %v1784_v56, %v1875_v52 }
 0x3a7   : > { %v1902_v54 = vmul.f32 1.442695, %v1891_v53 }
 0x3a9   : > { %4103 = vpow2.f32 %v1902_v54 }
 0x3ab   : > { %v1866_v57 = vpop.xlane.xlu2 %1865 }
 0x3ac   : > { %v1888_v58 = vsub.f32 %v1727_v60, %v1866_v57 }
 0x3ae   : > { %v1896_v59 = vmul.f32 1.442695, %v1888_v58 }
 0x3af   : > { %v4966_v62 = vpop.eup %4103 }
 0x3b0   : > { %4105 = vpow2.f32 %v1896_v59  ;;  %v1921_v9 = vsel %vm1863_vm11, %v4966_v62, 0.0 }
 0x3b1   : > { %1922 = vadd.xlane.f32.xlu2 %v1921_v9 }
 0x3b4   : > { %v4970_v16 = vpop.xlane.xlu0 %1886 }
 0x3b6   : > { %v4972_v5 = vpop.eup %4105 }
 0x3b7   : > { %v1912_v13 = vsel %vm1863_vm11, %v4972_v5, 0.0 }
 0x3b8   : > { %1913 = vadd.xlane.f32.xlu1 %v1912_v13 }
 0x3b9   : > { %v4976_v61 = vpop.xlane.xlu1 %1877 }
 0x3bc   : > { %v1869_v1 = vpop.xlane.xlu0 %1868 }
 0x3bd   : > { %v1889_v2 = vsub.f32 %v1746_v40, %v1869_v1 }
 0x3bf   : > { %v1898_v17 = vmul.f32 1.442695, %v1889_v2 }
 0x3c1   : > { %4107 = vpow2.f32 %v1898_v17 }
 0x3c7   : > { %v4978_v6 = vpop.eup %4107 }
 0x3c8   : > { %v1915_v8 = vsel %vm1863_vm11, %v4978_v6, 0.0 }
 0x3c9   : > { %1916 = vadd.xlane.f32.xlu0 %v1915_v8  ;;  %v1881_v11 = vpop.xlane.xlu2 %1880 }
 0x3ca   : > { %v1893_v12 = vsub.f32 %v1822_v26, %v1881_v11 }
 0x3cb   : > { %v1872_v39 = vpop.xlane.xlu1 %1871 }
 0x3cc   : > { %v1890_v33 = vsub.f32 %v1765_v43, %v1872_v39  ;;  %v1906_v38 = vmul.f32 1.442695, %v1893_v12 }
 0x3ce   : > { %v1900_v14 = vmul.f32 1.442695, %v1890_v33 }
 0x3cf   : > { %v1471_v0 = vpop.permute.xlu0 %1470 }
 0x3d0   : > { %4109 = vpow2.f32 %v1900_v14  ;;  %v1488_v7 = vrot.slane %v1471_v0, 4 }
 0x3d1   : > { %1472 = vrot.lane.b32.xlu1 %v4942_v30, %s4301_s21  ;;  %v4984_v18 = vpop.permute.xlu2 %4070  ;;  %4111 = vpow2.f32 %v1906_v38 }
 0x3d2   : > { %v4072_v22 = vunpack.i.l.bf16 %v4984_v18 }
 0x3d4   : > { %v1490_v28 = vrot.slane %v4072_v22, 4  ;;  %v1489_v63 = vsel %vm980_vm8, %v1488_v7, %v4072_v22  ;;  %v1892_v22 = vsub.f32 %v4948_v37, %v4976_v61 }
 0x3d5   : > { %v1495_v29 = vperm.slane %v1489_v63, %v4682_v15 }
 0x3d6   : > { %v4986_v20 = vpop.eup %4109  ;;  %v1491_v25 = vsel %vm980_vm8, %v1471_v0, %v1490_v28 }
 0x3d7   : > { %v1918_v56 = vsel %vm1863_vm11, %v4986_v20, 0.0  ;;  %v4991_v60 = vpop.eup %4111  ;;  %v1499_v35 = vperm.slane %v1491_v25, %v4682_v15  ;;  %v1500_v19 = vrot.slane %v1495_v29, 4 }
 0x3d8   : > { %1919 = vadd.xlane.f32.xlu2 %v1918_v56  ;;  %v1927_v34 = vsel %vm1863_vm11, %v4991_v60, 0.0 }
 0x3d9   : > { %v1512_v41 = vrot.slane %v1499_v35, 4 }
 0x3dd   : > { %1466 = vrot.lane.b32.xlu0 %v4942_v30, %s4303_s14 }
 0x3e0   : > { %1928 = vadd.xlane.f32.xlu2 %v1927_v34 }
 0x3e3   : > { %v1465_v40 = vpop.permute.xlu1 %1464 }
 0x3e4   : > { %v1476_v45 = vrot.slane %v1465_v40, 4  ;;  %v1479_v23 = vsel %vm980_vm8, %v1465_v40, %v1478_v36  ;;  %v1904_v40 = vmul.f32 1.442695, %v1892_v22 }
 0x3e5   : > { %v1487_v24 = vperm.slane %v1479_v23, %v4682_v15 }
 0x3e6   : > { %v1477_v42 = vsel %vm980_vm8, %v1476_v45, %v4938_v27  ;;  %4113 = vpow2.f32 %v1904_v40 }
 0x3e7   : > { %v1483_v26 = vperm.slane %v1477_v42, %v4682_v15  ;;  %v1513_v3 = vsel %vm980_vm8, %v1512_v41, %v1487_v24  ;;  %v1514_v43 = vrot.slane %v1487_v24, 4 }
 0x3e8   : > { %v1519_v4 = vperm.slane %v1513_v3, %v4691_v31 }
 0x3e9   : > { %v1501_v46 = vsel %vm980_vm8, %v1500_v19, %v1483_v26  ;;  %v1502_v47 = vrot.slane %v1483_v26, 4  ;;  %v1515_v55 = vsel %vm980_vm8, %v1499_v35, %v1514_v43 }
 0x3ea   : > { %v1507_v48 = vperm.slane %v1501_v46, %v4691_v31  ;;  %v1523_v44 = vperm.slane %v1515_v55, %v4691_v31  ;;  %v1528_v51 = vrot.slane %v1519_v4, 4  ;;  %v1895_v55 = vsub.f32 %v4944_v32, %v4970_v16 }
 0x3eb   : > { %v1503_v49 = vsel %vm980_vm8, %v1495_v29, %v1502_v47 }
 0x3ec   : > { %v1511_v27 = vperm.slane %v1503_v49, %v4691_v31  ;;  %v1530_v52 = vrot.slane %v1523_v44, 4  ;;  %v1524_v53 = vrot.slane %v1507_v48, 4  ;;  %v1529_v1 = vsel %vm980_vm8, 0.0, %v1528_v51 }
 0x3ee   : > { %v1526_v54 = vrot.slane %v1511_v27, 4  ;;  %v1531_v57 = vsel %vm980_vm8, 0.0, %v1530_v52  ;;  %v1599_v58 = vsel %vm980_vm8, %v1530_v52, %v1519_v4  ;;  %v1525_v33 = vsel %vm980_vm8, 0.0, %v1524_v53  ;;  %v5048_v53 = vpop.eup %4113 }
 0x3ef   : > { %v1603_v59 = vperm.slane %v1599_v58, %v4682_v15  ;;  %v1604_v9 = vrot.slane %v1531_v57, 4  ;;  %v1910_v52 = vmul.f32 1.442695, %v1895_v55  ;;  %v1924_v16 = vsel %vm1863_vm11, %v5048_v53, 0.0 }
 0x3f0   : > { %v1527_v13 = vsel %vm980_vm8, 0.0, %v1526_v54  ;;  %v1588_v2 = vsel %vm980_vm8, %v1526_v54, %v1507_v48 }
 0x3f1   : > { %v1593_v17 = vrot.slane %v1527_v13, 4  ;;  %v1605_v8 = vsel %vm980_vm8, %v1604_v9, %v1529_v1  ;;  %v1624_v11 = vrot.slane %v1603_v59, 4  ;;  %v1592_v39 = vperm.slane %v1588_v2, %v4682_v15 }
 0x3f2   : > { %v1609_v12 = vperm.slane %v1605_v8, %v4682_v15 }
 0x3f3   : > { %v1594_v14 = vsel %vm980_vm8, %v1593_v17, %v1525_v33  ;;  %v1612_v38 = vrot.slane %v1592_v39, 4 }
 0x3f4   : > { %v1598_v56 = vperm.slane %v1594_v14, %v4682_v15  ;;  %v1625_v28 = vsel %vm980_vm8, %v1609_v12, %v1624_v11  ;;  %v1622_v0 = vrot.slane %v1609_v12, 4 }
 0x3f5   : > { %v1633_v7 = vperm.slane %v1625_v28, %v4691_v31 }
 0x3f6   : > { %v1613_v25 = vsel %vm980_vm8, %v1598_v56, %v1612_v38  ;;  %v1610_v34 = vrot.slane %v1598_v56, 4  ;;  %v1623_v63 = vsel %vm980_vm8, %v1622_v0, %v1603_v59 }
 0x3f7   : > { %v1621_v35 = vperm.slane %v1613_v25, %v4691_v31  ;;  %v1638_v36 = vrot.slane %v1633_v7, 4  ;;  %v1629_v29 = vperm.slane %v1623_v63, %v4691_v31 }
 0x3f8   : > { %v1611_v37 = vsel %vm980_vm8, %v1610_v34, %v1592_v39 }
 0x3f9   : > { %v1639_v61 = vsel %vm980_vm8, %v1638_v36, %v1621_v35  ;;  %v1617_v45 = vperm.slane %v1611_v37, %v4691_v31  ;;  %v1634_v23 = vrot.slane %v1629_v29, 4  ;;  %v1640_v41 = vrot.slane %v1621_v35, 4 }
 0x3fa   : > { %v1884_v24 = vpop.xlane.xlu0 %1883  ;;  %v1698_v42 = vpack.c.bf16 %v1639_v61, %v1639_v61 }
 0x3fb   : > { %v1894_v19 = vsub.f32 %v4962_v50, %v1884_v24  ;;  %v1635_v26 = vsel %vm980_vm8, %v1634_v23, %v1617_v45  ;;  %v1636_v3 = vrot.slane %v1617_v45, 4  ;;  %v1641_v43 = vsel %vm980_vm8, %v1633_v7, %v1640_v41 }
 0x3fc   : > { %v2107_v4 = vsel %vm2067_vm12, %v1698_v42, 0  ;;  %v1696_v46 = vpack.c.bf16 %v1635_v26, %v1635_v26  ;;  %v1699_v47 = vpack.c.bf16 %v1641_v43, %v1641_v43  ;;  %v4073_v45 = vunpack.i.h.bf16 %v4984_v18 }
 0x3fd   : > { %v1908_v48 = vmul.f32 1.442695, %v1894_v19  ;;  %2116 = vmatpush.bf16.msra.mxu3 %v2107_v4  ;;  %v1637_v44 = vsel %vm980_vm8, %v1629_v29, %v1636_v3 }
 0x3fe   : > { %v2069_v49 = vsel %vm2067_vm12, %v1696_v46, 0  ;;  %v2126_v50 = vsel %vm2067_vm12, %v1699_v47, 0  ;;  %v1697_v27 = vpack.c.bf16 %v1637_v44, %v1637_v44  ;;  %v1546_v42 = vrot.slane %v4073_v45, 4 }
 0x3ff   : > { %4115 = vpow2.f32 %v1908_v48  ;;  %2078 = vmatpush.bf16.msrb.mxu1 %v2069_v49  ;;  %2135 = vmatpush.bf16.msrb.mxu0 %v2126_v50  ;;  %v1534_v50 = vrot.slane %v4942_v30, 4 }
 0x400   : > { %v2088_v51 = vsel %vm2067_vm12, %v1697_v27, 0  ;;  %4117 = vpow2.f32 %v1910_v52 }
 0x401   : > { %2097 = vmatpush.bf16.msrb.mxu2 %v2088_v51 }
 0x405   : > { %v5050_v32 = vpop.eup %4115 }
 0x406   : > { %v1930_v54 = vsel %vm1863_vm11, %v5050_v32, 0.0  ;;  %v5056_v57 = vpop.eup %4117 }
 0x407   : > { %1925 = vadd.xlane.f32.xlu0 %v1924_v16  ;;  %1931 = vadd.xlane.f32.xlu2 %v1930_v54  ;;  %v1933_v58 = vsel %vm1863_vm11, %v5056_v57, 0.0 }
 0x40f   : > { %1934 = vadd.xlane.f32.xlu2 %v1933_v58 }
 0x424   : > { %v1923_v59 = vpop.xlane.xlu2 %1922 }
 0x425   : > { %4119 = vrcp.f32 %v1923_v59  ;;  %v1992_v17 = vand.u32 2147483648, %v1923_v59  ;;  %v1990_v11 = vand.u32 2147483647, %v1923_v59  ;;  %vm1986_vm14 = vweird.f32 %v1923_v59 }
 0x427   : > { %v1993_v12 = vor.u32 1.1754944e-38, %v1992_v17  ;;  %vm1991_vm0 = vcmp.eq.f32.partialorder %v1990_v11, 8.507059e+37 }
 0x42b   : > { %v4120_v9 = vpop.eup %4119  ;;  %v1914_v13 = vpop.xlane.xlu1 %1913 }
 0x42c   : > { %v1982_v1 = vmul.f32 %v4120_v9, %v1923_v59  ;;  %4121 = vrcp.f32 %v1914_v13  ;;  %vm1987_vm13 = vweird.f32 %v4120_v9  ;;  %v1947_v0 = vand.u32 2147483648, %v1914_v13 }
 0x42d   : > { %vm1988_vm15 = vmor %vm1986_vm14, %vm1987_vm13  ;;  %v1945_v25 = vand.u32 2147483647, %v1914_v13  ;;  %vm1941_vm2 = vweird.f32 %v1914_v13 }
 0x42e   : > { %v1983_v2 = vsub.f32 1.0, %v1982_v1  ;;  %v1948_v35 = vor.u32 1.1754944e-38, %v1947_v0 }
 0x42f   : > { %vm1946_vm4 = vcmp.eq.f32.partialorder %v1945_v25, 8.507059e+37 }
 0x430   : > { %v1984_v8 = vmul.f32 %v4120_v9, %v1983_v2 }
 0x432   : > { %v4122_v39 = vpop.eup %4121  ;;  %v1985_v33 = vadd.f32 %v4120_v9, %v1984_v8 }
 0x433   : > { %v1937_v14 = vmul.f32 %v4122_v39, %v1914_v13  ;;  %vm1942_vm1 = vweird.f32 %v4122_v39 }
 0x434   : > { %v1989_v38 = vsel %vm1988_vm15, %v4120_v9, %v1985_v33  ;;  %vm1943_vm3 = vmor %vm1941_vm2, %vm1942_vm1 }
 0x435   : > { %v1994_v22 = vsel %vm1991_vm0, %v1993_v12, %v1989_v38  ;;  %v1938_v56 = vsub.f32 1.0, %v1937_v14 }
 0x436   : > { %v1995_v28 = vmul.f32 %v4966_v62, %v1994_v22 }
 0x437   : > { %v1939_v7 = vmul.f32 %v4122_v39, %v1938_v56 }
 0x438   : > { %v2059_v34 = vpack.c.bf16 %v1995_v28, %v1995_v28 }
 0x439   : > { %v1940_v63 = vadd.f32 %v4122_v39, %v1939_v7 }
 0x43a   : > { %3607 = vmatmul.msk.bf16.vlgmr.msrb.gmra.mxu0 %vm1863_vm11, %v2059_v34 }
 0x43b   : > { %v1944_v36 = vsel %vm1943_vm3, %v4122_v39, %v1940_v63 }
 0x43c   : > { %v1917_v29 = vpop.xlane.xlu0 %1916  ;;  %v1949_v40 = vsel %vm1946_vm4, %v1948_v35, %v1944_v36 }
 0x43d   : > { %4123 = vrcp.f32 %v1917_v29  ;;  %v1950_v37 = vmul.f32 %v4972_v5, %v1949_v40  ;;  %v1962_v19 = vand.u32 2147483648, %v1917_v29  ;;  %v1960_v3 = vand.u32 2147483647, %v1917_v29 }
 0x43e   : > { %vm1956_vm6 = vweird.f32 %v1917_v29 }
 0x43f   : > { %v2056_v61 = vpack.c.bf16 %v1950_v37, %v1950_v37  ;;  %v1963_v5 = vor.u32 1.1754944e-38, %v1962_v19  ;;  %vm1961_vm10 = vcmp.eq.f32.partialorder %v1960_v3, 8.507059e+37 }
 0x441   : > { %3604 = vmatmul.msk.bf16.vlgmr.msrb.gmra.mxu1 %vm1863_vm11, %v2056_v61 }
 0x443   : > { %v4124_v62 = vpop.eup %4123  ;;  %v1473_v41 = vpop.permute.xlu1 %1472 }
 0x444   : > { %v1952_v23 = vmul.f32 %v4124_v62, %v1917_v29  ;;  %vm1957_vm5 = vweird.f32 %v4124_v62  ;;  %v1544_v43 = vrot.slane %v1473_v41, 4  ;;  %v1547_v46 = vsel %vm980_vm8, %v1473_v41, %v1546_v42 }
 0x445   : > { %vm1958_vm7 = vmor %vm1956_vm6, %vm1957_vm5  ;;  %v1555_v44 = vperm.slane %v1547_v46, %v4682_v15 }
 0x446   : > { %v1953_v24 = vsub.f32 1.0, %v1952_v23  ;;  %v1545_v18 = vsel %vm980_vm8, %v1544_v43, %v4073_v45 }
 0x447   : > { %v1551_v27 = vperm.slane %v1545_v18, %v4682_v15  ;;  %v1568_v58 = vrot.slane %v1555_v44, 4 }
 0x448   : > { %v1954_v26 = vmul.f32 %v4124_v62, %v1953_v24 }
 0x449   : > { %v1556_v1 = vrot.slane %v1551_v27, 4 }
 0x44a   : > { %v1955_v4 = vadd.f32 %v4124_v62, %v1954_v26 }
 0x44b   : > { %v1920_v47 = vpop.xlane.xlu2 %1919 }
 0x44c   : > { %v1959_v55 = vsel %vm1958_vm7, %v4124_v62, %v1955_v4  ;;  %4125 = vrcp.f32 %v1920_v47  ;;  %v1975_v33 = vand.u32 2147483647, %v1920_v47  ;;  %v1977_v38 = vand.u32 2147483648, %v1920_v47 }
 0x44d   : > { %v1964_v48 = vsel %vm1961_vm10, %v1963_v5, %v1959_v55  ;;  %vm1971_vm14 = vweird.f32 %v1920_v47 }
 0x44e   : > { %v1965_v49 = vmul.f32 %v4978_v6, %v1964_v48  ;;  %vm1976_vm15 = vcmp.eq.f32.partialorder %v1975_v33, 8.507059e+37  ;;  %v1978_v36 = vor.u32 1.1754944e-38, %v1977_v38 }
 0x44f   : > { %v1467_v51 = vpop.permute.xlu0 %1466 }
 0x450   : > { %v1532_v52 = vrot.slane %v1467_v51, 4  ;;  %v1535_v16 = vsel %vm980_vm8, %v1467_v51, %v1534_v50  ;;  %v2057_v54 = vpack.c.bf16 %v1965_v49, %v1965_v49 }
 0x451   : > { %v1543_v59 = vperm.slane %v1535_v16, %v4682_v15 }
 0x452   : > { %v4126_v9 = vpop.eup %4125  ;;  %v1533_v13 = vsel %vm980_vm8, %v1532_v52, %v4942_v30  ;;  %3605 = vmatmul.msk.bf16.vlgmr.msrb.gmra.mxu2 %vm1863_vm11, %v2057_v54 }
 0x453   : > { %v1967_v6 = vmul.f32 %v4126_v9, %v1920_v47  ;;  %v1539_v2 = vperm.slane %v1533_v13, %v4682_v15  ;;  %v1569_v17 = vsel %vm980_vm8, %v1568_v58, %v1543_v59  ;;  %v5078_v8 = vpop.xlane.xlu2 %1928  ;;  %v1570_v11 = vrot.slane %v1543_v59, 4 }
 0x454   : > { %4127 = vrcp.f32 %v5078_v8  ;;  %v1575_v56 = vperm.slane %v1569_v17, %v4691_v31  ;;  %vm1972_vm13 = vweird.f32 %v4126_v9  ;;  %vm2016_vm2 = vweird.f32 %v5078_v8 }
 0x455   : > { %v1968_v39 = vsub.f32 1.0, %v1967_v6  ;;  %v1557_v12 = vsel %vm980_vm8, %v1556_v1, %v1539_v2  ;;  %v1558_v14 = vrot.slane %v1539_v2, 4  ;;  %v1571_v22 = vsel %vm980_vm8, %v1555_v44, %v1570_v11  ;;  %vm1973_vm0 = vmor %vm1971_vm14, %vm1972_vm13 }
 0x456   : > { %v1563_v30 = vperm.slane %v1557_v12, %v4691_v31  ;;  %v1579_v7 = vperm.slane %v1571_v22, %v4691_v31  ;;  %v1584_v37 = vrot.slane %v1575_v56, 4  ;;  %v2020_v52 = vand.u32 2147483647, %v5078_v8 }
 0x457   : > { %v1969_v28 = vmul.f32 %v4126_v9, %v1968_v39  ;;  %v1559_v0 = vsel %vm980_vm8, %v1551_v27, %v1558_v14  ;;  %v2022_v16 = vand.u32 2147483648, %v5078_v8 }
 0x458   : > { %v1567_v25 = vperm.slane %v1559_v0, %v4691_v31  ;;  %v1586_v63 = vrot.slane %v1579_v7, 4  ;;  %v1580_v29 = vrot.slane %v1563_v30, 4  ;;  %v1585_v5 = vsel %vm980_vm8, 0.0, %v1584_v37 }
 0x459   : > { %v1970_v34 = vadd.f32 %v4126_v9, %v1969_v28  ;;  %v2023_v11 = vor.u32 1.1754944e-38, %v2022_v16  ;;  %vm2021_vm4 = vcmp.eq.f32.partialorder %v2020_v52, 8.507059e+37 }
 0x45a   : > { %v4128_v35 = vpop.eup %4127  ;;  %v1582_v40 = vrot.slane %v1567_v25, 4  ;;  %v1587_v62 = vsel %vm980_vm8, 0.0, %v1586_v63  ;;  %v1653_v45 = vsel %vm980_vm8, %v1586_v63, %v1575_v56  ;;  %v1581_v46 = vsel %vm980_vm8, 0.0, %v1580_v29 }
 0x45b   : > { %v1974_v61 = vsel %vm1973_vm0, %v4126_v9, %v1970_v34  ;;  %v2012_v23 = vmul.f32 %v4128_v35, %v5078_v8  ;;  %v1657_v19 = vperm.slane %v1653_v45, %v4682_v15  ;;  %v1658_v43 = vrot.slane %v1587_v62, 4 }
 0x45c   : > { %v1979_v41 = vsel %vm1976_vm15, %v1978_v36, %v1974_v61  ;;  %v1583_v24 = vsel %vm980_vm8, 0.0, %v1582_v40  ;;  %v1642_v42 = vsel %vm980_vm8, %v1582_v40, %v1563_v30  ;;  %vm2017_vm1 = vweird.f32 %v4128_v35 }
 0x45d   : > { %v1980_v26 = vmul.f32 %v4986_v20, %v1979_v41  ;;  %v1647_v3 = vrot.slane %v1583_v24, 4  ;;  %v2013_v4 = vsub.f32 1.0, %v2012_v23  ;;  %v1678_v47 = vrot.slane %v1657_v19, 4  ;;  %vm2018_vm3 = vmor %vm2016_vm2, %vm2017_vm1 }
 0x45e   : > { %v1646_v55 = vperm.slane %v1642_v42, %v4682_v15  ;;  %v1659_v18 = vsel %vm980_vm8, %v1658_v43, %v1585_v5 }
 0x45f   : > { %v2014_v48 = vmul.f32 %v4128_v35, %v2013_v4  ;;  %v2058_v44 = vpack.c.bf16 %v1980_v26, %v1980_v26  ;;  %v1648_v49 = vsel %vm980_vm8, %v1647_v3, %v1581_v46  ;;  %v1663_v50 = vperm.slane %v1659_v18, %v4682_v15 }
 0x460   : > { %v1652_v20 = vperm.slane %v1648_v49, %v4682_v15  ;;  %v1666_v27 = vrot.slane %v1646_v55, 4 }
 0x461   : > { %v2015_v51 = vadd.f32 %v4128_v35, %v2014_v48  ;;  %3606 = vmatmul.msk.bf16.vlgmr.msra.gmra.mxu3 %vm1863_vm11, %v2058_v44  ;;  %v1676_v54 = vrot.slane %v1663_v50, 4  ;;  %v1679_v59 = vsel %vm980_vm8, %v1663_v50, %v1678_v47 }
 0x462   : > { %v1667_v58 = vsel %vm980_vm8, %v1652_v20, %v1666_v27  ;;  %v1664_v9 = vrot.slane %v1652_v20, 4  ;;  %v1687_v1 = vperm.slane %v1679_v59, %v4691_v31 }
 0x463   : > { %v1675_v13 = vperm.slane %v1667_v58, %v4691_v31  ;;  %v2019_v6 = vsel %vm2018_vm3, %v4128_v35, %v2015_v51  ;;  %v1677_v17 = vsel %vm980_vm8, %v1676_v54, %v1657_v19 }
 0x464   : > { %v1665_v2 = vsel %vm980_vm8, %v1664_v9, %v1646_v55  ;;  %v1692_v8 = vrot.slane %v1687_v1, 4  ;;  %v1683_v33 = vperm.slane %v1677_v17, %v4691_v31  ;;  %v2024_v14 = vsel %vm2021_vm4, %v2023_v11, %v2019_v6 }
 0x465   : > { %v1671_v39 = vperm.slane %v1665_v2, %v4691_v31  ;;  %v1694_v12 = vrot.slane %v1675_v13, 4  ;;  %v2025_v34 = vmul.f32 %v4991_v60, %v2024_v14 }
 0x466   : > { %v1693_v38 = vsel %vm980_vm8, %v1692_v8, %v1675_v13  ;;  %v1688_v30 = vrot.slane %v1683_v33, 4 }
 0x467   : > { %v1690_v22 = vrot.slane %v1671_v39, 4  ;;  %v1702_v56 = vpack.c.bf16 %v1693_v38, %v1693_v38  ;;  %v1695_v28 = vsel %vm980_vm8, %v1687_v1, %v1694_v12  ;;  %v2061_v61 = vpack.c.bf16 %v2025_v34, %v2025_v34 }
 0x468   : > { %v1689_v0 = vsel %vm980_vm8, %v1688_v30, %v1671_v39  ;;  %v1703_v7 = vpack.c.bf16 %v1695_v28, %v1695_v28 }
 0x469   : > { %v1691_v25 = vsel %vm980_vm8, %v1683_v33, %v1690_v22  ;;  %v2183_v63 = vsel %vm2067_vm12, %v1702_v56, 0  ;;  %v1700_v35 = vpack.c.bf16 %v1689_v0, %v1689_v0 }
 0x46a   : > { %v1701_v36 = vpack.c.bf16 %v1691_v25, %v1691_v25  ;;  %2192 = vmatpush.bf16.msrb.mxu3 %v2183_v63  ;;  %v2202_v29 = vsel %vm2067_vm12, %v1703_v7, 0 }
 0x46b   : > { %v2145_v40 = vsel %vm2067_vm12, %v1700_v35, 0  ;;  %2211 = vmatpush.bf16.msra.mxu0 %v2202_v29 }
 0x46c   : > { %v2164_v37 = vsel %vm2067_vm12, %v1701_v36, 0  ;;  %2154 = vmatpush.bf16.msra.mxu1 %v2145_v40 }
 0x46d   : > { %2173 = vmatpush.bf16.msra.mxu2 %v2164_v37 }
 0x470   : > { %3609 = vmatmul.msk.bf16.vlgmr.msra.gmra.mxu2 %vm1863_vm11, %v2061_v61 }
 0x47a   : > { %v1926_v62 = vpop.xlane.xlu0 %1925  ;;  %v1932_v45 = vpop.xlane.xlu2 %1931 }
 0x47b   : > { %4129 = vrcp.f32 %v1926_v62  ;;  %v2007_v26 = vand.u32 2147483648, %v1926_v62  ;;  %v2005_v4 = vand.u32 2147483647, %v1926_v62  ;;  %v2037_v46 = vand.u32 2147483648, %v1932_v45 }
 0x47c   : > { %4131 = vrcp.f32 %v1932_v45  ;;  %v2035_v47 = vand.u32 2147483647, %v1932_v45  ;;  %vm2001_vm6 = vweird.f32 %v1926_v62  ;;  %vm2031_vm10 = vweird.f32 %v1932_v45 }
 0x47d   : > { %v2008_v48 = vor.u32 1.1754944e-38, %v2007_v26  ;;  %vm2006_vm13 = vcmp.eq.f32.partialorder %v2005_v4, 8.507059e+37  ;;  %v2038_v50 = vor.u32 1.1754944e-38, %v2037_v46 }
 0x47e   : > { %vm2036_vm15 = vcmp.eq.f32.partialorder %v2035_v47, 8.507059e+37 }
 0x481   : > { %v4130_v60 = vpop.eup %4129 }
 0x482   : > { %v4132_v23 = vpop.eup %4131  ;;  %v1997_v41 = vmul.f32 %v4130_v60, %v1926_v62  ;;  %v1935_v24 = vpop.xlane.xlu2 %1934  ;;  %vm2002_vm12 = vweird.f32 %v4130_v60 }
 0x483   : > { %v2027_v42 = vmul.f32 %v4132_v23, %v1932_v45  ;;  %4133 = vrcp.f32 %v1935_v24  ;;  %vm2032_vm5 = vweird.f32 %v4132_v23  ;;  %vm2003_vm7 = vmor %vm2001_vm6, %vm2002_vm12  ;;  %v2052_v59 = vand.u32 2147483648, %v1935_v24 }
 0x484   : > { %v1998_v19 = vsub.f32 1.0, %v1997_v41  ;;  %vm2033_vm14 = vmor %vm2031_vm10, %vm2032_vm5  ;;  %v2050_v13 = vand.u32 2147483647, %v1935_v24  ;;  %vm2046_vm1 = vweird.f32 %v1935_v24 }
 0x485   : > { %v2028_v3 = vsub.f32 1.0, %v2027_v42  ;;  %v2053_v17 = vor.u32 1.1754944e-38, %v2052_v59 }
 0x486   : > { %v1999_v43 = vmul.f32 %v4130_v60, %v1998_v19  ;;  %vm2051_vm3 = vcmp.eq.f32.partialorder %v2050_v13, 8.507059e+37 }
 0x487   : > { %v2029_v5 = vmul.f32 %v4132_v23, %v2028_v3 }
 0x488   : > { %v2000_v55 = vadd.f32 %v4130_v60, %v1999_v43 }
 0x489   : > { %v4134_v18 = vpop.eup %4133  ;;  %v2030_v44 = vadd.f32 %v4132_v23, %v2029_v5 }
 0x48a   : > { %v2004_v49 = vsel %vm2003_vm7, %v4130_v60, %v2000_v55  ;;  %v2042_v20 = vmul.f32 %v4134_v18, %v1935_v24  ;;  %vm2047_vm0 = vweird.f32 %v4134_v18 }
 0x48b   : > { %v2009_v27 = vsel %vm2006_vm13, %v2008_v48, %v2004_v49  ;;  %v2034_v51 = vsel %vm2033_vm14, %v4132_v23, %v2030_v44  ;;  %vm2048_vm2 = vmor %vm2046_vm1, %vm2047_vm0 }
 0x48c   : > { %v2010_v52 = vmul.f32 %v5048_v53, %v2009_v27  ;;  %v2039_v16 = vsel %vm2036_vm15, %v2038_v50, %v2034_v51  ;;  %v2043_v54 = vsub.f32 1.0, %v2042_v20 }
 0x48d   : > { %v2040_v58 = vmul.f32 %v5050_v32, %v2039_v16 }
 0x48e   : > { %v2044_v9 = vmul.f32 %v4134_v18, %v2043_v54  ;;  %v2060_v1 = vpack.c.bf16 %v2010_v52, %v2010_v52 }
 0x48f   : > { %v2062_v6 = vpack.c.bf16 %v2040_v58, %v2040_v58 }
 0x490   : > { %v2045_v2 = vadd.f32 %v4134_v18, %v2044_v9  ;;  %3608 = vmatmul.msk.bf16.vlgmr.msra.gmra.mxu1 %vm1863_vm11, %v2060_v1 }
 0x491   : > { %3610 = vmatmul.msk.bf16.vlgmr.msrb.gmra.mxu3 %vm1863_vm11, %v2062_v6 }
 0x492   : > { %v2049_v11 = vsel %vm2048_vm2, %v4134_v18, %v2045_v2 }
 0x493   : > { %v2054_v53 = vsel %vm2051_vm3, %v2053_v17, %v2049_v11 }
 0x494   : > { %v2055_v8 = vmul.f32 %v5056_v57, %v2054_v53 }
 0x496   : > { %v2063_v32 = vpack.c.bf16 %v2055_v8, %v2055_v8 }
 0x498   : > { %3611 = vmatmul.msk.bf16.vlgmr.msra.gmra.mxu0 %vm1863_vm11, %v2063_v32  ;;  %vm2466_vm11 = vcmask 785408  }
 0x4b7   : > { %v2137_v39 = vpop.f32.mrf.mxu0 }
 0x4b8   : > { %v2229_v38 = vrot.slane %v2137_v39, 4 }
 0x4be   : > { %v2080_v33 = vpop.f32.mrf.mxu1 }
 0x4bf   : > { %v2139_v12 = vpop.f32.mrf.mxu0  ;;  %v2219_v25 = vrot.slane %v2080_v33, 4 }
 0x4c6   : > { %v2082_v14 = vpop.f32.mrf.mxu1 }
 0x4d5   : > { %v2099_v30 = vpop.f32.mrf.mxu2 }
 0x4d6   : > { %v2230_v22 = vsel %vm980_vm8, %v2229_v38, %v2099_v30  ;;  %v2231_v56 = vrot.slane %v2099_v30, 4 }
 0x4d7   : > { %v2236_v57 = vperm.slane %v2230_v22, %v4682_v15 }
 0x4d8   : > { %v2232_v0 = vsel %vm980_vm8, %v2137_v39, %v2231_v56 }
 0x4d9   : > { %v2240_v7 = vperm.slane %v2232_v0, %v4682_v15  ;;  %v2241_v37 = vrot.slane %v2236_v57, 4 }
 0x4db   : > { %v2253_v36 = vrot.slane %v2240_v7, 4 }
 0x4dd   : > { %v2101_v28 = vpop.f32.mrf.mxu2 }
 0x4e4   : > { %v2118_v34 = vpop.f32.mrf.mxu3 }
 0x4e5   : > { %v2217_v63 = vrot.slane %v2118_v34, 4  ;;  %v2220_v35 = vsel %vm980_vm8, %v2118_v34, %v2219_v25 }
 0x4e6   : > { %v2228_v29 = vperm.slane %v2220_v35, %v4682_v15 }
 0x4e7   : > { %v2218_v40 = vsel %vm980_vm8, %v2217_v63, %v2080_v33 }
 0x4e8   : > { %v2224_v61 = vperm.slane %v2218_v40, %v4682_v15  ;;  %v2254_v62 = vsel %vm980_vm8, %v2253_v36, %v2228_v29  ;;  %v2255_v45 = vrot.slane %v2228_v29, 4 }
 0x4e9   : > { %v2260_v60 = vperm.slane %v2254_v62, %v4691_v31 }
 0x4ea   : > { %v2242_v23 = vsel %vm980_vm8, %v2241_v37, %v2224_v61  ;;  %v2243_v41 = vrot.slane %v2224_v61, 4  ;;  %v2256_v24 = vsel %vm980_vm8, %v2240_v7, %v2255_v45 }
 0x4eb   : > { %v2248_v42 = vperm.slane %v2242_v23, %v4691_v31  ;;  %v2264_v19 = vperm.slane %v2256_v24, %v4691_v31  ;;  %v2269_v4 = vrot.slane %v2260_v60, 4 }
 0x4ec   : > { %v2244_v26 = vsel %vm980_vm8, %v2236_v57, %v2243_v41  ;;  %v2120_v3 = vpop.f32.mrf.mxu3 }
 0x4ed   : > { %v2252_v43 = vperm.slane %v2244_v26, %v4691_v31  ;;  %v2271_v46 = vrot.slane %v2264_v19, 4  ;;  %v2265_v5 = vrot.slane %v2248_v42, 4  ;;  %v2270_v50 = vsel %vm980_vm8, 0.0, %v2269_v4 }
 0x4ef   : > { %v2267_v47 = vrot.slane %v2252_v43, 4  ;;  %v2272_v55 = vsel %vm980_vm8, 0.0, %v2271_v46  ;;  %v2340_v18 = vsel %vm980_vm8, %v2271_v46, %v2260_v60  ;;  %v2266_v54 = vsel %vm980_vm8, 0.0, %v2265_v5 }
 0x4f0   : > { %v2344_v48 = vperm.slane %v2340_v18, %v4682_v15  ;;  %v2345_v44 = vrot.slane %v2272_v55, 4 }
 0x4f1   : > { %v2268_v49 = vsel %vm980_vm8, 0.0, %v2267_v47  ;;  %v2329_v20 = vsel %vm980_vm8, %v2267_v47, %v2248_v42 }
 0x4f2   : > { %v2334_v27 = vrot.slane %v2268_v49, 4  ;;  %v2346_v51 = vsel %vm980_vm8, %v2345_v44, %v2270_v50  ;;  %v2365_v52 = vrot.slane %v2344_v48, 4  ;;  %v2333_v16 = vperm.slane %v2329_v20, %v4682_v15 }
 0x4f3   : > { %v2350_v58 = vperm.slane %v2346_v51, %v4682_v15  ;;  %v2175_v59 = vpop.f32.mrf.mxu2 }
 0x4f4   : > { %v2335_v9 = vsel %vm980_vm8, %v2334_v27, %v2266_v54  ;;  %v2353_v13 = vrot.slane %v2333_v16, 4  ;;  %v2287_v63 = vrot.slane %v2175_v59, 4 }
 0x4f5   : > { %v2339_v1 = vperm.slane %v2335_v9, %v4682_v15  ;;  %v2366_v6 = vsel %vm980_vm8, %v2350_v58, %v2365_v52  ;;  %v2363_v2 = vrot.slane %v2350_v58, 4 }
 0x4f6   : > { %v2374_v17 = vperm.slane %v2366_v6, %v4691_v31 }
 0x4f7   : > { %v2354_v11 = vsel %vm980_vm8, %v2339_v1, %v2353_v13  ;;  %v2351_v53 = vrot.slane %v2339_v1, 4  ;;  %v2364_v8 = vsel %vm980_vm8, %v2363_v2, %v2344_v48 }
 0x4f8   : > { %v2362_v32 = vperm.slane %v2354_v11, %v4691_v31  ;;  %v2379_v39 = vrot.slane %v2374_v17, 4  ;;  %v2370_v33 = vperm.slane %v2364_v8, %v4691_v31 }
 0x4f9   : > { %v2352_v12 = vsel %vm980_vm8, %v2351_v53, %v2333_v16 }
 0x4fa   : > { %v5166_v14 = vsel %vm980_vm8, %v2379_v39, %v2362_v32  ;;  %v2358_v38 = vperm.slane %v2352_v12, %v4691_v31  ;;  %v2375_v30 = vrot.slane %v2370_v33, 4  ;;  %v2381_v22 = vrot.slane %v2362_v32, 4 }
 0x4fb   : > { %v2177_v56 = vpop.f32.mrf.mxu2 }
 0x4fc   : > { %v2377_v28 = vrot.slane %v2358_v38, 4  ;;  %v5170_v0 = vsel %vm980_vm8, %v2374_v17, %v2381_v22  ;;  %v5173_v7 = vsel %vm980_vm8, %v2375_v30, %v2358_v38 }
 0x4fe   : > { %v5176_v25 = vsel %vm980_vm8, %v2370_v33, %v2377_v28 }
 0x50d   : > { %v2156_v57 = vpop.f32.mrf.mxu1 }
 0x50e   : > { %v2275_v34 = vrot.slane %v2156_v57, 4 }
 0x514   : > { %v2194_v35 = vpop.f32.mrf.mxu3 }
 0x515   : > { %v2273_v36 = vrot.slane %v2194_v35, 4  ;;  %v2276_v29 = vsel %vm980_vm8, %v2194_v35, %v2275_v34  ;;  %v2158_v40 = vpop.f32.mrf.mxu1  ;;  %v2213_v37 = vpop.f32.mrf.mxu0 }
 0x516   : > { %v2284_v61 = vperm.slane %v2276_v29, %v4682_v15  ;;  %v2285_v62 = vrot.slane %v2213_v37, 4  ;;  %v2288_v45 = vsel %vm980_vm8, %v2213_v37, %v2287_v63 }
 0x517   : > { %v2274_v60 = vsel %vm980_vm8, %v2273_v36, %v2156_v57  ;;  %v2296_v23 = vperm.slane %v2288_v45, %v4682_v15 }
 0x518   : > { %v2280_v41 = vperm.slane %v2274_v60, %v4682_v15  ;;  %v2311_v24 = vrot.slane %v2284_v61, 4  ;;  %v2286_v42 = vsel %vm980_vm8, %v2285_v62, %v2175_v59 }
 0x519   : > { %v2292_v19 = vperm.slane %v2286_v42, %v4682_v15  ;;  %v2309_v26 = vrot.slane %v2296_v23, 4  ;;  %v3935_v42 = vld [vmem:[%s4528_s9 + $0x20] sm:$0xff] }
 0x51a   : > { %v2299_v3 = vrot.slane %v2280_v41, 4  ;;  %v2312_v43 = vsel %vm980_vm8, %v2296_v23, %v2311_v24  ;;  %v3938_v23 = vld [vmem:[%s4528_s9 + $0x38] sm:$0xff]  ;;  %v3936_v24 = vld [vmem:[%s4528_s9 + $0x28] sm:$0xff] }
 0x51b   : > { %v2297_v4 = vrot.slane %v2292_v19, 4  ;;  %v2310_v46 = vsel %vm980_vm8, %v2309_v26, %v2284_v61  ;;  %v2320_v5 = vperm.slane %v2312_v43, %v4691_v31  ;;  %2538 = vmatpush.bf16.msrb.mxu1 %v3938_v23  ;;  %v3932_v26 = vld [vmem:[%s4528_s9 + $0x8] sm:$0xff] }
 0x51c   : > { %v2300_v47 = vsel %vm980_vm8, %v2292_v19, %v2299_v3  ;;  %v2316_v55 = vperm.slane %v2310_v46, %v4691_v31  ;;  %v2196_v18 = vpop.f32.mrf.mxu3  ;;  %v3933_v19 = vld [vmem:[%s4528_s9 + $0x10] sm:$0xff]  ;;  %v3931_v3 = vld [vmem:[%s4528_s9] sm:$0xff]  ;;  %v3964_v23 = vld [vmem:[%s4510_s13 + $0xcc] sm:$0xf] }
 0x51d   : > { %v2298_v48 = vsel %vm980_vm8, %v2297_v4, %v2280_v41  ;;  %v2308_v44 = vperm.slane %v2300_v47, %v4691_v31  ;;  %v2327_v49 = vrot.slane %v2320_v5, 4  ;;  %v2215_v50 = vpop.f32.mrf.mxu0  ;;  %v3937_v41 = vld [vmem:[%s4528_s9 + $0x30] sm:$0xff] }
 0x51e   : > { %v2304_v20 = vperm.slane %v2298_v48, %v4691_v31  ;;  %v2325_v27 = vrot.slane %v2316_v55, 4 }
 0x51f   : > { %v2323_v51 = vrot.slane %v2308_v44, 4  ;;  %v2328_v52 = vsel %vm980_vm8, 0.0, %v2327_v49  ;;  %v2394_v16 = vsel %vm980_vm8, %v2327_v49, %v2316_v55  ;;  %2539 = vmatpush.bf16.msrb.mxu1 %v3937_v41  ;;  %v3752_v41 = vld [vmem:[%s4510_s13 + $0xd8] sm:$0xf0] }
 0x520   : > { %v2321_v54 = vrot.slane %v2304_v20, 4  ;;  %v2326_v58 = vsel %vm980_vm8, 0.0, %v2325_v27  ;;  %v2398_v59 = vperm.slane %v2394_v16, %v4682_v15  ;;  %v2399_v9 = vrot.slane %v2328_v52, 4 }
 0x521   : > { %v2324_v13 = vsel %vm980_vm8, 0.0, %v2323_v51  ;;  %v2383_v1 = vsel %vm980_vm8, %v2323_v51, %v2304_v20 }
 0x522   : > { %v2388_v6 = vrot.slane %v2324_v13, 4  ;;  %v2400_v2 = vsel %vm980_vm8, %v2399_v9, %v2326_v58  ;;  %v2419_v17 = vrot.slane %v2398_v59, 4  ;;  %v2322_v11 = vsel %vm980_vm8, 0.0, %v2321_v54  ;;  %v4155_v58 = vld [vmem:[%s5525_s12] sm:$0xff] }
 0x523   : > { %v2404_v53 = vperm.slane %v2400_v2, %v4682_v15  ;;  %v2387_v8 = vperm.slane %v2383_v1, %v4682_v15  ;;  %2540 = vmatpush.bf16.msrb.mxu1 %v3936_v24  ;;  %v4156_v1 = vld [vmem:[%s5525_s12 + $0x8] sm:$0xff]  ;;  %v3755_v24 = vor.u32 %v3964_v23, %v3752_v41  ;;  %v3664_v41 = vld [vmem:[%s4510_s13 + $0x30] sm:$0xf0] }
 0x524   : > { %v2389_v32 = vsel %vm980_vm8, %v2388_v6, %v2322_v11 }
 0x525   : > { %v2393_v39 = vperm.slane %v2389_v32, %v4682_v15  ;;  %v2407_v33 = vrot.slane %v2387_v8, 4  ;;  %v2420_v12 = vsel %vm980_vm8, %v2404_v53, %v2419_v17  ;;  %v2417_v38 = vrot.slane %v2404_v53, 4 }
 0x526   : > { %v2428_v30 = vperm.slane %v2420_v12, %v4691_v31  ;;  %v3758_v12 = vld [vmem:[%s4510_s13 + $0xe0] sm:$0xf] }
 0x527   : > { %v2408_v22 = vsel %vm980_vm8, %v2393_v39, %v2407_v33  ;;  %v2405_v56 = vrot.slane %v2393_v39, 4  ;;  %v2418_v28 = vsel %vm980_vm8, %v2417_v38, %v2398_v59  ;;  %2541 = vmatpush.bf16.msrb.mxu1 %v3935_v42  ;;  %v3969_v38 = vld [vmem:[%s4510_s13 + $0xec] sm:$0xf0]  ;;  %v3726_v42 = vld [vmem:[%s4510_s13 + $0xa0] sm:$0xf] }
 0x528   : > { %v2416_v57 = vperm.slane %v2408_v22, %v4691_v31  ;;  %v2433_v34 = vrot.slane %v2428_v30, 4  ;;  %v2424_v63 = vperm.slane %v2418_v28, %v4691_v31  ;;  %v3759_v22 = vor.u32 %v3969_v38, %v3758_v12  ;;  %v3766_v28 = vld [vmem:[%s4510_s13 + $0xe8] sm:$0xf]  ;;  %v3952_v12 = vld [vmem:[%s4510_s13 + $0x6c] sm:$0xf] }
 0x529   : > { %v2406_v35 = vsel %vm980_vm8, %v2405_v56, %v2387_v8  ;;  %v3760_v56 = vld [vmem:[%s4510_s13 + $0xf0] sm:$0xf0] }
 0x52a   : > { %v2434_v15 = vsel %vm980_vm8, %v2433_v34, %v2416_v57  ;;  %v2412_v36 = vperm.slane %v2406_v35, %v4691_v31  ;;  %v2429_v29 = vrot.slane %v2424_v63, 4  ;;  %v2435_v60 = vrot.slane %v2416_v57, 4  ;;  %v3970_v57 = vld [vmem:[%s4510_s13 + $0xf4] sm:$0xf0]  ;;  %v3968_v35 = vld [vmem:[%s4510_s13 + $0xec] sm:$0xf]  ;;  %2809 = vmatpush.bf16.msrb.mxu2 %v3759_v22 }
 0x52b   : > { %v4074_v40 = vpack.i.bf16 %v2434_v15, %v5166_v14  ;;  %v3768_v15 = vld [vmem:[%s4510_s13 + $0xf8] sm:$0xf0] }
 0x52c   : > { %v2431_v37 = vrot.slane %v2412_v36, 4  ;;  %v2430_v61 = vsel %vm980_vm8, %v2429_v29, %v2412_v36  ;;  %v2436_v31 = vsel %vm980_vm8, %v2428_v30, %v2435_v60  ;;  %v3967_v30 = vld [vmem:[%s4510_s13 + $0xe4] sm:$0xf]  ;;  %v3771_v36 = vor.u32 %v3968_v35, %v3768_v15  ;;  %v3742_v29 = vld [vmem:[%s4510_s13 + $0xc0] sm:$0xf] }
 0x52d   : > { %4075 = vrot.lane.b32.xlu2 %v4074_v40, %s4303_s14  ;;  %v4084_v14 = vpack.i.bf16 %v2436_v31, %v5170_v0  ;;  %v3763_v34 = vor.u32 %v3967_v30, %v3760_v56  ;;  %v3965_v40 = vld [vmem:[%s4510_s13 + $0xcc] sm:$0xf0]  ;;  %v3966_v60 = vld [vmem:[%s4510_s13 + $0xd4] sm:$0xf0]  ;;  %v3704_v22 = vld [vmem:[%s4510_s13 + $0x78] sm:$0xf0] }
 0x52e   : > { %v2432_v62 = vsel %vm980_vm8, %v2424_v63, %v2431_v37  ;;  %vm2463_vm8 = vcmask 523264   ;;  %v3767_v63 = vor.u32 %v3970_v57, %v3766_v28  ;;  %v3963_v37 = vld [vmem:[%s4510_s13 + $0xc4] sm:$0xf]  ;;  %v3678_v56 = vld [vmem:[%s4510_s13 + $0x40] sm:$0xf]  ;;  %v3707_v57 = vor.u32 %v3952_v12, %v3704_v22 }
 0x52f   : > { %v4079_v45 = vpack.i.bf16 %v2432_v62, %v5176_v25  ;;  %v3934_v25 = vld [vmem:[%s4528_s9 + $0x18] sm:$0xff]  ;;  %2823 = vmatpush.bf16.msra.mxu3 %v3763_v34  ;;  %v3744_v62 = vld [vmem:[%s4510_s13 + $0xd0] sm:$0xf0]  ;;  %v3949_v28 = vld [vmem:[%s4510_s13 + $0x4c] sm:$0xf0] }
 0x530   : > { %2542 = vmatpush.bf16.msrb.mxu1 %v3934_v25  ;;  %2837 = vmatpush.bf16.msrb.mxu0 %v3767_v63  ;;  %v3747_v31 = vor.u32 %v3963_v37, %v3744_v62  ;;  %v3961_v25 = vld [vmem:[%s4510_s13 + $0xac] sm:$0xf0]  ;;  %v3947_v34 = vld [vmem:[%s4510_s13 + $0x44] sm:$0xf]  ;;  %v3680_v63 = vld [vmem:[%s4510_s13 + $0x50] sm:$0xf0]  ;;  %v3679_v37 = vor.u32 %v3949_v28, %v3678_v56 }
 0x531   : > { %4080 = vrot.lane.b32.xlu1 %v4079_v45, %s4301_s21  ;;  %v3750_v45 = vld [vmem:[%s4510_s13 + $0xc8] sm:$0xf]  ;;  %v3950_v15 = vld [vmem:[%s4510_s13 + $0x54] sm:$0xf0]  ;;  %v3683_v62 = vor.u32 %v3947_v34, %v3680_v63  ;;  %v4092_v12 = vld [vmem:[%s5528_s15] ss:$0 sm:$0xff] }
 0x532   : > { %v3686_v35 = vld [vmem:[%s4510_s13 + $0x48] sm:$0xf]  ;;  %v4002_v63 = vld [vmem:[%s4556_s26 + $0xf8] sm:$0xff] }
 0x533   : > { %2824 = vmatpush.bf16.msra.mxu3 %v3747_v31  ;;  %v3945_v31 = vld [vmem:[%s4510_s13 + $0x2c] sm:$0xf0] }
 0x534   : > { %2543 = vmatpush.bf16.msrb.mxu1 %v3933_v19  ;;  %v3959_v19 = vld [vmem:[%s4510_s13 + $0xa4] sm:$0xf] }
 0x538   : > { %2544 = vmatpush.bf16.msrb.mxu1 %v3932_v26  ;;  %v3727_v26 = vor.u32 %v3961_v25, %v3726_v42  ;;  %v3946_v42 = vld [vmem:[%s4510_s13 + $0x34] sm:$0xf0] }
 0x539   : > { %4085 = vrot.lane.b32.xlu1 %v4084_v14, %s4302_s20  ;;  %v3751_v14 = vor.u32 %v3966_v60, %v3750_v45  ;;  %v3687_v45 = vor.u32 %v3950_v15, %v3686_v35  ;;  %v3662_v60 = vld [vmem:[%s4510_s13 + $0x20] sm:$0xf]  ;;  %v3993_v35 = vld [vmem:[%s4556_s26 + $0xb0] sm:$0xff]  ;;  %s5531_s20 = sld [smem:[#allocation19_spill]] (!%p3900_p10) }
 0x53a   : > { %v4001_v15 = vld [vmem:[%s4556_s26 + $0xf0] sm:$0xff] }
 0x53b   : > { %2838 = vmatpush.bf16.msrb.mxu0 %v3751_v14  ;;  %v3943_v14 = vld [vmem:[%s4510_s13 + $0x24] sm:$0xf] }
 0x53c   : > { %2545 = vmatpush.bf16.msrb.mxu1 %v3931_v3  ;;  %v3728_v3 = vld [vmem:[%s4510_s13 + $0xb0] sm:$0xf0] }
 0x540   : > { %2851 = vmatpush.bf16.msra.mxu1 %v3771_v36  ;;  %v3948_v36 = vld [vmem:[%s4510_s13 + $0x4c] sm:$0xf] }
 0x544   : > { %2852 = vmatpush.bf16.msra.mxu1 %v3755_v24  ;;  %v3670_v24 = vld [vmem:[%s4510_s13 + $0x28] sm:$0xf] }
 0x587   : > { %v4076_v46 = vpop.permute.xlu2 %4075 }
 0x588   : > { %v4078_v55 = vunpack.i.h.bf16 %v4076_v46  ;;  %v4077_v18 = vunpack.i.l.bf16 %v4076_v46 }
 0x5a3   : > { %v4081_v0 = vpop.permute.xlu1 %4080 }
 0x5a4   : > { %v4083_v43 = vunpack.i.h.bf16 %v4081_v0  ;;  %v4082_v4 = vunpack.i.l.bf16 %v4081_v0  ;;  %v3734_v0 = vld [vmem:[%s4510_s13 + $0xa8] sm:$0xf] }
 0x5a6   : > { %v2461_v5 = vsel %vm1710_vm9, %v5173_v7, %v4082_v4  ;;  %v2462_v47 = vsel %vm1710_vm9, %v2430_v61, %v4083_v43  ;;  %v4091_v7 = vld [vmem:[%s5527_s25] ss:$0 sm:$0xff]  ;;  %v3743_v61 = vor.u32 %v3965_v40, %v3742_v29  ;;  %v3962_v43 = vld [vmem:[%s4510_s13 + $0xb4] sm:$0xf0]  ;;  %v3731_v4 = vor.u32 %v3959_v19, %v3728_v3  ;;  %v3688_v29 = vld [vmem:[%s4510_s13 + $0x58] sm:$0xf0] }
 0x5a7   : > { %v2464_v50 = vsel %vm2463_vm8, %v2461_v5, %v4077_v18  ;;  %v2465_v20 = vsel %vm2463_vm8, %v2462_v47, %v4078_v55  ;;  %v3735_v46 = vor.u32 %v3962_v43, %v3734_v0  ;;  %v3960_v5 = vld [vmem:[%s4510_s13 + $0xac] sm:$0xf]  ;;  %v3736_v47 = vld [vmem:[%s4510_s13 + $0xb8] sm:$0xf0]  ;;  %v3710_v55 = vld [vmem:[%s4510_s13 + $0x80] sm:$0xf]  ;;  %v3691_v23 = vor.u32 %v3948_v36, %v3688_v29 }
 0x5a8   : > { %2810 = vmatpush.bf16.msrb.mxu2 %v3743_v61  ;;  %2825 = vmatpush.bf16.msra.mxu3 %v3731_v4  ;;  %v3672_v3 = vld [vmem:[%s4510_s13 + $0x38] sm:$0xf0]  ;;  %v3663_v43 = vor.u32 %v3945_v31, %v3662_v60  ;;  %v3667_v4 = vor.u32 %v3943_v14, %v3664_v41  ;;  %v3999_v60 = vld [vmem:[%s4556_s26 + $0xe0] sm:$0xff]  ;;  %v3976_v14 = vld [vmem:[%s4556_s26 + $0x28] sm:$0xff] }
 0x5a9   : > { %2839 = vmatpush.bf16.msrb.mxu0 %v3735_v46  ;;  %v3671_v46 = vor.u32 %v3946_v42, %v3670_v24  ;;  %v3978_v36 = vld [vmem:[%s4556_s26 + $0x38] sm:$0xff]  ;;  %v5360_v31 = vld [vmem:[%s4550_s1] sm:$0xf] }
 0x5aa   : > { %v3986_v29 = vld [vmem:[%s4556_s26 + $0x78] sm:$0xff]  ;;  %v2643_v42 = vperm.slane %v5360_v31, 2 }
 0x5ab   : > { %v4086_v48 = vpop.permute.xlu1 %4085  ;;  %v3990_v41 = vld [vmem:[%s4556_s26 + $0x98] sm:$0xff] }
 0x5ac   : > { %v4088_v44 = vunpack.i.h.bf16 %v4086_v48  ;;  %v4087_v49 = vunpack.i.l.bf16 %v4086_v48  ;;  %2811 = vmatpush.bf16.msrb.mxu2 %v3727_v26  ;;  %v3739_v48 = vor.u32 %v3960_v5, %v3736_v47  ;;  %v3944_v26 = vld [vmem:[%s4510_s13 + $0x2c] sm:$0xf]  ;;  %v3646_v5 = vld [vmem:[%s4510_s13] sm:$0xf]  ;;  %v3941_v47 = vld [vmem:[%s4510_s13 + $0xc] sm:$0xf0] }
 0x5ad   : > { %v3998_v24 = vld [vmem:[%s4556_s26 + $0xd8] sm:$0xff] }
 0x5ae   : > { %v2467_v27 = vsel %vm2466_vm11, %v2464_v50, %v4087_v49  ;;  %v2468_v51 = vsel %vm2466_vm11, %v2465_v20, %v4088_v44  ;;  %v3957_v44 = vld [vmem:[%s4510_s13 + $0x8c] sm:$0xf0]  ;;  %v3955_v49 = vld [vmem:[%s4510_s13 + $0x84] sm:$0xf]  ;;  %v3712_v50 = vld [vmem:[%s4510_s13 + $0x90] sm:$0xf0]  ;;  %2853 = vmatpush.bf16.msra.mxu1 %v3739_v48  ;;  %v3675_v48 = vor.u32 %v3944_v26, %v3672_v3 }
 0x5af   : > { %v2469_v52 = vpack.c.bf16 %v2468_v51, %v2467_v27  ;;  %v3711_v27 = vor.u32 %v3957_v44, %v3710_v55  ;;  %v3715_v51 = vor.u32 %v3955_v49, %v3712_v50  ;;  %v3939_v55 = vld [vmem:[%s4510_s13 + $0x4] sm:$0xf]  ;;  %v3648_v44 = vld [vmem:[%s4510_s13 + $0x10] sm:$0xf0]  ;;  %v3654_v49 = vld [vmem:[%s4510_s13 + $0x8] sm:$0xf] }
 0x5b0   : > { %v3942_v50 = vld [vmem:[%s4510_s13 + $0x14] sm:$0xf0]  ;;  %v3983_v26 = vld [vmem:[%s4556_s26 + $0x60] sm:$0xff]  ;;  %v3989_v3 = vld [vmem:[%s4556_s26 + $0x90] sm:$0xff] }
 0x5b1   : > { %2546 = vmatmul.bf16.vlgmr.msrb.gmra.mxu1 %v2469_v52  ;;  %v3718_v52 = vld [vmem:[%s4510_s13 + $0x88] sm:$0xf]  ;;  %2812 = vmatpush.bf16.msrb.mxu2 %v3711_v27  ;;  %v3656_v27 = vld [vmem:[%s4510_s13 + $0x18] sm:$0xf0] }
 0x5b2   : > { %2826 = vmatpush.bf16.msra.mxu3 %v3715_v51 }
 0x62e   : > { %v2547_v16 = vpop.f32.mrf.mxu1 }
 0x62f   : > { %v2548_v54 = vadd.f32 %v4091_v7, %v2547_v16  ;;  %v3956_v16 = vld [vmem:[%s4510_s13 + $0x8c] sm:$0xf] }
 0x631   : > { %v5243_v59 = vadd.f32 %v4155_v58, %v2548_v54  ;;  %v3720_v58 = vld [vmem:[%s4510_s13 + $0x98] sm:$0xf0] }
 0x633   : > { %2556 = vadd.xlane.f32.xlu1 %v5243_v59 }
 0x636   : > { %v2549_v9 = vpop.f32.mrf.mxu1 }
 0x637   : > { %v2550_v13 = vadd.f32 %v4091_v7, %v2549_v9  ;;  %v3958_v7 = vld [vmem:[%s4510_s13 + $0x94] sm:$0xf0]  ;;  %v3694_v9 = vld [vmem:[%s4510_s13 + $0x60] sm:$0xf] }
 0x638   : > { %v3719_v54 = vor.u32 %v3958_v7, %v3718_v52  ;;  %v3647_v52 = vor.u32 %v3941_v47, %v3646_v5  ;;  %v3651_v7 = vor.u32 %v3939_v55, %v3648_v44  ;;  %v2641_v47 = vperm.slane %v5360_v31, 0 }
 0x639   : > { %v5249_v6 = vadd.f32 %v4156_v1, %v2550_v13  ;;  %v3953_v13 = vld [vmem:[%s4510_s13 + $0x6c] sm:$0xf0]  ;;  %v2642_v55 = vperm.slane %v5360_v31, 1 }
 0x63a   : > { %2840 = vmatpush.bf16.msrb.mxu0 %v3719_v54 }
 0x63b   : > { %2558 = vadd.xlane.f32.xlu2 %v5249_v6 }
 0x6a6   : > { %v2557_v2 = vpop.xlane.xlu1 %2556 }
 0x6a7   : > { %v2560_v17 = vmul.f32 %v2557_v2, %v4577_v10  ;;  %v3723_v2 = vor.u32 %v3956_v16, %v3720_v58  ;;  %v3655_v16 = vor.u32 %v3942_v50, %v3654_v49  ;;  %v3988_v50 = vld [vmem:[%s4556_s26 + $0x88] sm:$0xff] }
 0x6a9   : > { %v5254_v11 = vsub.f32 %v5243_v59, %v2560_v17  ;;  %v3951_v17 = vld [vmem:[%s4510_s13 + $0x64] sm:$0xf]  ;;  %2854 = vmatpush.bf16.msra.mxu1 %v3723_v2 }
 0x6ab   : > { %v2564_v53 = vmul.f32 %v5254_v11, %v5254_v11 }
 0x6ad   : > { %2566 = vadd.xlane.f32.xlu0 %v2564_v53  ;;  %v3696_v53 = vld [vmem:[%s4510_s13 + $0x70] sm:$0xf0]  ;;  %2855 = vmatpush.bf16.msra.mxu1 %v3707_v57 }
 0x6ae   : > { %v2559_v8 = vpop.xlane.xlu2 %2558  ;;  %v3699_v38 = vor.u32 %v3951_v17, %v3696_v53 }
 0x6af   : > { %v2561_v32 = vmul.f32 %v2559_v8, %v4577_v10  ;;  %v3695_v8 = vor.u32 %v3953_v13, %v3694_v9 }
 0x6b0   : > { %2827 = vmatpush.bf16.msra.mxu3 %v3699_v38 }
 0x6b1   : > { %v5260_v39 = vsub.f32 %v5249_v6, %v2561_v32  ;;  %v3702_v32 = vld [vmem:[%s4510_s13 + $0x68] sm:$0xf]  ;;  %2813 = vmatpush.bf16.msrb.mxu2 %v3695_v8  ;;  %2856 = vmatpush.bf16.msra.mxu1 %v3691_v23 }
 0x6b2   : > { %v3984_v23 = vld [vmem:[%s4556_s26 + $0x68] sm:$0xff] }
 0x6b3   : > { %v2565_v33 = vmul.f32 %v5260_v39, %v5260_v39 }
 0x6b4   : > { %2828 = vmatpush.bf16.msra.mxu3 %v3683_v62  ;;  %v3985_v62 = vld [vmem:[%s4556_s26 + $0x70] sm:$0xff] }
 0x6b5   : > { %2568 = vadd.xlane.f32.xlu0 %v2565_v33  ;;  %v3954_v33 = vld [vmem:[%s4510_s13 + $0x74] sm:$0xf0]  ;;  %2814 = vmatpush.bf16.msrb.mxu2 %v3679_v37  ;;  %v4000_v37 = vld [vmem:[%s4556_s26 + $0xe8] sm:$0xff] }
 0x6b6   : > { %v3703_v30 = vor.u32 %v3954_v33, %v3702_v32  ;;  %2857 = vmatpush.bf16.msra.mxu1 %v3675_v48  ;;  %v3982_v48 = vld [vmem:[%s4556_s26 + $0x58] sm:$0xff] }
 0x6b8   : > { %2841 = vmatpush.bf16.msrb.mxu0 %v3703_v30  ;;  %2829 = vmatpush.bf16.msra.mxu3 %v3667_v4 }
 0x6b9   : > { %2815 = vmatpush.bf16.msrb.mxu2 %v3663_v43 }
 0x6bc   : > { %2842 = vmatpush.bf16.msrb.mxu0 %v3687_v45  ;;  %2830 = vmatpush.bf16.msra.mxu3 %v3651_v7  ;;  %v3991_v45 = vld [vmem:[%s4556_s26 + $0xa0] sm:$0xff] }
 0x6bd   : > { %2816 = vmatpush.bf16.msrb.mxu2 %v3647_v52 }
 0x6c0   : > { %2843 = vmatpush.bf16.msrb.mxu0 %v3671_v46  ;;  %3215 = vmatpush.bf16.msrb.mxu3 %v3986_v29 }
 0x6c1   : > { %3201 = vmatpush.bf16.msra.mxu2 %v3978_v36 }
 0x6c4   : > { %2844 = vmatpush.bf16.msrb.mxu0 %v3655_v16  ;;  %3216 = vmatpush.bf16.msrb.mxu3 %v3985_v62 }
 0x6c8   : > { %3217 = vmatpush.bf16.msrb.mxu3 %v3984_v23 }
 0x6cc   : > { %3218 = vmatpush.bf16.msrb.mxu3 %v3983_v26 }
 0x6d0   : > { %3219 = vmatpush.bf16.msrb.mxu3 %v3982_v48 }
 0x720   : > { %v2567_v18 = vpop.xlane.xlu0 %2566 }
 0x721   : > { %v2570_v20 = vmul.f32 %v2567_v18, %v4635_v21 }
 0x723   : > { %v5299_v1 = vadd.f32 1e-05, %v2570_v20  ;;  %v3940_v20 = vld [vmem:[%s4510_s13 + $0xc] sm:$0xf] }
 0x724   : > { %v3659_v58 = vor.u32 %v3940_v20, %v3656_v27  ;;  %v3996_v20 = vld [vmem:[%s4556_s26 + $0xc8] sm:$0xff] }
 0x725   : > { %4135 = vrsqrt.f32 %v5299_v1  ;;  %vm2580_vm4 = vweird.f32 %v5299_v1 }
 0x726   : > { %2858 = vmatpush.bf16.msra.mxu1 %v3659_v58  ;;  %v3973_v58 = vld [vmem:[%s4556_s26 + $0x10] sm:$0xff] }
 0x728   : > { %v2569_v40 = vpop.xlane.xlu0 %2568 }
 0x729   : > { %v2571_v61 = vmul.f32 %v2569_v40, %v4635_v21  ;;  %v3992_v40 = vld [vmem:[%s4556_s26 + $0xa8] sm:$0xff] }
 0x72a   : > { %3243 = vmatpush.bf16.msrb.mxu1 %v4002_v63 }
 0x72b   : > { %v4136_v25 = vpop.eup %4135  ;;  %v2573_v19 = vadd.f32 1e-05, %v2571_v61  ;;  %v3977_v61 = vld [vmem:[%s4556_s26 + $0x30] sm:$0xff] }
 0x72c   : > { %v2575_v0 = vmul.f32 %v4136_v25, %v5299_v1  ;;  %vm2581_vm9 = vweird.f32 %v4136_v25  ;;  %3202 = vmatpush.bf16.msra.mxu2 %v3977_v61 }
 0x72d   : > { %4137 = vrsqrt.f32 %v2573_v19  ;;  %vm2582_vm12 = vmor %vm2580_vm4, %vm2581_vm9  ;;  %vm2590_vm6 = vweird.f32 %v2573_v19 }
 0x72e   : > { %v2576_v18 = vmul.f32 %v4136_v25, %v2575_v0  ;;  %3244 = vmatpush.bf16.msrb.mxu1 %v4001_v15  ;;  %v3997_v0 = vld [vmem:[%s4556_s26 + $0xd0] sm:$0xff] }
 0x730   : > { %v2577_v51 = vmul.f32 0.5, %v2576_v18  ;;  %3203 = vmatpush.bf16.msra.mxu2 %v3976_v14  ;;  %v3974_v18 = vld [vmem:[%s4556_s26 + $0x18] sm:$0xff] }
 0x732   : > { %v2578_v54 = vsub.f32 1.5, %v2577_v51  ;;  %3245 = vmatpush.bf16.msrb.mxu1 %v4000_v37 }
 0x733   : > { %v4138_v9 = vpop.eup %4137 }
 0x734   : > { %v2579_v13 = vmul.f32 %v4136_v25, %v2578_v54  ;;  %v2585_v2 = vmul.f32 %v4138_v9, %v2573_v19  ;;  %vm2591_vm5 = vweird.f32 %v4138_v9  ;;  %v3975_v19 = vld [vmem:[%s4556_s26 + $0x20] sm:$0xff] }
 0x735   : > { %vm2592_vm7 = vmor %vm2590_vm6, %vm2591_vm5  ;;  %3204 = vmatpush.bf16.msra.mxu2 %v3975_v19 }
 0x736   : > { %v2586_v17 = vmul.f32 %v4138_v9, %v2585_v2  ;;  %v2583_v53 = vsel %vm2582_vm12, %v4136_v25, %v2579_v13  ;;  %3246 = vmatpush.bf16.msrb.mxu1 %v3999_v60  ;;  %v2644_v25 = vperm.slane %v5360_v31, 3  ;;  %v3971_v60 = vld [vmem:[%s4556_s26] sm:$0xff] }
 0x737   : > { %v2594_v33 = vmul.f32 %v2583_v53, %v5254_v11  ;;  %v4093_v11 = vld [vmem:[%s669_s27] ss:$0 sm:$0xff] }
 0x738   : > { %v2587_v8 = vmul.f32 0.5, %v2586_v17  ;;  %v3987_v17 = vld [vmem:[%s4556_s26 + $0x80] sm:$0xff] }
 0x739   : > { %v2599_v22 = vmul.f32 %v4092_v12, %v2594_v33  ;;  %3205 = vmatpush.bf16.msra.mxu2 %v3974_v18  ;;  %v3995_v53 = vld [vmem:[%s4556_s26 + $0xc0] sm:$0xff] }
 0x73a   : > { %v2588_v32 = vsub.f32 1.5, %v2587_v8  ;;  %3247 = vmatpush.bf16.msrb.mxu1 %v3998_v24 }
 0x73b   : > { %v2604_v28 = vadd.f32 %v4093_v11, %v2599_v22 }
 0x73c   : > { %v2589_v38 = vmul.f32 %v4138_v9, %v2588_v32 }
 0x73d   : > { %3206 = vmatpush.bf16.msra.mxu2 %v3973_v58 }
 0x73e   : > { %v2593_v1 = vsel %vm2592_vm7, %v4138_v9, %v2589_v38  ;;  %3248 = vmatpush.bf16.msrb.mxu1 %v3997_v0  ;;  %v3981_v9 = vld [vmem:[%s4556_s26 + $0x50] sm:$0xff] }
 0x73f   : > { %v2595_v30 = vmul.f32 %v2593_v1, %v5260_v39  ;;  %v3994_v39 = vld [vmem:[%s4556_s26 + $0xb8] sm:$0xff]  ;;  %3220 = vmatpush.bf16.msrb.mxu3 %v3981_v9 }
 0x740   : > { %3229 = vmatpush.bf16.msra.mxu0 %v3994_v39 }
 0x741   : > { %v2600_v56 = vmul.f32 %v4092_v12, %v2595_v30 }
 0x742   : > { %3249 = vmatpush.bf16.msrb.mxu1 %v3996_v20 }
 0x743   : > { %v2605_v57 = vadd.f32 %v4093_v11, %v2600_v56 }
 0x744   : > { %3230 = vmatpush.bf16.msra.mxu0 %v3993_v35 }
 0x745   : > { %v2606_v34 = vpack.c.bf16 %v2605_v57, %v2604_v28  ;;  %v3972_v28 = vld [vmem:[%s4556_s26 + $0x8] sm:$0xff] }
 0x746   : > { %3250 = vmatpush.bf16.msrb.mxu1 %v3995_v53  ;;  %3207 = vmatpush.bf16.msra.mxu2 %v3972_v28 }
 0x747   : > { %2817 = vmatmul.bf16.vlgmr.msrb.gmra.mxu2 %v2606_v34  ;;  %2831 = vmatmul.bf16.vlgmr.msra.gmra.mxu3 %v2606_v34 }
 0x748   : > { %2845 = vmatmul.bf16.vlgmr.msrb.gmra.mxu0 %v2606_v34  ;;  %2859 = vmatmul.bf16.vlgmr.msra.gmra.mxu1 %v2606_v34  ;;  %v3980_v34 = vld [vmem:[%s4556_s26 + $0x48] sm:$0xff] }
 0x749   : > { %3231 = vmatpush.bf16.msra.mxu0 %v3992_v40  ;;  %3221 = vmatpush.bf16.msrb.mxu3 %v3980_v34 }
 0x74a   : > { %3208 = vmatpush.bf16.msra.mxu2 %v3971_v60 }
 0x74d   : > { %3232 = vmatpush.bf16.msra.mxu0 %v3991_v45 }
 0x751   : > { %3233 = vmatpush.bf16.msra.mxu0 %v3990_v41  ;;  %v3979_v41 = vld [vmem:[%s4556_s26 + $0x40] sm:$0xff] }
 0x752   : > { %3222 = vmatpush.bf16.msrb.mxu3 %v3979_v41 }
 0x755   : > { %3234 = vmatpush.bf16.msra.mxu0 %v3989_v3 }
 0x759   : > { %3235 = vmatpush.bf16.msra.mxu0 %v3988_v50 }
 0x75d   : > { %3236 = vmatpush.bf16.msra.mxu0 %v3987_v17 }
 0x7c5   : > { %v2846_v43 = vpop.f32.mrf.mxu0  ;;  %v2860_v4 = vpop.f32.mrf.mxu1 }
 0x7c6   : > { %v5372_v46 = vadd.f32 %v2846_v43, %v2643_v42  ;;  %v5374_v5 = vadd.f32 %v2860_v4, %v2644_v25 }
 0x7c8   : > { %v2875_v44 = vmul.f32 0.044715, %v5372_v46  ;;  %v2876_v49 = vmul.f32 0.044715, %v5374_v5 }
 0x7ca   : > { %v2883_v27 = vmul.f32 %v2875_v44, %v5372_v46  ;;  %v2884_v51 = vmul.f32 %v2876_v49, %v5374_v5  ;;  %v2818_v52 = vpop.f32.mrf.mxu2  ;;  %v2832_v7 = vpop.f32.mrf.mxu3 }
 0x7cb   : > { %v5386_v16 = vadd.f32 %v2818_v52, %v2641_v47  ;;  %v5388_v54 = vadd.f32 %v2832_v7, %v2642_v55 }
 0x7cc   : > { %v2891_v13 = vmul.f32 %v2883_v27, %v5372_v46  ;;  %v2892_v2 = vmul.f32 %v2884_v51, %v5374_v5 }
 0x7cd   : > { %v2873_v8 = vmul.f32 0.044715, %v5386_v16  ;;  %v2874_v32 = vmul.f32 0.044715, %v5388_v54  ;;  %v2848_v33 = vpop.f32.mrf.mxu0  ;;  %v2862_v12 = vpop.f32.mrf.mxu1 }
 0x7ce   : > { %v2899_v38 = vadd.f32 %v2891_v13, %v5372_v46  ;;  %v5399_v1 = vadd.f32 %v2848_v33, %v2643_v42  ;;  %v5401_v30 = vadd.f32 %v2862_v12, %v2644_v25  ;;  %v2900_v22 = vadd.f32 %v2892_v2, %v5374_v5 }
 0x7cf   : > { %v2881_v11 = vmul.f32 %v2873_v8, %v5386_v16  ;;  %v2882_v56 = vmul.f32 %v2874_v32, %v5388_v54  ;;  %v2867_v2 = vmul.f32 0.5, %v5372_v46  ;;  %v2868_v32 = vmul.f32 0.5, %v5374_v5 }
 0x7d0   : > { %v2879_v57 = vmul.f32 0.044715, %v5399_v1  ;;  %v2880_v35 = vmul.f32 0.044715, %v5401_v30  ;;  %v2907_v15 = vmul.f32 0.7978846, %v2899_v38 }
 0x7d1   : > { %v2889_v39 = vmul.f32 %v2881_v11, %v5386_v16  ;;  %v2890_v63 = vmul.f32 %v2882_v56, %v5388_v54  ;;  %v2908_v37 = vmul.f32 0.7978846, %v2900_v22  ;;  %v2871_v17 = vmul.f32 0.5, %v5399_v1 }
 0x7d2   : > { %v2887_v36 = vmul.f32 %v2879_v57, %v5399_v1  ;;  %v2820_v29 = vpop.f32.mrf.mxu2  ;;  %v2834_v40 = vpop.f32.mrf.mxu3  ;;  %v2888_v62 = vmul.f32 %v2880_v35, %v5401_v30  ;;  %4139 = vtanh.f32 %v2907_v15  ;;  %v2872_v33 = vmul.f32 0.5, %v5401_v30 }
 0x7d3   : > { %v2897_v61 = vadd.f32 %v2889_v39, %v5386_v16  ;;  %v2821_v45 = vadd.f32 %v2820_v29, %v2641_v47  ;;  %v2898_v31 = vadd.f32 %v2890_v63, %v5388_v54  ;;  %v2835_v23 = vadd.f32 %v2834_v40, %v2642_v55 }
 0x7d4   : > { %v2895_v14 = vmul.f32 %v2887_v36, %v5399_v1  ;;  %v2896_v42 = vmul.f32 %v2888_v62, %v5401_v30  ;;  %4141 = vtanh.f32 %v2908_v37  ;;  %v2865_v46 = vmul.f32 0.5, %v5386_v16  ;;  %v4094_v16 = vld [vmem:[%s676_s2] ss:$0 sm:$0xff] }
 0x7d5   : > { %v2905_v24 = vmul.f32 0.7978846, %v2897_v61  ;;  %v2877_v25 = vmul.f32 0.044715, %v2821_v45  ;;  %v2878_v26 = vmul.f32 0.044715, %v2835_v23 }
 0x7d6   : > { %v2903_v19 = vadd.f32 %v2895_v14, %v5399_v1  ;;  %v2904_v3 = vadd.f32 %v2896_v42, %v5401_v30  ;;  %v2906_v43 = vmul.f32 0.7978846, %v2898_v31  ;;  %v2869_v1 = vmul.f32 0.5, %v2821_v45 }
 0x7d7   : > { %v2885_v0 = vmul.f32 %v2877_v25, %v2821_v45  ;;  %v2886_v47 = vmul.f32 %v2878_v26, %v2835_v23  ;;  %4143 = vtanh.f32 %v2905_v24  ;;  %v2866_v5 = vmul.f32 0.5, %v5388_v54 }
 0x7d8   : > { %v2911_v4 = vmul.f32 0.7978846, %v2903_v19  ;;  %v2912_v55 = vmul.f32 0.7978846, %v2904_v3  ;;  %v4140_v49 = vpop.eup %4139  ;;  %v2870_v30 = vmul.f32 0.5, %v2835_v23 }
 0x7d9   : > { %v2893_v18 = vmul.f32 %v2885_v0, %v2821_v45  ;;  %v2894_v48 = vmul.f32 %v2886_v47, %v2835_v23  ;;  %v2923_v7 = vadd.f32 1.0, %v4140_v49 }
 0x7da   : > { %4145 = vtanh.f32 %v2911_v4  ;;  %v4142_v20 = vpop.eup %4141 }
 0x7db   : > { %v2901_v44 = vadd.f32 %v2893_v18, %v2821_v45  ;;  %4147 = vtanh.f32 %v2912_v55  ;;  %v2902_v50 = vadd.f32 %v2894_v48, %v2835_v23  ;;  %v2924_v9 = vadd.f32 1.0, %v4142_v20 }
 0x7dc   : > { %4149 = vtanh.f32 %v2906_v43  ;;  %v2931_v38 = vmul.f32 %v2923_v7, %v2867_v2 }
 0x7dd   : > { %v2909_v27 = vmul.f32 0.7978846, %v2901_v44  ;;  %v2910_v51 = vmul.f32 0.7978846, %v2902_v50  ;;  %v4144_v52 = vpop.eup %4143  ;;  %v2932_v11 = vmul.f32 %v2924_v9, %v2868_v32 }
 0x7de   : > { %v2921_v28 = vadd.f32 1.0, %v4144_v52 }
 0x7df   : > { %4151 = vtanh.f32 %v2909_v27 }
 0x7e0   : > { %v4146_v58 = vpop.eup %4145  ;;  %4153 = vtanh.f32 %v2910_v51  ;;  %v2929_v29 = vmul.f32 %v2921_v28, %v2865_v46 }
 0x7e1   : > { %v4148_v13 = vpop.eup %4147  ;;  %v2927_v53 = vadd.f32 1.0, %v4146_v58 }
 0x7e2   : > { %v4150_v8 = vpop.eup %4149  ;;  %v2928_v12 = vadd.f32 1.0, %v4148_v13 }
 0x7e3   : > { %v2935_v22 = vmul.f32 %v2927_v53, %v2871_v17  ;;  %v2922_v39 = vadd.f32 1.0, %v4150_v8 }
 0x7e4   : > { %v2936_v56 = vmul.f32 %v2928_v12, %v2872_v33 }
 0x7e5   : > { %v4152_v57 = vpop.eup %4151  ;;  %v2939_v34 = vpack.c.bf16 %v2935_v22, %v2931_v38  ;;  %v2930_v37 = vmul.f32 %v2922_v39, %v2866_v5 }
 0x7e6   : > { %v4154_v63 = vpop.eup %4153  ;;  %v2940_v35 = vpack.c.bf16 %v2936_v56, %v2932_v11  ;;  %v2925_v15 = vadd.f32 1.0, %v4152_v57 }
 0x7e7   : > { %3237 = vmatmul.bf16.vlgmr.msra.gmra.mxu0 %v2939_v34  ;;  %v2926_v36 = vadd.f32 1.0, %v4154_v63 }
 0x7e8   : > { %3251 = vmatmul.bf16.vlgmr.msrb.gmra.mxu1 %v2940_v35  ;;  %v2933_v40 = vmul.f32 %v2925_v15, %v2869_v1 }
 0x7e9   : > { %v2934_v61 = vmul.f32 %v2926_v36, %v2870_v30 }
 0x7ea   : > { %v2937_v62 = vpack.c.bf16 %v2933_v40, %v2929_v29 }
 0x7eb   : > { %v2938_v60 = vpack.c.bf16 %v2934_v61, %v2930_v37 }
 0x7ec   : > { %3209 = vmatmul.bf16.vlgmr.msra.gmra.mxu2 %v2937_v62 }
 0x7ed   : > { %3223 = vmatmul.bf16.vlgmr.msrb.gmra.mxu3 %v2938_v60 }
 0x864   : > { %v3238_v54 = vpop.f32.mrf.mxu0 }
 0x865   : > { %v3252_v41 = vpop.f32.mrf.mxu1 }
 0x86c   : > { %v3240_v43 = vpop.f32.mrf.mxu0 }
 0x86d   : > { %v3254_v47 = vpop.f32.mrf.mxu1 }
 0x86f   : > { %v3210_v45 = vpop.f32.mrf.mxu2 }
 0x870   : > { %v3211_v31 = vadd.f32 %v4094_v16, %v3210_v45  ;;  %v3224_v14 = vpop.f32.mrf.mxu3 }
 0x872   : > { %v3225_v23 = vadd.f32 %v3224_v14, %v3211_v31 }
 0x874   : > { %v3239_v24 = vadd.f32 %v3238_v54, %v3225_v23 }
 0x876   : > { %v3253_v42 = vadd.f32 %v3252_v41, %v3239_v24 }
 0x877   : > { %v3212_v25 = vpop.f32.mrf.mxu2 }
 0x878   : > { %v5434_v19 = vadd.f32 %v3253_v42, %v5243_v59  ;;  %v3213_v26 = vadd.f32 %v4094_v16, %v3212_v25  ;;  %v3226_v3 = vpop.f32.mrf.mxu3 }
 0x87a   : > { %v3227_v0 = vadd.f32 %v3226_v3, %v3213_v26 }
 0x87c   : > { %v3241_v4 = vadd.f32 %v3240_v43, %v3227_v0  ;;  %3262 = sbr.rel (%p3900_p10) target bundleno = 2452 (0x994), region = 96 }
 0x87e   : > { %v3255_v55 = vadd.f32 %v3254_v47, %v3241_v4 }
 0x880   : > { %v3258_v18 = vadd.f32 %v3255_v55, %v5249_v6 }
 0x881   : > { %3265 = vadd.xlane.f32.xlu0 %v5434_v19  ;;  %v4157_v38 = vld [vmem:[%s5530_s23] ss:$0 sm:$0xff] }
 0x882   : > { %v4158_v56 = vld [vmem:[%s5531_s20] ss:$0 sm:$0xff] }
 0x889   : > { %3267 = vadd.xlane.f32.xlu0 %v3258_v18 }
 0x8f4   : > { %v3266_v48 = vpop.xlane.xlu0 %3265 }
 0x8f5   : > { %v3269_v44 = vmul.f32 %v3266_v48, %v4577_v10 }
 0x8f7   : > { %v3271_v59 = vsub.f32 %v5434_v19, %v3269_v44 }
 0x8f9   : > { %v3273_v49 = vmul.f32 %v3271_v59, %v3271_v59 }
 0x8fb   : > { %3275 = vadd.xlane.f32.xlu1 %v3273_v49 }
 0x8fc   : > { %v3268_v50 = vpop.xlane.xlu0 %3267 }
 0x8fd   : > { %v3270_v20 = vmul.f32 %v3268_v50, %v4577_v10 }
 0x8ff   : > { %v3272_v27 = vsub.f32 %v3258_v18, %v3270_v20 }
 0x901   : > { %v3274_v51 = vmul.f32 %v3272_v27, %v3272_v27 }
 0x903   : > { %3277 = vadd.xlane.f32.xlu1 %v3274_v51 }
 0x96e   : > { %v3276_v6 = vpop.xlane.xlu1 %3275 }
 0x96f   : > { %v3279_v52 = vmul.f32 %v3276_v6, %v4635_v21 }
 0x971   : > { %v3281_v7 = vadd.f32 1e-05, %v3279_v52 }
 0x973   : > { %4159 = vrsqrt.f32 %v3281_v7  ;;  %vm3289_vm13 = vweird.f32 %v3281_v7 }
 0x976   : > { %v3278_v58 = vpop.xlane.xlu1 %3277 }
 0x977   : > { %v3280_v9 = vmul.f32 %v3278_v58, %v4635_v21 }
 0x979   : > { %v4160_v13 = vpop.eup %4159  ;;  %v3282_v2 = vadd.f32 1e-05, %v3280_v9 }
 0x97a   : > { %v3284_v17 = vmul.f32 %v4160_v13, %v3281_v7  ;;  %vm3290_vm10 = vweird.f32 %v4160_v13 }
 0x97b   : > { %4161 = vrsqrt.f32 %v3282_v2  ;;  %vm3291_vm14 = vmor %vm3289_vm13, %vm3290_vm10  ;;  %vm3299_vm0 = vweird.f32 %v3282_v2 }
 0x97c   : > { %v3285_v53 = vmul.f32 %v4160_v13, %v3284_v17 }
 0x97e   : > { %v3286_v8 = vmul.f32 0.5, %v3285_v53 }
 0x980   : > { %v3287_v32 = vsub.f32 1.5, %v3286_v8 }
 0x981   : > { %v4162_v10 = vpop.eup %4161 }
 0x982   : > { %v3288_v33 = vmul.f32 %v4160_v13, %v3287_v32  ;;  %v3294_v12 = vmul.f32 %v4162_v10, %v3282_v2  ;;  %vm3300_vm15 = vweird.f32 %v4162_v10 }
 0x983   : > { %vm3301_vm1 = vmor %vm3299_vm0, %vm3300_vm15 }
 0x984   : > { %v3292_v22 = vsel %vm3291_vm14, %v4160_v13, %v3288_v33  ;;  %v3295_v11 = vmul.f32 %v4162_v10, %v3294_v12 }
 0x985   : > { %v3303_v21 = vmul.f32 %v3292_v22, %v3271_v59 }
 0x986   : > { %v3296_v28 = vmul.f32 0.5, %v3295_v11 }
 0x987   : > { %v3308_v57 = vmul.f32 %v4157_v38, %v3303_v21 }
 0x988   : > { %v3297_v34 = vsub.f32 1.5, %v3296_v28 }
 0x989   : > { %v3313_v39 = vadd.f32 %v4158_v56, %v3308_v57 }
 0x98a   : > { %v3298_v63 = vmul.f32 %v4162_v10, %v3297_v34 }
 0x98b   : > { %3315 = vst [vmem:[%s5532_s11] sm:$0xff] %v3313_v39 }
 0x98c   : > { %v3302_v35 = vsel %vm3301_vm1, %v4162_v10, %v3298_v63 }
 0x98d   : > { %v3304_v46 = vmul.f32 %v3302_v35, %v3272_v27 }
 0x98f   : > { %v3309_v1 = vmul.f32 %v4157_v38, %v3304_v46 }
 0x991   : > { %v3314_v15 = vadd.f32 %v4158_v56, %v3309_v1 }
 0x993   : > { %3316 = vst [vmem:[%s5532_s11 + $0x8] sm:$0xff] %v3314_v15 }
 0x994 PF: > { %p3901_p5 = scmp.ge.s32.totalorder %s4401_s17, 1 }
 0x995   : > { %s5533_s16 = sld [smem:[#allocation20_spill]] (!%p3901_p5) }
 0x996   : > { %3320 = sbr.rel (%p3901_p5) target bundleno = 2461 (0x99d), region = 100 }
 0x99b   : > { %3321 = vst [vmem:[%s5533_s16] sm:$0xff] %v5434_v19 }
 0x99c   : > { %3322 = vst [vmem:[%s5533_s16 + $0x8] sm:$0xff] %v3258_v18 }
 0x99d PF: > { %s5534_s16 = sld [smem:[#allocation10_spill]]  ;;  %s5537_s29 = smov %s4283_s30 }
 0x99e   : > { %s5535_s15 = sld [smem:[#allocation9_spill]] }
 0x99f   : > { %s5536_s18 = sld [smem:[#allocation11_spill]] }
 0x9a3   : > { %p27_p13 = scmp.ge.s32.totalorder %s5534_s16, 4  }
 0x9a4   : > { %s5538_s30 = smov %s5535_s15 }
 0x9a5   : > { %s5539_s15 = smov %s5536_s18  ;;  %29 = sbr.rel (!%p27_p13) target bundleno = 15 (0xf), region = 172 }
 0x9aa   :  { %3334 = vsyncpa [#allocation3], 1 }
 0x9ab   :  { %3336 = vsyncpa [#allocation3 + $0x1], 1 }
 0x9ac   :  { %3337 = vsyncpa [#allocation5], 1 }
 0x9ad   :  { %3339 = vsyncpa [#allocation5 + $0x1], 1 }

</bundles_post_ra>
